<compile_context>
chip_gen: v5e
topology: v5e:2x2
jax: 0.10.0
libtpu: 0.0.40
codegen_flags: <defaults>
</compile_context>

<pallas_src>
import jax
import jax.numpy as jnp
from jax import lax
from jax.experimental import pallas as pl
from jax.experimental.pallas import tpu as pltpu

LATENT_DIM = 32
H1 = 512
H2 = 256
OUT = 1

# Keeps h1/h2 temporaries + double-buffered z tile well under v5e's 16 MiB
# default scoped-VMEM limit (v6e/v7x have more headroom).
_MAX_BATCH_TILE = 2048


def _cdiv(a, b):
    return -(-a // b)


def _round_up(x, m):
    return _cdiv(x, m) * m


def _leaky_relu(x, slope=0.2):
    # max(x, a*x) == LeakyReLU(a) for 0 < a < 1: mul+max (2 VALU ops/elem)
    # instead of cmp+select+mul (3 ops/elem).
    return jnp.maximum(x, slope * x)


def _use_bf16_epilogue():
    # v6e/v7x have bf16 VALUs and MXU slack -> bf16 epilogues + MXU layer 3.
    # v5e has no bf16 VPU and is MXU-bound -> keep f32 epilogues + VPU reduce.
    try:
        kind = jax.devices()[0].device_kind.lower()
    except Exception:  # pragma: no cover
        return True
    return not ("v5 lite" in kind or "v5lite" in kind or "v5e" in kind)


def _make_kernel(use_bf16_epilogue):
    def kernel(z_ref, w1_ref, b1_ref, w2_ref, b2_ref, w3_ref, b3_ref, out_ref):
        # z_ref:  (TB, L)  f32   -- batch-major tile straight from HBM
        # w1_ref: (H1, L)  bf16  (resident)
        # w2_ref: (H2, H1) bf16  (resident)
        # b1/b2:  (H, 1)   bf16 (fast path) or f32 (v5e path)
        # w3_ref: (1, H2)  bf16 (fast path) or (H2, 1) f32 (v5e path)
        # b3_ref: (1,)     f32 in SMEM
        # out_ref:(1, TB)  f32   -- lane-dense sigmoid output
        z_bf = z_ref[...].astype(jnp.bfloat16)

        # Layer 1: W1 @ z^T without a wrapper-side transpose -- contract both
        # operands on their last (L=32) axis, f32 MXU accumulation.
        h1 = lax.dot_general(
            w1_ref[...], z_bf,
            dimension_numbers=(((1,), (1,)), ((), ())),
            preferred_element_type=jnp.float32)            # (H1, TB) f32

        if use_bf16_epilogue:
            # bf16 epilogues halve VALU vreg count on v6e/v7x; the bf16 cast
            # is already required for the next bf16 MXU matmul.
            h1 = _leaky_relu(h1.astype(jnp.bfloat16) + b1_ref[...])
            h2 = jnp.dot(w2_ref[...], h1, preferred_element_type=jnp.float32)
            h2 = _leaky_relu(h2.astype(jnp.bfloat16) + b2_ref[...])
            # Layer 3 (256 -> 1) as an M=1 bf16 MXU matmul: shifts ~H2 VALU
            # ops/sample onto the idle vmatmul slot.
            logit = jnp.dot(w3_ref[...], h2,
                            preferred_element_type=jnp.float32)   # (1, TB)
            logit = logit + b3_ref[0]
        else:
            # v5e: f32 VPU epilogues, 256->1 as broadcast-mul + sublane reduce.
            h1 = _leaky_relu(h1 + b1_ref[...])
            h2 = jnp.dot(w2_ref[...], h1.astype(jnp.bfloat16),
                         preferred_element_type=jnp.float32)
            h2 = _leaky_relu(h2 + b2_ref[...])
            logit = jnp.sum(h2 * w3_ref[...], axis=0, keepdims=True) + b3_ref[0]

        out_ref[...] = jax.nn.sigmoid(logit)

    return kernel


def _pick_batch_tile(B):
    b_r = max(128, _round_up(B, 128))
    # >= 2 tiles whenever the batch allows it (v7x megacore sharding), and
    # tile <= _MAX_BATCH_TILE (v5e scoped-VMEM safety).
    n_target = 1 if b_r <= 128 else max(2, _cdiv(b_r, _MAX_BATCH_TILE))
    bt = _round_up(_cdiv(b_r, n_target), 128)
    return min(_MAX_BATCH_TILE, bt)


def discriminator_forward(z, params, *, batch_tile=None):
    """z: (B, latent_dim) f32. params in PyTorch layout (W: (out, in), b: (out,))."""
    w1, b1, w2, b2, w3, b3 = params
    B, L = z.shape
    assert L == LATENT_DIM

    bt = batch_tile if batch_tile is not None else _pick_batch_tile(B)
    n_tiles = pl.cdiv(B, bt)
    B_pad = n_tiles * bt

    # Zero-pad the batch dim only when ragged (no transpose, no cast: the bf16
    # cast and the layer-1 "transpose" both happen inside the kernel).
    z_in = z.astype(jnp.float32)
    if B_pad != B:
        z_in = jnp.pad(z_in, ((0, B_pad - B), (0, 0)))

    fast = _use_bf16_epilogue()
    kernel = _make_kernel(fast)

    w1_bf = w1.astype(jnp.bfloat16)                     # (H1, L)
    w2_bf = w2.astype(jnp.bfloat16)                     # (H2, H1)
    if fast:
        b1_k = b1.reshape(H1, 1).astype(jnp.bfloat16)
        b2_k = b2.reshape(H2, 1).astype(jnp.bfloat16)
        w3_k = w3.reshape(1, H2).astype(jnp.bfloat16)   # row vector for MXU
    else:
        b1_k = b1.reshape(H1, 1).astype(jnp.float32)
        b2_k = b2.reshape(H2, 1).astype(jnp.float32)
        w3_k = w3.reshape(H2, 1).astype(jnp.float32)    # column vector for VPU
    b3_s = b3.reshape(1).astype(jnp.float32)            # SMEM scalar

    const = lambda shape: pl.BlockSpec(shape, lambda i: (0, 0))

    out = pl.pallas_call(
        kernel,
        out_shape=jax.ShapeDtypeStruct((1, B_pad), jnp.float32),
        grid_spec=pltpu.PrefetchScalarGridSpec(
            num_scalar_prefetch=0,
            grid=(n_tiles,),
            in_specs=[
                pl.BlockSpec((bt, L), lambda i: (i, 0)),            # z tiles (f32)
                const((H1, L)),                                     # W1 (resident)
                const((H1, 1)),                                     # b1
                const((H2, H1)),                                    # W2 (resident)
                const((H2, 1)),                                     # b2
                const(w3_k.shape),                                  # w3
                pl.BlockSpec(memory_space=pltpu.MemorySpace.SMEM),  # b3 scalar
            ],
            out_specs=pl.BlockSpec((1, bt), lambda i: (0, i)),
        ),
        compiler_params=pltpu.CompilerParams(
            dimension_semantics=("parallel",)),
    )(z_in, w1_bf, b1_k, w2_bf, b2_k, w3_k, b3_s)

    return out[0, :B].reshape(B, OUT)


def init_params(key):
    # PyTorch-style Linear init: uniform(-1/sqrt(fan_in), 1/sqrt(fan_in)),
    # weights stored as (out_features, in_features).
    ks = jax.random.split(key, 6)

    def lin(kw, kb, fan_in, fan_out):
        bound = 1.0 / float(fan_in) ** 0.5
        w = jax.random.uniform(kw, (fan_out, fan_in), jnp.float32, -bound, bound)
        b = jax.random.uniform(kb, (fan_out,), jnp.float32, -bound, bound)
        return w, b

    w1, b1 = lin(ks[0], ks[1], LATENT_DIM, H1)
    w2, b2 = lin(ks[2], ks[3], H1, H2)
    w3, b3 = lin(ks[4], ks[5], H2, OUT)
    return (w1, b1, w2, b2, w3, b3)


def reference_forward(z, params):
    # Full-f32 reference matching the PyTorch module.
    w1, b1, w2, b2, w3, b3 = params
    h1 = z @ w1.T + b1
    h1 = jnp.where(h1 > 0, h1, 0.2 * h1)
    h2 = h1 @ w2.T + b2
    h2 = jnp.where(h2 > 0, h2, 0.2 * h2)
    return jax.nn.sigmoid(h2 @ w3.T + b3)


if __name__ == "__main__":
    key = jax.random.PRNGKey(0)
    k_params, k_z = jax.random.split(key)
    params = init_params(k_params)

    # Small deterministic example (batch=8, latent_dim=32); padded to a single
    # 128-wide tile inside the wrapper.
    B = 8
    z = jax.random.normal(k_z, (B, LATENT_DIM), jnp.float32)

    out = jax.block_until_ready(discriminator_forward(z, params))
    ref = reference_forward(z, params)
    assert out.shape == (B, OUT)
    assert bool(jnp.all(jnp.isfinite(out)))
    # bf16 weights/activations with f32 MXU accumulation (and bf16 epilogues on
    # v6e/v7x) -> relaxed tolerance vs the f32 reference.
    assert jnp.allclose(out, ref, atol=2e-2), float(jnp.max(jnp.abs(out - ref)))

    # Exercise the multi-tile grid path (2 batch tiles of 256).
    B2 = 512
    z2 = jax.random.normal(jax.random.PRNGKey(1), (B2, LATENT_DIM), jnp.float32)
    out2 = jax.block_until_ready(discriminator_forward(z2, params))
    ref2 = reference_forward(z2, params)
    assert out2.shape == (B2, OUT)
    assert bool(jnp.all(jnp.isfinite(out2)))
    assert jnp.allclose(out2, ref2, atol=2e-2), float(jnp.max(jnp.abs(out2 - ref2)))

    print("KERNEL_OK")
</pallas_src>

<mosaic_0001>
module attributes {stable_mosaic.version = 11 : i64} {
  func.func @kernel(%arg0: i32, %arg1: memref<128x32xf32, #tpu.memory_space<vmem>>, %arg2: memref<512x32xbf16, #tpu.memory_space<vmem>>, %arg3: memref<512x1xbf16, #tpu.memory_space<vmem>>, %arg4: memref<256x512xbf16, #tpu.memory_space<vmem>>, %arg5: memref<256x1xbf16, #tpu.memory_space<vmem>>, %arg6: memref<1x256xbf16, #tpu.memory_space<vmem>>, %arg7: memref<1xf32, #tpu.memory_space<smem>>, %arg8: memref<1x128xf32, #tpu.memory_space<vmem>>) attributes {dimension_semantics = [#tpu.dimension_semantics<parallel>], iteration_bounds = array<i64: 1>, scalar_prefetch = 0 : i64, scratch_operands = 0 : i64, tpu.core_type = #tpu.core_type<tc>, window_params = [{transform_indices = @transform_0, window_bounds = array<i64: 128, 32>}, {pipeline_mode = #tpu.pipeline_mode<synchronous>, transform_indices = @transform_1, window_bounds = array<i64: 512, 32>}, {pipeline_mode = #tpu.pipeline_mode<synchronous>, transform_indices = @transform_2, window_bounds = array<i64: 512, 1>}, {pipeline_mode = #tpu.pipeline_mode<synchronous>, transform_indices = @transform_3, window_bounds = array<i64: 256, 512>}, {pipeline_mode = #tpu.pipeline_mode<synchronous>, transform_indices = @transform_4, window_bounds = array<i64: 256, 1>}, {pipeline_mode = #tpu.pipeline_mode<synchronous>, transform_indices = @transform_5, window_bounds = array<i64: 1, 256>}, {transform_indices = @transform_6, window_bounds = array<i64: 1>}, {transform_indices = @transform_7, window_bounds = array<i64: 1, 128>}]} {
    %c0 = arith.constant 0 : index
    %c0_0 = arith.constant 0 : index
    %0 = vector.load %arg1[%c0, %c0_0] : memref<128x32xf32, #tpu.memory_space<vmem>>, vector<128x32xf32>
    %1 = arith.truncf %0 : vector<128x32xf32> to vector<128x32xbf16>
    %c0_1 = arith.constant 0 : index
    %c0_2 = arith.constant 0 : index
    %2 = vector.load %arg2[%c0_1, %c0_2] : memref<512x32xbf16, #tpu.memory_space<vmem>>, vector<512x32xbf16>
    %cst = arith.constant dense<0.000000e+00> : vector<512x128xf32>
    %3 = tpu.matmul %2, %1, %cst {dimension_numbers = #tpu.dot_dimension_numbers<[1], [1], [0], [0], [0, 0, 1, 0], [], []>} : vector<512x32xbf16>, vector<128x32xbf16>, vector<512x128xf32> -> vector<512x128xf32>
    %4 = arith.truncf %3 : vector<512x128xf32> to vector<512x128xbf16>
    %c0_3 = arith.constant 0 : index
    %c0_4 = arith.constant 0 : index
    %5 = vector.load %arg3[%c0_3, %c0_4] : memref<512x1xbf16, #tpu.memory_space<vmem>>, vector<512x1xbf16>
    %6 = vector.broadcast %5 : vector<512x1xbf16> to vector<512x128xbf16>
    %7 = arith.addf %4, %6 : vector<512x128xbf16>
    %cst_5 = arith.constant 2.001950e-01 : bf16
    %8 = vector.broadcast %cst_5 : bf16 to vector<512x128xbf16>
    %9 = arith.mulf %8, %7 : vector<512x128xbf16>
    %10 = arith.maximumf %7, %9 : vector<512x128xbf16>
    %c0_6 = arith.constant 0 : index
    %c0_7 = arith.constant 0 : index
    %11 = vector.load %arg4[%c0_6, %c0_7] : memref<256x512xbf16, #tpu.memory_space<vmem>>, vector<256x512xbf16>
    %cst_8 = arith.constant dense<0.000000e+00> : vector<256x128xf32>
    %12 = tpu.matmul %11, %10, %cst_8 {dimension_numbers = #tpu.dot_dimension_numbers<[1], [0], [0], [1], [0, 0, 1, 1], [], []>} : vector<256x512xbf16>, vector<512x128xbf16>, vector<256x128xf32> -> vector<256x128xf32>
    %13 = arith.truncf %12 : vector<256x128xf32> to vector<256x128xbf16>
    %c0_9 = arith.constant 0 : index
    %c0_10 = arith.constant 0 : index
    %14 = vector.load %arg5[%c0_9, %c0_10] : memref<256x1xbf16, #tpu.memory_space<vmem>>, vector<256x1xbf16>
    %15 = vector.broadcast %14 : vector<256x1xbf16> to vector<256x128xbf16>
    %16 = arith.addf %13, %15 : vector<256x128xbf16>
    %cst_11 = arith.constant 2.001950e-01 : bf16
    %17 = vector.broadcast %cst_11 : bf16 to vector<256x128xbf16>
    %18 = arith.mulf %17, %16 : vector<256x128xbf16>
    %19 = arith.maximumf %16, %18 : vector<256x128xbf16>
    %c0_12 = arith.constant 0 : index
    %c0_13 = arith.constant 0 : index
    %20 = vector.load %arg6[%c0_12, %c0_13] : memref<1x256xbf16, #tpu.memory_space<vmem>>, vector<1x256xbf16>
    %cst_14 = arith.constant dense<0.000000e+00> : vector<1x128xf32>
    %21 = tpu.matmul %20, %19, %cst_14 {dimension_numbers = #tpu.dot_dimension_numbers<[1], [0], [0], [1], [0, 0, 1, 1], [], []>} : vector<1x256xbf16>, vector<256x128xbf16>, vector<1x128xf32> -> vector<1x128xf32>
    %c0_15 = arith.constant 0 : index
    %22 = memref.load %arg7[%c0_15] : memref<1xf32, #tpu.memory_space<smem>>
    %23 = vector.broadcast %22 : f32 to vector<1x128xf32>
    %24 = arith.addf %21, %23 : vector<1x128xf32>
    %25 = arith.negf %24 : vector<1x128xf32>
    %26 = math.exp %25 : vector<1x128xf32>
    %cst_16 = arith.constant 1.000000e+00 : f32
    %27 = vector.broadcast %cst_16 : f32 to vector<1x128xf32>
    %28 = arith.addf %27, %26 : vector<1x128xf32>
    %29 = arith.divf %27, %28 : vector<1x128xf32>
    %c0_17 = arith.constant 0 : index
    %c0_18 = arith.constant 0 : index
    %30 = vector.load %arg8[%c0_17, %c0_18] : memref<1x128xf32, #tpu.memory_space<vmem>>, vector<1x128xf32>
    tpu.vector_store %arg8[%c0_17, %c0_18], %29 {strides = array<i32>} : memref<1x128xf32, #tpu.memory_space<vmem>>, vector<1x128xf32>,
    return
  }
  func.func @transform_0(%arg0: i32) -> (i32, i32) {
    %c0_i32 = arith.constant 0 : i32
    %c0_i32_0 = arith.constant 0 : i32
    return %arg0, %c0_i32 : i32, i32
  }
  func.func @transform_1(%arg0: i32) -> (i32, i32) {
    %c0_i32 = arith.constant 0 : i32
    %c0_i32_0 = arith.constant 0 : i32
    %c0_i32_1 = arith.constant 0 : i32
    return %c0_i32, %c0_i32_0 : i32, i32
  }
  func.func @transform_2(%arg0: i32) -> (i32, i32) {
    %c0_i32 = arith.constant 0 : i32
    %c0_i32_0 = arith.constant 0 : i32
    %c0_i32_1 = arith.constant 0 : i32
    return %c0_i32, %c0_i32_0 : i32, i32
  }
  func.func @transform_3(%arg0: i32) -> (i32, i32) {
    %c0_i32 = arith.constant 0 : i32
    %c0_i32_0 = arith.constant 0 : i32
    %c0_i32_1 = arith.constant 0 : i32
    return %c0_i32, %c0_i32_0 : i32, i32
  }
  func.func @transform_4(%arg0: i32) -> (i32, i32) {
    %c0_i32 = arith.constant 0 : i32
    %c0_i32_0 = arith.constant 0 : i32
    %c0_i32_1 = arith.constant 0 : i32
    return %c0_i32, %c0_i32_0 : i32, i32
  }
  func.func @transform_5(%arg0: i32) -> (i32, i32) {
    %c0_i32 = arith.constant 0 : i32
    %c0_i32_0 = arith.constant 0 : i32
    %c0_i32_1 = arith.constant 0 : i32
    return %c0_i32, %c0_i32_0 : i32, i32
  }
  func.func @transform_6(%arg0: i32) -> i32 {
    %c0_i32 = arith.constant 0 : i32
    %c0_i32_0 = arith.constant 0 : i32
    return %c0_i32 : i32
  }
  func.func @transform_7(%arg0: i32) -> (i32, i32) {
    %c0_i32 = arith.constant 0 : i32
    %c0_i32_0 = arith.constant 0 : i32
    return %c0_i32, %arg0 : i32, i32
  }
}

</mosaic_0001>

<bundles_post_ra>
// kernel: tpu_custom_call.1
= control target key start
LH: loop header
LB: loop body
LE: loop exit
PB: predicated region body
PF: predicated region fallthrough
CT: control target
= control target key end

     0   :  { %vm276_vm0 = vcmask 261120   ;;  %s5559_s0 = inlined_call_operand.vmem [shape: f32[128,32], index: 0, kind: input, shape index: {}]   ;;  %s5560_s1 = inlined_call_operand.vmem [shape: bf16[512,32], index: 1, kind: input, shape index: {}]   ;;  %s5561_s2 = inlined_call_operand.vmem [shape: bf16[512,1], index: 2, kind: input, shape index: {}]   ;;  %s5562_s3 = inlined_call_operand.vmem [shape: bf16[256,512], index: 3, kind: input, shape index: {}]   ;;  %s5563_s4 = inlined_call_operand.vmem [shape: bf16[256,1], index: 4, kind: input, shape index: {}]   ;;  %s5564_s5 = inlined_call_operand.vmem [shape: bf16[1,256], index: 5, kind: input, shape index: {}]   ;;  %s5565_s6 = inlined_call_operand.<no memory space> [shape: f32[1], index: 6, kind: input, shape index: {}]   ;;  %s5566_s7 = inlined_call_operand.hbm [shape: f32[1,128], index: 7, kind: output, shape index: {}]  }
   0x1   :  { %v42_v0 = vld [vmem:[%s5559_s0 + $0x70] sm:$0xff]  ;;  %v43_v1 = vld [vmem:[%s5559_s0 + $0x78] sm:$0xff]  ;;  %v40_v3 = vld [vmem:[%s5559_s0 + $0x60] sm:$0xff] }
   0x2   :  { %v51_v2 = vpack.c.bf16 %v43_v1, %v42_v0  ;;  %v41_v4 = vld [vmem:[%s5559_s0 + $0x68] sm:$0xff] }
   0x4   :  { %v395_v5 = vsel %vm276_vm0, %v51_v2, 0 }
   0x5   :  { %13 = vsyncpa [#allocation4], 0  ;;  %397 = vmatpush.bf16.xpose.msra.mxu0 %v395_v5  ;;  %v644_v6 = vld [vmem:[%s5561_s2 + $0x38] sm:$0xf]  ;;  %3858 = vmatpush.bf16.xpose.msra.mxu2 %v395_v5  ;;  %v50_v7 = vpack.c.bf16 %v41_v4, %v40_v3  ;;  %v3910_v8 = vmov 0   ;;  %v38_v10 = vld [vmem:[%s5559_s0 + $0x50] sm:$0xff] }
   0x6   :  { %3877 = vset.pattern.permute.xlu0 %v3910_v8  ;;  %3878 = vset.pattern.permute.xlu1 %v3910_v8  ;;  %v39_v11 = vld [vmem:[%s5559_s0 + $0x58] sm:$0xff]  ;;  %v642_v12 = vld [vmem:[%s5561_s2 + $0x30] sm:$0xf]  ;;  %v36_v16 = vld [vmem:[%s5559_s0 + $0x40] sm:$0xff]  ;;  %s3912_s11 = smov [#allocation3]   ;;  %s3336_s14 = sshll.u32 %s5566_s7, 4  ;;  %s3337_s14 = int_to_ptr.hbm [resolvable:$true] %s3336_s14 }
   0x7   :  { %822 = vperm.xlu0 %3877, %v644_v6   ;;  %3879 = vset.pattern.permute.xlu2 %v3910_v8  ;;  %v392_v9 = vsel %vm276_vm0, %v50_v7, 0  ;;  %v645_v13 = vld [vmem:[%s5561_s2 + $0x3c] sm:$0xf]  ;;  %v49_v14 = vpack.c.bf16 %v39_v11, %v38_v10  ;;  %v37_v17 = vld [vmem:[%s5559_s0 + $0x48] sm:$0xff]  ;;  %v643_v18 = vld [vmem:[%s5561_s2 + $0x34] sm:$0xf] }
   0x8   :  { %804 = vperm.xlu1 %3878, %v642_v12   ;;  %v638_v19 = vld [vmem:[%s5561_s2 + $0x20] sm:$0xf]  ;;  %v48_v20 = vpack.c.bf16 %v37_v17, %v36_v16  ;;  %v34_v22 = vld [vmem:[%s5559_s0 + $0x30] sm:$0xff]  ;;  %v35_v23 = vld [vmem:[%s5559_s0 + $0x38] sm:$0xff]  ;;  %s3334_s12 = sshll.u32 %s3912_s11, 4  ;;  %s3335_s12 = int_to_ptr.vmem [resolvable:$true] %s3334_s12 }
   0x9   :  { %v389_v15 = vsel %vm276_vm0, %v49_v14, 0  ;;  %v639_v24 = vld [vmem:[%s5561_s2 + $0x24] sm:$0xf]  ;;  %v637_v25 = vld [vmem:[%s5561_s2 + $0x1c] sm:$0xf]  ;;  %v47_v26 = vpack.c.bf16 %v35_v23, %v34_v22  ;;  %v33_v29 = vld [vmem:[%s5559_s0 + $0x28] sm:$0xff] }
   0xa   :  { %v386_v21 = vsel %vm276_vm0, %v48_v20, 0  ;;  %v32_v28 = vld [vmem:[%s5559_s0 + $0x20] sm:$0xff]  ;;  %v640_v30 = vld [vmem:[%s5561_s2 + $0x28] sm:$0xf]  ;;  %v634_v31 = vld [vmem:[%s5561_s2 + $0x10] sm:$0xf] }
   0xb   :  { %v383_v27 = vsel %vm276_vm0, %v47_v26, 0  ;;  %v632_v32 = vld [vmem:[%s5561_s2 + $0x8] sm:$0xf]  ;;  %786 = vperm.xlu2 %3879, %v640_v30   ;;  %v46_v33 = vpack.c.bf16 %v33_v29, %v32_v28  ;;  %v641_v35 = vld [vmem:[%s5561_s2 + $0x2c] sm:$0xf]  ;;  %v30_v36 = vld [vmem:[%s5559_s0 + $0x10] sm:$0xff] }
   0xc   :  { %v31_v37 = vld [vmem:[%s5559_s0 + $0x18] sm:$0xff]  ;;  %v633_v38 = vld [vmem:[%s5561_s2 + $0xc] sm:$0xf]  ;;  %v631_v39 = vld [vmem:[%s5561_s2 + $0x4] sm:$0xf] }
   0xd   :  { %398 = vmatpush.bf16.xpose.msra.mxu0 %v392_v9  ;;  %3859 = vmatpush.bf16.xpose.msra.mxu2 %v392_v9  ;;  %v380_v34 = vsel %vm276_vm0, %v46_v33, 0  ;;  %v45_v40 = vpack.c.bf16 %v31_v37, %v30_v36  ;;  %v28_v42 = vld [vmem:[%s5559_s0] sm:$0xff]  ;;  %v29_v43 = vld [vmem:[%s5559_s0 + $0x8] sm:$0xff]  ;;  %v636_v44 = vld [vmem:[%s5561_s2 + $0x18] sm:$0xf] }
   0xe   :  { %v660_v45 = vld [vmem:[%s5561_s2 + $0x78] sm:$0xf]  ;;  %v44_v47 = vpack.c.bf16 %v29_v43, %v28_v42  ;;  %v635_v49 = vld [vmem:[%s5561_s2 + $0x14] sm:$0xf]  ;;  %v677_v50 = vld [vmem:[%s5561_s2 + $0xbc] sm:$0xf] }
   0xf   :  { %831 = vperm.xlu0 %3877, %v645_v13   ;;  %v377_v41 = vsel %vm276_vm0, %v45_v40, 0  ;;  %v676_v46 = vld [vmem:[%s5561_s2 + $0xb8] sm:$0xf]  ;;  %v659_v51 = vld [vmem:[%s5561_s2 + $0x74] sm:$0xf]  ;;  %v3762_v52 = vld [vmem:[%s5560_s1] sm:$0xff] }
  0x10   :  { %813 = vperm.xlu1 %3878, %v643_v18   ;;  %v374_v48 = vsel %vm276_vm0, %v44_v47, 0  ;;  %v674_v53 = vld [vmem:[%s5561_s2 + $0xb0] sm:$0xf]  ;;  %v630_v54 = vld [vmem:[%s5561_s2] sm:$0xf]  ;;  %v3763_v59 = vld [vmem:[%s5560_s1 + $0x8] sm:$0xff] }
  0x11   :  { %v656_v55 = vld [vmem:[%s5561_s2 + $0x68] sm:$0xf]  ;;  %v661_v56 = vld [vmem:[%s5561_s2 + $0x7c] sm:$0xf]  ;;  %v657_v57 = vld [vmem:[%s5561_s2 + $0x6c] sm:$0xf] }
  0x12   :  { %v673_v58 = vld [vmem:[%s5561_s2 + $0xac] sm:$0xf]  ;;  %v692_v60 = vld [vmem:[%s5561_s2 + $0xf8] sm:$0xf]  ;;  %v654_v61 = vld [vmem:[%s5561_s2 + $0x60] sm:$0xf] }
  0x13   :  { %795 = vperm.xlu2 %3879, %v641_v35   ;;  %v658_v62 = vld [vmem:[%s5561_s2 + $0x70] sm:$0xf]  ;;  %v3786_v63 = vld [vmem:[%s5560_s1 + $0xc0] sm:$0xff]  ;;  %v675_v0 = vld [vmem:[%s5561_s2 + $0xb4] sm:$0xf] }
  0x14   :  { %v655_v1 = vld [vmem:[%s5561_s2 + $0x64] sm:$0xf]  ;;  %v3764_v3 = vld [vmem:[%s5560_s1 + $0x10] sm:$0xff]  ;;  %v652_v5 = vld [vmem:[%s5561_s2 + $0x58] sm:$0xf] }
  0x15   :  { %399 = vmatpush.bf16.xpose.msra.mxu0 %v389_v15  ;;  %3860 = vmatpush.bf16.xpose.msra.mxu2 %v389_v15  ;;  %v671_v2 = vld [vmem:[%s5561_s2 + $0xa4] sm:$0xf]  ;;  %v690_v4 = vld [vmem:[%s5561_s2 + $0xf0] sm:$0xf]  ;;  %v672_v6 = vld [vmem:[%s5561_s2 + $0xa8] sm:$0xf] }
  0x16   :  { %v3787_v7 = vld [vmem:[%s5560_s1 + $0xc8] sm:$0xff]  ;;  %v693_v8 = vld [vmem:[%s5561_s2 + $0xfc] sm:$0xf]  ;;  %v650_v13 = vld [vmem:[%s5561_s2 + $0x50] sm:$0xf] }
  0x17   :  { %768 = vperm.xlu0 %3877, %v638_v19   ;;  %v653_v9 = vld [vmem:[%s5561_s2 + $0x5c] sm:$0xf]  ;;  %v688_v12 = vld [vmem:[%s5561_s2 + $0xe8] sm:$0xf]  ;;  %v670_v14 = vld [vmem:[%s5561_s2 + $0xa0] sm:$0xf] }
  0x18   :  { %777 = vperm.xlu1 %3878, %v639_v24   ;;  %v669_v10 = vld [vmem:[%s5561_s2 + $0x9c] sm:$0xf]  ;;  %v3788_v15 = vld [vmem:[%s5560_s1 + $0xd0] sm:$0xff]  ;;  %v3766_v19 = vld [vmem:[%s5560_s1 + $0x20] sm:$0xff] }
  0x19   :  { %v3765_v11 = vld [vmem:[%s5560_s1 + $0x18] sm:$0xff]  ;;  %v691_v16 = vld [vmem:[%s5561_s2 + $0xf4] sm:$0xf]  ;;  %v686_v20 = vld [vmem:[%s5561_s2 + $0xe0] sm:$0xf] }
  0x1a   :  { %v651_v17 = vld [vmem:[%s5561_s2 + $0x54] sm:$0xf]  ;;  %v668_v22 = vld [vmem:[%s5561_s2 + $0x98] sm:$0xf]  ;;  %v649_v26 = vld [vmem:[%s5561_s2 + $0x4c] sm:$0xf] }
  0x1b   :  { %750 = vperm.xlu2 %3879, %v636_v44   ;;  %v667_v18 = vld [vmem:[%s5561_s2 + $0x94] sm:$0xf]  ;;  %v3789_v23 = vld [vmem:[%s5560_s1 + $0xd8] sm:$0xff]  ;;  %v3767_v28 = vld [vmem:[%s5560_s1 + $0x28] sm:$0xff] }
  0x1c   :  { %v646_v33 = vld [vmem:[%s5561_s2 + $0x40] sm:$0xf]  ;;  %v647_v37 = vld [vmem:[%s5561_s2 + $0x44] sm:$0xf]  ;;  %v3768_v40 = vld [vmem:[%s5560_s1 + $0x30] sm:$0xff] }
  0x1d   :  { %400 = vmatpush.bf16.xpose.msra.mxu0 %v386_v21  ;;  %3861 = vmatpush.bf16.xpose.msra.mxu2 %v386_v21  ;;  %v648_v21 = vld [vmem:[%s5561_s2 + $0x48] sm:$0xf]  ;;  %v3790_v35 = vld [vmem:[%s5560_s1 + $0xe0] sm:$0xff]  ;;  %v682_v44 = vld [vmem:[%s5561_s2 + $0xd0] sm:$0xf] }
  0x1e   :  { %v687_v42 = vld [vmem:[%s5561_s2 + $0xe4] sm:$0xf]  ;;  %v680_v47 = vld [vmem:[%s5561_s2 + $0xc8] sm:$0xf] }
  0x1f   :  { %759 = vperm.xlu0 %3877, %v637_v25   ;;  %v689_v25 = vld [vmem:[%s5561_s2 + $0xec] sm:$0xf] }
  0x20   :  { %732 = vperm.xlu1 %3878, %v634_v31  }
  0x23   :  { %741 = vperm.xlu2 %3879, %v635_v49   ;;  %v3791_v49 = vld [vmem:[%s5560_s1 + $0xe8] sm:$0xff] }
  0x25   :  { %401 = vmatpush.bf16.xpose.msra.mxu0 %v383_v27  ;;  %3862 = vmatpush.bf16.xpose.msra.mxu2 %v383_v27  ;;  %v665_v27 = vld [vmem:[%s5561_s2 + $0x8c] sm:$0xf] }
  0x27   :  { %714 = vperm.xlu0 %3877, %v632_v32   ;;  %v684_v32 = vld [vmem:[%s5561_s2 + $0xd8] sm:$0xf] }
  0x28   :  { %723 = vperm.xlu1 %3878, %v633_v38  }
  0x2b   :  { %696 = vperm.xlu2 %3879, %v630_v54  }
  0x2d   :  { %402 = vmatpush.bf16.xpose.msra.mxu0 %v380_v34  ;;  %3863 = vmatpush.bf16.xpose.msra.mxu2 %v380_v34  ;;  %v666_v34 = vld [vmem:[%s5561_s2 + $0x90] sm:$0xf] }
  0x2f   :  { %705 = vperm.xlu0 %3877, %v631_v39  }
  0x30   :  { %966 = vperm.xlu1 %3878, %v660_v45  }
  0x33   :  { %975 = vperm.xlu2 %3879, %v661_v56   ;;  %v685_v56 = vld [vmem:[%s5561_s2 + $0xdc] sm:$0xf] }
  0x35   :  { %403 = vmatpush.bf16.xpose.msra.mxu0 %v377_v41  ;;  %3864 = vmatpush.bf16.xpose.msra.mxu2 %v377_v41  ;;  %v663_v41 = vld [vmem:[%s5561_s2 + $0x84] sm:$0xf] }
  0x37   :  { %1110 = vperm.xlu0 %3877, %v676_v46  }
  0x38   :  { %1119 = vperm.xlu1 %3878, %v677_v50   ;;  %v681_v50 = vld [vmem:[%s5561_s2 + $0xcc] sm:$0xf] }
  0x3b   :  { %948 = vperm.xlu2 %3879, %v658_v62   ;;  %v2662_v62 = vld [vmem:[%s5563_s4 + $0x30] sm:$0xf] }
  0x3d   :  { %404 = vmatpush.bf16.xpose.msra.mxu0 %v374_v48  ;;  %3865 = vmatpush.bf16.xpose.msra.mxu2 %v374_v48  ;;  %v664_v48 = vld [vmem:[%s5561_s2 + $0x88] sm:$0xf] }
  0x3f   :  { %957 = vperm.xlu0 %3877, %v659_v51  }
  0x40   :  { %1092 = vperm.xlu1 %3878, %v674_v53  }
  0x43   :  { %1101 = vperm.xlu2 %3879, %v675_v0   ;;  %v3792_v0 = vld [vmem:[%s5560_s1 + $0xf0] sm:$0xff] }
  0x44   :  { %3473 = vmatmul.msk.bf16.vlgmr.msra.gmra.mxu0 %vm276_vm0, %v3762_v52  ;;  %3497 = vmatmul.msk.bf16.vlgmr.msra.gmra.mxu2 %vm276_vm0, %v3786_v63  ;;  %v3769_v52 = vld [vmem:[%s5560_s1 + $0x38] sm:$0xff]  ;;  %v662_v63 = vld [vmem:[%s5561_s2 + $0x80] sm:$0xf] }
  0x47   :  { %930 = vperm.xlu0 %3877, %v656_v55   ;;  %v679_v55 = vld [vmem:[%s5561_s2 + $0xc4] sm:$0xf] }
  0x48   :  { %939 = vperm.xlu1 %3878, %v657_v57   ;;  %v3911_v57 = vmov 839922192  }
  0x4b   :  { %1074 = vperm.xlu2 %3879, %v672_v6  }
  0x4f   :  { %1083 = vperm.xlu0 %3877, %v673_v58   ;;  %v700_v58 = vunpack.c.l.s4 %v3911_v57  ;;  %v2654_v57 = vld [vmem:[%s5563_s4 + $0x10] sm:$0xf] }
  0x50   :  { %1254 = vperm.xlu1 %3878, %v692_v60  }
  0x53   :  { %1263 = vperm.xlu2 %3879, %v693_v8  }
  0x54   :  { %3474 = vmatmul.msk.bf16.gmra.mxu0 %vm276_vm0, %v3763_v59  ;;  %3498 = vmatmul.msk.bf16.gmra.mxu2 %vm276_vm0, %v3787_v7  ;;  %v2664_v59 = vld [vmem:[%s5563_s4 + $0x38] sm:$0xf] }
  0x57   :  { %912 = vperm.xlu0 %3877, %v654_v61   ;;  %v4277_v61 = vunpack.c.0.s8 %v700_v58 }
  0x58   :  { %921 = vperm.xlu1 %3878, %v655_v1  }
  0x5b   :  { %1056 = vperm.xlu2 %3879, %v670_v14  }
  0x5f   :  { %1065 = vperm.xlu0 %3877, %v671_v2  }
  0x60   :  { %1236 = vperm.xlu1 %3878, %v690_v4   ;;  %v2663_v4 = vld [vmem:[%s5563_s4 + $0x34] sm:$0xf] }
  0x63   :  { %1245 = vperm.xlu2 %3879, %v691_v16   ;;  %v2658_v16 = vld [vmem:[%s5563_s4 + $0x20] sm:$0xf] }
  0x64   :  { %3475 = vmatmul.msk.bf16.gmra.mxu0 %vm276_vm0, %v3764_v3  ;;  %3499 = vmatmul.msk.bf16.gmra.mxu2 %vm276_vm0, %v3788_v15 }
  0x65   :  { %v4199_v30 = vpop.permute.xlu2 %786 }
  0x67   :  { %894 = vperm.xlu0 %3877, %v652_v5   ;;  %v3770_v5 = vld [vmem:[%s5560_s1 + $0x40] sm:$0xff] }
  0x68   :  { %903 = vperm.xlu1 %3878, %v653_v9   ;;  %v2661_v9 = vld [vmem:[%s5563_s4 + $0x2c] sm:$0xf] }
  0x6b   :  { %1038 = vperm.xlu2 %3879, %v668_v22   ;;  %v678_v22 = vld [vmem:[%s5561_s2 + $0xc0] sm:$0xf] }
  0x6d   :  { %v4222_v38 = vpop.permute.xlu2 %795 }
  0x6f   :  { %1047 = vperm.xlu0 %3877, %v669_v10   ;;  %v683_v10 = vld [vmem:[%s5561_s2 + $0xd4] sm:$0xf] }
  0x70   :  { %1218 = vperm.xlu1 %3878, %v688_v12  }
  0x73   :  { %1227 = vperm.xlu2 %3879, %v689_v25  }
  0x74   :  { %3476 = vmatmul.msk.bf16.gmra.mxu0 %vm276_vm0, %v3765_v11  ;;  %3500 = vmatmul.msk.bf16.gmra.mxu2 %vm276_vm0, %v3789_v23  ;;  %v3793_v23 = vld [vmem:[%s5560_s1 + $0xf8] sm:$0xff] }
  0x75   :  { %v4241_v45 = vpop.permute.xlu2 %750 }
  0x77   :  { %876 = vperm.xlu0 %3877, %v650_v13  }
  0x78   :  { %885 = vperm.xlu1 %3878, %v651_v17  }
  0x79   :  { %v4183_v24 = vpop.permute.xlu0 %822 }
  0x7a   :  { %v4197_v29 = vpop.permute.xlu1 %804 }
  0x7b   :  { %1020 = vperm.xlu2 %3879, %v666_v34  }
  0x7d   :  { %v4263_v53 = vpop.permute.xlu2 %741 }
  0x7f   :  { %1029 = vperm.xlu0 %3877, %v667_v18  }
  0x80   :  { %1200 = vperm.xlu1 %3878, %v686_v20  }
  0x81   :  { %v4201_v31 = vpop.permute.xlu0 %831 }
  0x82   :  { %v4217_v36 = vpop.permute.xlu1 %813 }
  0x83   :  { %1209 = vperm.xlu2 %3879, %v687_v42  }
  0x84   :  { %3477 = vmatmul.msk.bf16.gmra.mxu0 %vm276_vm0, %v3766_v19  ;;  %3501 = vmatmul.msk.bf16.gmra.mxu2 %vm276_vm0, %v3790_v35 }
  0x85   :  { %v697_v1 = vpop.permute.xlu2 %696 }
  0x86   :  { %v702_v3 = vperm.slane %v697_v1, %v4277_v61 }
  0x87   :  { %858 = vperm.xlu0 %3877, %v648_v21   ;;  %v2656_v21 = vld [vmem:[%s5563_s4 + $0x18] sm:$0xf] }
  0x88   :  { %867 = vperm.xlu1 %3878, %v649_v26   ;;  %v1334_v7 = vunpack.c.l.bf16 %v702_v3 }
  0x89   :  { %v4224_v39 = vpop.permute.xlu0 %768 }
  0x8a   :  { %v4236_v43 = vpop.permute.xlu1 %777 }
  0x8b   :  { %1002 = vperm.xlu2 %3879, %v664_v48   ;;  %v2665_v48 = vld [vmem:[%s5563_s4 + $0x3c] sm:$0xf] }
  0x8f   :  { %1011 = vperm.xlu0 %3877, %v665_v27  }
  0x90   :  { %1182 = vperm.xlu1 %3878, %v684_v32  }
  0x91   :  { %v4243_v46 = vpop.permute.xlu0 %759 }
  0x92   :  { %v4258_v51 = vpop.permute.xlu1 %732 }
  0x93   :  { %1191 = vperm.xlu2 %3879, %v685_v56  }
  0x94   :  { %3478 = vmatmul.msk.bf16.gmra.mxu0 %vm276_vm0, %v3767_v28  ;;  %3502 = vmatmul.msk.bf16.gmra.mxu2 %vm276_vm0, %v3791_v49 }
  0x97   :  { %840 = vperm.xlu0 %3877, %v646_v33   ;;  %v2657_v33 = vld [vmem:[%s5563_s4 + $0x1c] sm:$0xf] }
  0x98   :  { %849 = vperm.xlu1 %3878, %v647_v37   ;;  %v3771_v37 = vld [vmem:[%s5560_s1 + $0x48] sm:$0xff] }
  0x99   :  { %v715_v54 = vpop.permute.xlu0 %714 }
  0x9a   :  { %v4275_v60 = vpop.permute.xlu1 %723  ;;  %v720_v27 = vperm.slane %v715_v54, %v4277_v61 }
  0x9b   :  { %984 = vperm.xlu2 %3879, %v662_v63  }
  0x9f   :  { %993 = vperm.xlu0 %3877, %v663_v41   ;;  %v1336_v41 = vunpack.c.l.bf16 %v720_v27 }
  0xa0   :  { %1164 = vperm.xlu1 %3878, %v682_v44  }
  0xa1   :  { %v706_v2 = vpop.permute.xlu0 %705 }
  0xa2   :  { %v4302_v11 = vpop.permute.xlu1 %966  ;;  %v711_v15 = vperm.slane %v706_v2, %v4277_v61 }
  0xa3   :  { %1173 = vperm.xlu2 %3879, %v683_v10  }
  0xa4   :  { %3479 = vmatmul.msk.bf16.gmra.mxu0 %vm276_vm0, %v3768_v40  ;;  %3503 = vmatmul.msk.bf16.gmra.mxu2 %vm276_vm0, %v3792_v0  ;;  %v1335_v19 = vunpack.c.l.bf16 %v711_v15 }
  0xa7   :  { %1146 = vperm.xlu0 %3877, %v680_v47   ;;  %v2681_v47 = vld [vmem:[%s5563_s4 + $0x7c] sm:$0xf] }
  0xa8   :  { %1155 = vperm.xlu1 %3878, %v681_v50   ;;  %v4338_v50 = vpop.permute.xlu2 %975 }
  0xa9   :  { %v4305_v13 = vpop.permute.xlu0 %1110 }
  0xaa   :  { %5567 = vst [vmem:[#allocation6_spill] sm:$0xff] %v4305_v13  ;;  %v4321_v26 = vpop.permute.xlu1 %1119 }
  0xab   :  { %1128 = vperm.xlu2 %3879, %v678_v22   ;;  %5568 = vst [vmem:[#allocation7_spill] sm:$0xff] %v4321_v26  ;;  %v2659_v22 = vld [vmem:[%s5563_s4 + $0x24] sm:$0xf] }
  0xaf   :  { %1137 = vperm.xlu0 %3877, %v679_v55   ;;  %v729_v55 = vperm.slane %v4275_v60, %v4277_v61  ;;  %v2678_v60 = vld [vmem:[%s5563_s4 + $0x70] sm:$0xf] }
  0xb0   :  { %2810 = vperm.xlu1 %3878, %v2664_v59  }
  0xb1   :  { %v4327_v34 = vpop.permute.xlu0 %957  ;;  %v1337_v2 = vunpack.c.l.bf16 %v729_v55 }
  0xb3   :  { %2819 = vperm.xlu2 %3879, %v2665_v48  }
  0xb4   :  { %3480 = vmatmul.msk.bf16.gmra.mxu0 %vm276_vm0, %v3769_v52  ;;  %3504 = vmatmul.msk.bf16.gmra.mxu2 %vm276_vm0, %v3793_v23 }
  0xb7   :  { %2792 = vperm.xlu0 %3877, %v2662_v62   ;;  %v4346_v62 = vpop.permute.xlu1 %1092 }
  0xb8   :  { %2801 = vperm.xlu1 %3878, %v2663_v4   ;;  %5569 = vst [vmem:[#allocation8_spill] sm:$0xff] %v4346_v62 }
  0xb9   :  { %v4350_v1 = vpop.permute.xlu0 %930 }
  0xbf   :  { %2783 = vperm.xlu0 %3877, %v2661_v9  }
  0xc0   :  { %2756 = vperm.xlu1 %3878, %v2658_v16   ;;  %v3772_v16 = vld [vmem:[%s5560_s1 + $0x50] sm:$0xff] }
  0xc1   :  { %v406_v6 = vpop.f32.mrf.mxu0 }
  0xc2   :  { %v566_v8 = vpack.c.bf16 %v406_v6, %v406_v6 }
  0xc4   :  { %v1270_v12 = vunpack.c.l.bf16 %v566_v8  ;;  %3481 = vmatmul.msk.bf16.gmra.mxu0 %vm276_vm0, %v3770_v5  ;;  %v2660_v5 = vld [vmem:[%s5563_s4 + $0x28] sm:$0xf]  ;;  %v738_v8 = vperm.slane %v4258_v51, %v4277_v61 }
  0xc5   :  { %2774 = vperm.xlu2 %3879, %v2660_v5  }
  0xc6   :  { %v1398_v14 = vadd.f32 %v1334_v7, %v1270_v12  ;;  %v4358_v7 = vpop.permute.xlu2 %948  ;;  %v2679_v12 = vld [vmem:[%s5563_s4 + $0x74] sm:$0xf] }
  0xc7   :  { %2738 = vperm.xlu0 %3877, %v2656_v21   ;;  %v2653_v21 = vld [vmem:[%s5563_s4 + $0xc] sm:$0xf] }
  0xc8   :  { %v1462_v18 = vpack.c.bf16 %v1398_v14, %v1398_v14  ;;  %2747 = vperm.xlu1 %3878, %v2657_v33   ;;  %v4365_v14 = vpop.f32.mrf.mxu2 }
  0xc9   :  { %v408_v17 = vpop.f32.mrf.mxu0 }
  0xca   :  { %v567_v20 = vpack.c.bf16 %v408_v17, %v408_v17  ;;  %v1526_v28 = vunpack.c.l.bf16 %v1462_v18  ;;  %v4370_v17 = vpop.permute.xlu1 %939 }
  0xcc   :  { %v1271_v25 = vunpack.c.l.bf16 %v567_v20  ;;  %v1590_v49 = vmul.f32 0.20019531, %v1526_v28 }
  0xcd   :  { %2765 = vperm.xlu2 %3879, %v2659_v22  }
  0xce   :  { %v1399_v32 = vadd.f32 %v1335_v19, %v1271_v25  ;;  %v1782_v58 = vmax.f32 %v1526_v28, %v1590_v49  ;;  %v1338_v19 = vunpack.c.l.bf16 %v738_v8  ;;  %v4378_v25 = vpop.permute.xlu0 %1083 }
  0xcf   :  { %2963 = vperm.xlu0 %3877, %v2681_v47   ;;  %5570 = vst [vmem:[#allocation9_spill] sm:$0xff] %v4378_v25 }
  0xd0   :  { %v1463_v35 = vpack.c.bf16 %v1399_v32, %v1399_v32  ;;  %2720 = vperm.xlu1 %3878, %v2654_v57   ;;  %v747_v32 = vperm.slane %v4263_v53, %v4277_v61  ;;  %v2650_v53 = vld [vmem:[%s5563_s4] sm:$0xf] }
  0xd1   :  { %v411_v40 = vpop.f32.mrf.mxu0 }
  0xd2   :  { %v1527_v42 = vunpack.c.l.bf16 %v1463_v35  ;;  %v568_v44 = vpack.c.bf16 %v411_v40, %v411_v40  ;;  %v2676_v35 = vld [vmem:[%s5563_s4 + $0x68] sm:$0xf]  ;;  %v1339_v48 = vunpack.c.l.bf16 %v747_v32  ;;  %v4398_v55 = vpop.permute.xlu1 %1254 }
  0xd4   :  { %v1272_v52 = vunpack.c.l.bf16 %v568_v44  ;;  %3482 = vmatmul.msk.bf16.gmra.mxu0 %vm276_vm0, %v3771_v37  ;;  %v1591_v54 = vmul.f32 0.20019531, %v1527_v42 }
  0xd6   :  { %v1400_v56 = vadd.f32 %v1336_v41, %v1272_v52  ;;  %v1783_v59 = vmax.f32 %v1527_v42, %v1591_v54  ;;  %v4386_v41 = vpop.permute.xlu2 %1101  ;;  %v4388_v42 = vpop.f32.mrf.mxu2  ;;  %v2680_v54 = vld [vmem:[%s5563_s4 + $0x78] sm:$0xf] }
  0xd7   :  { %2936 = vperm.xlu0 %3877, %v2678_v60   ;;  %5571 = vst [vmem:[#allocation10_spill] sm:$0xff] %v4386_v41  ;;  %2954 = vperm.xlu2 %3879, %v2680_v54   ;;  %v4400_v57 = vpop.permute.xlu0 %912  ;;  %v3773_v60 = vld [vmem:[%s5560_s1 + $0x58] sm:$0xff] }
  0xd8   :  { %v4348_v63 = vpack.c.bf16 %v1783_v59, %v1782_v58  ;;  %v1464_v3 = vpack.c.bf16 %v1400_v56, %v1400_v56  ;;  %2945 = vperm.xlu1 %3878, %v2679_v12   ;;  %v756_v58 = vperm.slane %v4241_v45, %v4277_v61  ;;  %v2655_v12 = vld [vmem:[%s5563_s4 + $0x14] sm:$0xf] }
  0xd9   :  { %v413_v0 = vpop.f32.mrf.mxu0 }
  0xda   :  { %v569_v4 = vpack.c.bf16 %v413_v0, %v413_v0  ;;  %v1528_v9 = vunpack.c.l.bf16 %v1464_v3  ;;  %v1340_v8 = vunpack.c.l.bf16 %v756_v58 }
  0xdc   :  { %v1273_v6 = vunpack.c.l.bf16 %v569_v4  ;;  %v1592_v23 = vmul.f32 0.20019531, %v1528_v9 }
  0xde   :  { %v1401_v10 = vadd.f32 %v1337_v2, %v1273_v6  ;;  %v1784_v37 = vmax.f32 %v1528_v9, %v1592_v23  ;;  %v2651_v2 = vld [vmem:[%s5563_s4 + $0x4] sm:$0xf]  ;;  %v4407_v3 = vpop.f32.mrf.mxu2  ;;  %v4412_v5 = vpop.permute.xlu2 %1074 }
  0xdf   :  { %2711 = vperm.xlu0 %3877, %v2653_v21   ;;  %5572 = vst [vmem:[#allocation11_spill] sm:$0xff] %v4412_v5  ;;  %2729 = vperm.xlu2 %3879, %v2655_v12   ;;  %v2672_v21 = vld [vmem:[%s5563_s4 + $0x58] sm:$0xf] }
  0xe0   :  { %v1465_v15 = vpack.c.bf16 %v1401_v10, %v1401_v10  ;;  %2918 = vperm.xlu1 %3878, %v2676_v35   ;;  %v2675_v10 = vld [vmem:[%s5563_s4 + $0x64] sm:$0xf] }
  0xe1   :  { %v416_v18 = vpop.f32.mrf.mxu0 }
  0xe2   :  { %v1529_v20 = vunpack.c.l.bf16 %v1465_v15  ;;  %v570_v51 = vpack.c.bf16 %v416_v18, %v416_v18 }
  0xe4   :  { %v1274_v27 = vunpack.c.l.bf16 %v570_v51  ;;  %3483 = vmatmul.msk.bf16.gmra.mxu0 %vm276_vm0, %v3772_v16  ;;  %v1593_v28 = vmul.f32 0.20019531, %v1529_v20 }
  0xe6   :  { %v1402_v33 = vadd.f32 %v1338_v19, %v1274_v27  ;;  %v1785_v40 = vmax.f32 %v1529_v20, %v1593_v28  ;;  %v4421_v19 = vpop.permute.xlu1 %921  ;;  %v765_v20 = vperm.slane %v4243_v46, %v4277_v61  ;;  %v4428_v27 = vpop.permute.xlu0 %1065  ;;  %v2670_v46 = vld [vmem:[%s5563_s4 + $0x50] sm:$0xf] }
  0xe7   :  { %2684 = vperm.xlu0 %3877, %v2650_v53   ;;  %5573 = vst [vmem:[#allocation12_spill] sm:$0xff] %v4428_v27  ;;  %v4430_v28 = vpop.f32.mrf.mxu2 }
  0xe8   :  { %v4390_v44 = vpack.c.bf16 %v1785_v40, %v1784_v37  ;;  %v1466_v49 = vpack.c.bf16 %v1402_v33, %v1402_v33  ;;  %2693 = vperm.xlu1 %3878, %v2651_v2   ;;  %v1341_v35 = vunpack.c.l.bf16 %v765_v20  ;;  %v3774_v2 = vld [vmem:[%s5560_s1 + $0x60] sm:$0xff] }
  0xe9   :  { %v418_v47 = vpop.f32.mrf.mxu0 }
  0xea   :  { %v571_v52 = vpack.c.bf16 %v418_v47, %v418_v47  ;;  %v1530_v59 = vunpack.c.l.bf16 %v1466_v49  ;;  %v2652_v47 = vld [vmem:[%s5563_s4 + $0x8] sm:$0xf] }
  0xeb   :  { %2702 = vperm.xlu2 %3879, %v2652_v47  }
  0xec   :  { %v1275_v56 = vunpack.c.l.bf16 %v571_v52  ;;  %v1594_v15 = vmul.f32 0.20019531, %v1530_v59  ;;  %v774_v52 = vperm.slane %v4224_v39, %v4277_v61 }
  0xee   :  { %v1403_v0 = vadd.f32 %v1339_v48, %v1275_v56  ;;  %v1786_v22 = vmax.f32 %v1530_v59, %v1594_v15  ;;  %v4440_v48 = vpop.permute.xlu2 %1263  ;;  %v2671_v56 = vld [vmem:[%s5563_s4 + $0x54] sm:$0xf]  ;;  %v4447_v58 = vpop.permute.xlu1 %1236  ;;  %v1342_v39 = vunpack.c.l.bf16 %v774_v52 }
  0xef   :  { %2909 = vperm.xlu0 %3877, %v2675_v10   ;;  %v4449_v59 = vpop.f32.mrf.mxu2 }
  0xf0   :  { %v1467_v4 = vpack.c.bf16 %v1403_v0, %v1403_v0  ;;  %2882 = vperm.xlu1 %3878, %v2672_v21  }
  0xf1   :  { %v421_v6 = vpop.f32.mrf.mxu0 }
  0xf2   :  { %v1531_v9 = vunpack.c.l.bf16 %v1467_v4  ;;  %v572_v45 = vpack.c.bf16 %v421_v6, %v421_v6  ;;  %v4454_v4 = vpop.permute.xlu0 %894 }
  0xf4   :  { %v1276_v16 = vunpack.c.l.bf16 %v572_v45  ;;  %3484 = vmatmul.msk.bf16.gmra.mxu0 %vm276_vm0, %v3773_v60  ;;  %v1595_v18 = vmul.f32 0.20019531, %v1531_v9  ;;  %v2677_v45 = vld [vmem:[%s5563_s4 + $0x6c] sm:$0xf] }
  0xf5   :  { %2927 = vperm.xlu2 %3879, %v2677_v45  }
  0xf6   :  { %v1404_v51 = vadd.f32 %v1340_v8, %v1276_v16  ;;  %v1787_v23 = vmax.f32 %v1531_v9, %v1595_v18  ;;  %v2669_v9 = vld [vmem:[%s5563_s4 + $0x4c] sm:$0xf]  ;;  %v4463_v16 = vpop.permute.xlu2 %1056  ;;  %v783_v18 = vperm.slane %v4236_v43, %v4277_v61  ;;  %v2674_v43 = vld [vmem:[%s5563_s4 + $0x60] sm:$0xf] }
  0xf7   :  { %2864 = vperm.xlu0 %3877, %v2670_v46   ;;  %5574 = vst [vmem:[#allocation13_spill] sm:$0xff] %v4463_v16 }
  0xf8   :  { %v4432_v32 = vpack.c.bf16 %v1787_v23, %v1786_v22  ;;  %v1468_v37 = vpack.c.bf16 %v1404_v51, %v1404_v51  ;;  %2873 = vperm.xlu1 %3878, %v2671_v56   ;;  %v2666_v51 = vld [vmem:[%s5563_s4 + $0x40] sm:$0xf]  ;;  %v4470_v23 = vpop.f32.mrf.mxu2 }
  0xf9   :  { %v423_v33 = vpop.f32.mrf.mxu0 }
  0xfa   :  { %v573_v40 = vpack.c.bf16 %v423_v33, %v423_v33  ;;  %v1532_v53 = vunpack.c.l.bf16 %v1468_v37 }
  0xfc   :  { %v1277_v49 = vunpack.c.l.bf16 %v573_v40  ;;  %v1596_v10 = vmul.f32 0.20019531, %v1532_v53  ;;  %v1343_v40 = vunpack.c.l.bf16 %v783_v18 }
  0xfd   :  { %2900 = vperm.xlu2 %3879, %v2674_v43  }
  0xfe   :  { %v1405_v54 = vadd.f32 %v1341_v35, %v1277_v49  ;;  %v1788_v21 = vmax.f32 %v1532_v53, %v1596_v10  ;;  %v4474_v35 = vpop.permute.xlu1 %903  ;;  %v4479_v49 = vpop.permute.xlu0 %1047  ;;  %v792_v53 = vperm.slane %v4199_v30, %v4277_v61  ;;  %v2673_v10 = vld [vmem:[%s5563_s4 + $0x5c] sm:$0xf] }
  0xff   :  { %2855 = vperm.xlu0 %3877, %v2669_v9   ;;  %5575 = vst [vmem:[#allocation14_spill] sm:$0xff] %v4479_v49 }
 0x100   :  { %v1469_v0 = vpack.c.bf16 %v1405_v54, %v1405_v54  ;;  %2828 = vperm.xlu1 %3878, %v2666_v51   ;;  %v801_v51 = vperm.slane %v4222_v38, %v4277_v61 }
 0x101   :  { %v426_v60 = vpop.f32.mrf.mxu0 }
 0x102   :  { %v1533_v6 = vunpack.c.l.bf16 %v1469_v0  ;;  %v574_v8 = vpack.c.bf16 %v426_v60, %v426_v60  ;;  %v4483_v0 = vpop.permute.xlu2 %1245 }
 0x104   :  { %v1278_v12 = vunpack.c.l.bf16 %v574_v8  ;;  %3485 = vmatmul.msk.bf16.gmra.mxu0 %vm276_vm0, %v3774_v2  ;;  %v1597_v15 = vmul.f32 0.20019531, %v1533_v6  ;;  %v4485_v2 = vpop.f32.mrf.mxu2  ;;  %v1344_v8 = vunpack.c.l.bf16 %v792_v53 }
 0x105   :  { %2891 = vperm.xlu2 %3879, %v2673_v10  }
 0x106   :  { %v1406_v20 = vadd.f32 %v1342_v39, %v1278_v12  ;;  %v1789_v22 = vmax.f32 %v1533_v6, %v1597_v15  ;;  %v3775_v39 = vld [vmem:[%s5560_s1 + $0x68] sm:$0xff]  ;;  %v4493_v12 = vpop.permute.xlu1 %1218 }
 0x108   :  { %v4472_v33 = vpack.c.bf16 %v1789_v22, %v1788_v21  ;;  %v1470_v46 = vpack.c.bf16 %v1406_v20, %v1406_v20  ;;  %v4496_v20 = vpop.permute.xlu0 %876 }
 0x109   :  { %v428_v37 = vpop.f32.mrf.mxu0 }
 0x10a   :  { %v575_v47 = vpack.c.bf16 %v428_v37, %v428_v37  ;;  %v1534_v54 = vunpack.c.l.bf16 %v1470_v46 }
 0x10c   :  { %v1279_v52 = vunpack.c.l.bf16 %v575_v47  ;;  %v1598_v30 = vmul.f32 0.20019531, %v1534_v54  ;;  %v4504_v47 = vpop.permute.xlu2 %1038 }
 0x10d   :  { %5576 = vst [vmem:[#allocation15_spill] sm:$0xff] %v4504_v47 }
 0x10e   :  { %v1407_v56 = vadd.f32 %v1343_v40, %v1279_v52  ;;  %v1790_v22 = vmax.f32 %v1534_v54, %v1598_v30  ;;  %v4500_v40 = vpop.f32.mrf.mxu2  ;;  %v1345_v52 = vunpack.c.l.bf16 %v801_v51  ;;  %v4509_v38 = vpop.permute.xlu1 %885  ;;  %v810_v54 = vperm.slane %v4197_v29, %v4277_v61  ;;  %v3776_v30 = vld [vmem:[%s5560_s1 + $0x70] sm:$0xff] }
 0x110   :  { %v1471_v60 = vpack.c.bf16 %v1407_v56, %v1407_v56 }
 0x111   :  { %v431_v6 = vpop.f32.mrf.mxu0 }
 0x112   :  { %v1535_v9 = vunpack.c.l.bf16 %v1471_v60  ;;  %v576_v45 = vpack.c.bf16 %v431_v6, %v431_v6  ;;  %v2668_v60 = vld [vmem:[%s5563_s4 + $0x48] sm:$0xf] }
 0x113   :  { %2846 = vperm.xlu2 %3879, %v2668_v60  }
 0x114   :  { %v1280_v15 = vunpack.c.l.bf16 %v576_v45  ;;  %3486 = vmatmul.msk.bf16.gmra.mxu0 %vm276_vm0, %v3775_v39  ;;  %v1599_v18 = vmul.f32 0.20019531, %v1535_v9 }
 0x116   :  { %v1408_v21 = vadd.f32 %v1344_v8, %v1280_v15  ;;  %v1791_v37 = vmax.f32 %v1535_v9, %v1599_v18  ;;  %v4513_v9 = vpop.permute.xlu0 %1029  ;;  %v4515_v45 = vpop.f32.mrf.mxu2  ;;  %v1346_v18 = vunpack.c.l.bf16 %v810_v54 }
 0x117   :  { %5577 = vst [vmem:[#allocation16_spill] sm:$0xff] %v4513_v9  ;;  %v4528_v54 = vpop.permute.xlu1 %1200 }
 0x118   :  { %v4502_v46 = vpack.c.bf16 %v1791_v37, %v1790_v22  ;;  %v1472_v53 = vpack.c.bf16 %v1408_v21, %v1408_v21  ;;  %v2667_v22 = vld [vmem:[%s5563_s4 + $0x44] sm:$0xf]  ;;  %v4523_v37 = vpop.permute.xlu2 %1227 }
 0x119   :  { %v433_v43 = vpop.f32.mrf.mxu0 }
 0x11a   :  { %v577_v56 = vpack.c.bf16 %v433_v43, %v433_v43  ;;  %v1536_v6 = vunpack.c.l.bf16 %v1472_v53  ;;  %v819_v53 = vperm.slane %v4217_v36, %v4277_v61  ;;  %v828_v36 = vperm.slane %v4183_v24, %v4277_v61 }
 0x11b   :  { %2837 = vperm.xlu2 %3879, %v2667_v22  }
 0x11c   :  { %v1281_v39 = vunpack.c.l.bf16 %v577_v56  ;;  %v1600_v29 = vmul.f32 0.20019531, %v1536_v6  ;;  %v1347_v22 = vunpack.c.l.bf16 %v819_v53 }
 0x11e   :  { %v1409_v8 = vadd.f32 %v1345_v52, %v1281_v39  ;;  %v1792_v60 = vmax.f32 %v1536_v6, %v1600_v29 }
 0x120   :  { %v1473_v10 = vpack.c.bf16 %v1409_v8, %v1409_v8  ;;  %v4530_v8 = vpop.f32.mrf.mxu2  ;;  %v4536_v41 = vpop.permute.xlu2 %1020 }
 0x121   :  { %v436_v15 = vpop.f32.mrf.mxu0  ;;  %5578 = vst [vmem:[#allocation17_spill] sm:$0xff] %v4536_v41 }
 0x122   :  { %v1537_v51 = vunpack.c.l.bf16 %v1473_v10  ;;  %v578_v21 = vpack.c.bf16 %v436_v15, %v436_v15  ;;  %v4534_v15 = vpop.permute.xlu0 %858 }
 0x124   :  { %v1282_v43 = vunpack.c.l.bf16 %v578_v21  ;;  %3487 = vmatmul.msk.bf16.gmra.mxu0 %vm276_vm0, %v3776_v30  ;;  %v1601_v52 = vmul.f32 0.20019531, %v1537_v51 }
 0x126   :  { %v1410_v56 = vadd.f32 %v1346_v18, %v1282_v43  ;;  %v1793_v39 = vmax.f32 %v1537_v51, %v1601_v52  ;;  %v3777_v43 = vld [vmem:[%s5560_s1 + $0x78] sm:$0xff]  ;;  %v4545_v52 = vpop.permute.xlu1 %867 }
 0x128   :  { %v4532_v10 = vpack.c.bf16 %v1793_v39, %v1792_v60  ;;  %v1474_v21 = vpack.c.bf16 %v1410_v56, %v1410_v56  ;;  %v4540_v51 = vpop.f32.mrf.mxu2  ;;  %v1348_v56 = vunpack.c.l.bf16 %v828_v36  ;;  %v4552_v25 = vpop.permute.xlu2 %1209 }
 0x129   :  { %v438_v26 = vpop.f32.mrf.mxu0 }
 0x12a   :  { %v579_v13 = vpack.c.bf16 %v438_v26, %v438_v26  ;;  %v1538_v6 = vunpack.c.l.bf16 %v1474_v21  ;;  %v4547_v39 = vpop.permute.xlu0 %1011 }
 0x12b   :  { %5579 = vst [vmem:[#allocation18_spill] sm:$0xff] %v4547_v39 }
 0x12c   :  { %v1283_v30 = vunpack.c.l.bf16 %v579_v13  ;;  %v1602_v60 = vmul.f32 0.20019531, %v1538_v6 }
 0x12e   :  { %v1411_v18 = vadd.f32 %v1347_v22, %v1283_v30  ;;  %v837_v22 = vperm.slane %v4201_v31, %v4277_v61  ;;  %v1794_v30 = vmax.f32 %v1538_v6, %v1602_v60 }
 0x130   :  { %v1475_v29 = vpack.c.bf16 %v1411_v18, %v1411_v18  ;;  %v4554_v5 = vpop.f32.mrf.mxu2  ;;  %v4566_v60 = vpop.permute.xlu2 %1002 }
 0x131   :  { %v441_v53 = vpop.f32.mrf.mxu0  ;;  %5580 = vst [vmem:[#allocation19_spill] sm:$0xff] %v4566_v60 }
 0x132   :  { %v1539_v26 = vunpack.c.l.bf16 %v1475_v29  ;;  %v580_v13 = vpack.c.bf16 %v441_v53, %v441_v53  ;;  %v1349_v53 = vunpack.c.l.bf16 %v837_v22  ;;  %v841_v49 = vpop.permute.xlu0 %840 }
 0x133   :  { %v846_v47 = vperm.slane %v841_v49, %v4277_v61 }
 0x134   :  { %v1284_v62 = vunpack.c.l.bf16 %v580_v13  ;;  %3488 = vmatmul.msk.bf16.gmra.mxu0 %vm276_vm0, %v3777_v43  ;;  %v1603_v24 = vmul.f32 0.20019531, %v1539_v26  ;;  %v4558_v13 = vpop.permute.xlu1 %1182 }
 0x135   :  { %v1350_v22 = vunpack.c.l.bf16 %v846_v47  ;;  %v1242_v47 = vperm.slane %v4447_v58, %v4277_v61  ;;  %v882_v58 = vperm.slane %v4496_v20, %v4277_v61 }
 0x136   :  { %v1412_v21 = vadd.f32 %v1348_v56, %v1284_v62  ;;  %v1795_v18 = vmax.f32 %v1539_v26, %v1603_v24  ;;  %v3778_v26 = vld [vmem:[%s5560_s1 + $0x80] sm:$0xff] }
 0x138   :  { %v4556_v36 = vpack.c.bf16 %v1795_v18, %v1794_v30  ;;  %v1476_v27 = vpack.c.bf16 %v1412_v21, %v1412_v21  ;;  %v4561_v6 = vpop.f32.mrf.mxu2  ;;  %v1192_v20 = vpop.permute.xlu2 %1191 }
 0x139   :  { %v443_v29 = vpop.f32.mrf.mxu0 }
 0x13a   :  { %v581_v16 = vpack.c.bf16 %v443_v29, %v443_v29  ;;  %v1540_v31 = vunpack.c.l.bf16 %v1476_v27  ;;  %v1269_v27 = vperm.slane %v4440_v48, %v4277_v61  ;;  %v1251_v48 = vperm.slane %v4483_v0, %v4277_v61 }
 0x13c   :  { %v1285_v43 = vunpack.c.l.bf16 %v581_v16  ;;  %v1604_v18 = vmul.f32 0.20019531, %v1540_v31  ;;  %v1260_v16 = vperm.slane %v4398_v55, %v4277_v61  ;;  %v4580_v55 = vunpack.c.l.bf16 %v1269_v27 }
 0x13e   :  { %v1413_v62 = vadd.f32 %v1349_v53, %v1285_v43  ;;  %v850_v53 = vpop.permute.xlu1 %849  ;;  %v1796_v9 = vmax.f32 %v1540_v31, %v1604_v18  ;;  %v615_v31 = vpack.c.bf16 %v4388_v42, %v4388_v42  ;;  %v1233_v18 = vperm.slane %v4523_v37, %v4277_v61 }
 0x13f   :  { %v855_v43 = vperm.slane %v850_v53, %v4277_v61  ;;  %v616_v42 = vpack.c.bf16 %v4407_v3, %v4407_v3  ;;  %v617_v37 = vpack.c.bf16 %v4430_v28, %v4430_v28  ;;  %v864_v3 = vperm.slane %v4534_v15, %v4277_v61 }
 0x140   :  { %v1477_v56 = vpack.c.bf16 %v1413_v62, %v1413_v62  ;;  %v618_v15 = vpack.c.bf16 %v4449_v59, %v4449_v59 }
 0x141   :  { %v446_v24 = vpop.f32.mrf.mxu0  ;;  %v4622_v28 = vunpack.c.l.bf16 %v616_v42 }
 0x142   :  { %v1541_v21 = vunpack.c.l.bf16 %v1477_v56  ;;  %v582_v30 = vpack.c.bf16 %v446_v24, %v446_v24  ;;  %v4576_v56 = vpop.f32.mrf.mxu2  ;;  %v4578_v24 = vunpack.c.l.bf16 %v1260_v16  ;;  %v1351_v16 = vunpack.c.l.bf16 %v855_v43 }
 0x143   :  { %v4610_v43 = vunpack.c.l.bf16 %v615_v31 }
 0x144   :  { %v1286_v49 = vunpack.c.l.bf16 %v582_v30  ;;  %3489 = vmatmul.msk.bf16.gmra.mxu0 %vm276_vm0, %v3778_v26  ;;  %v1605_v29 = vmul.f32 0.20019531, %v1541_v21  ;;  %v614_v30 = vpack.c.bf16 %v4365_v14, %v4365_v14  ;;  %v4657_v14 = vpop.permute.xlu2 %984 }
 0x146   :  { %v1414_v62 = vadd.f32 %v1350_v22, %v1286_v49  ;;  %v1797_v41 = vmax.f32 %v1541_v21, %v1605_v29  ;;  %v1224_v22 = vperm.slane %v4493_v12, %v4277_v61  ;;  %v891_v12 = vperm.slane %v4509_v38, %v4277_v61 }
 0x147   :  { %v1206_v49 = vperm.slane %v4528_v54, %v4277_v61  ;;  %v4608_v53 = vunpack.c.l.bf16 %v614_v30  ;;  %v4616_v38 = vunpack.c.l.bf16 %v882_v58  ;;  %v1215_v30 = vperm.slane %v4552_v25, %v4277_v61 }
 0x148   :  { %v1853_v26 = vpack.c.bf16 %v1797_v41, %v1796_v9  ;;  %v1478_v27 = vpack.c.bf16 %v1414_v62, %v1414_v62  ;;  %v4594_v41 = vunpack.c.l.bf16 %v1242_v47  ;;  %v4602_v9 = vunpack.c.l.bf16 %v1251_v48 }
 0x149   :  { %v448_v21 = vpop.f32.mrf.mxu0  ;;  %v4612_v62 = vunpack.c.l.bf16 %v1224_v22  ;;  %v4618_v47 = vunpack.c.l.bf16 %v1233_v18  ;;  %v4624_v54 = vunpack.c.l.bf16 %v891_v12  ;;  %v4630_v22 = vunpack.c.l.bf16 %v617_v37 }
 0x14a   :  { %v583_v0 = vpack.c.bf16 %v448_v21, %v448_v21  ;;  %2262 = vmatpush.bf16.msra.mxu1 %v1853_v26  ;;  %3866 = vmatpush.bf16.msra.mxu3 %v1853_v26  ;;  %v1542_v48 = vunpack.c.l.bf16 %v1478_v27  ;;  %v561_v31 = vpop.f32.mrf.mxu2  ;;  %v4632_v58 = vunpack.c.l.bf16 %v1206_v49  ;;  %v1188_v21 = vperm.slane %v4558_v13, %v4277_v61 }
 0x14b   :  { %v873_v25 = vperm.slane %v4545_v52, %v4277_v61  ;;  %v1197_v27 = vperm.slane %v1192_v20, %v4277_v61  ;;  %v627_v13 = vpack.c.bf16 %v4576_v56, %v4576_v56  ;;  %v4648_v49 = vunpack.c.l.bf16 %v1215_v30 }
 0x14c   :  { %v1287_v29 = vunpack.c.l.bf16 %v583_v0  ;;  %v626_v0 = vpack.c.bf16 %v4561_v6, %v4561_v6  ;;  %v1606_v37 = vmul.f32 0.20019531, %v1542_v48  ;;  %v620_v52 = vpack.c.bf16 %v4485_v2, %v4485_v2 }
 0x14d   :  { %v628_v20 = vpack.c.bf16 %v561_v31, %v561_v31  ;;  %v621_v6 = vpack.c.bf16 %v4500_v40, %v4500_v40  ;;  %v1389_v56 = vunpack.c.l.bf16 %v1197_v27  ;;  %v1331_v31 = vunpack.c.l.bf16 %v627_v13 }
 0x14e   :  { %v1415_v26 = vadd.f32 %v1351_v16, %v1287_v29  ;;  %2263 = vmatpush.bf16.msra.mxu1 %v4556_v36  ;;  %3867 = vmatpush.bf16.msra.mxu3 %v4556_v36  ;;  %v3779_v36 = vld [vmem:[%s5560_s1 + $0x88] sm:$0xff]  ;;  %v1352_v16 = vunpack.c.l.bf16 %v864_v3  ;;  %v1322_v29 = vunpack.c.l.bf16 %v618_v15  ;;  %v1388_v3 = vunpack.c.l.bf16 %v1188_v21 }
 0x14f   :  { %v1330_v15 = vunpack.c.l.bf16 %v626_v0  ;;  %v1332_v39 = vunpack.c.l.bf16 %v628_v20  ;;  %v1798_v21 = vmax.f32 %v1542_v48, %v1606_v37  ;;  %v1324_v60 = vunpack.c.l.bf16 %v620_v52 }
 0x150   :  { %v1479_v18 = vpack.c.bf16 %v1415_v26, %v1415_v26  ;;  %v4652_v26 = vpop.permute.xlu0 %993  ;;  %v625_v27 = vpack.c.bf16 %v4554_v5, %v4554_v5  ;;  %v1325_v0 = vunpack.c.l.bf16 %v621_v6  ;;  %v1353_v5 = vunpack.c.l.bf16 %v873_v25 }
 0x151   :  { %v451_v59 = vpop.f32.mrf.mxu0 }
 0x152   :  { %v1543_v42 = vunpack.c.l.bf16 %v1479_v18  ;;  %v584_v12 = vpack.c.bf16 %v451_v59, %v451_v59  ;;  %2264 = vmatpush.bf16.msra.mxu1 %v4532_v10  ;;  %3868 = vmatpush.bf16.msra.mxu3 %v4532_v10  ;;  %v1165_v18 = vpop.permute.xlu1 %1164  ;;  %v1329_v52 = vunpack.c.l.bf16 %v625_v27 }
 0x153   :  { %v1170_v30 = vperm.slane %v1165_v18, %v4277_v61  ;;  %v563_v18 = vpop.f32.mrf.mxu2 }
 0x154   :  { %v1288_v59 = vunpack.c.l.bf16 %v584_v12  ;;  %3490 = vmatmul.msk.bf16.gmra.mxu0 %vm276_vm0, %v3779_v36  ;;  %v1607_v10 = vmul.f32 0.20019531, %v1543_v42  ;;  %v624_v36 = vpack.c.bf16 %v4540_v51, %v4540_v51  ;;  %v1460_v12 = vadd.f32 %v4578_v24, %v1332_v39 }
 0x155   :  { %v629_v20 = vpack.c.bf16 %v563_v18, %v563_v18  ;;  %v1386_v48 = vunpack.c.l.bf16 %v1170_v30  ;;  %v623_v51 = vpack.c.bf16 %v4530_v8, %v4530_v8  ;;  %v1459_v39 = vadd.f32 %v4602_v9, %v1331_v31 }
 0x156   :  { %v1416_v2 = vadd.f32 %v1352_v16, %v1288_v59  ;;  %2265 = vmatpush.bf16.msra.mxu1 %v4502_v46  ;;  %3869 = vmatpush.bf16.msra.mxu3 %v4502_v46  ;;  %v1799_v40 = vmax.f32 %v1543_v42, %v1607_v10  ;;  %v622_v16 = vpack.c.bf16 %v4515_v45, %v4515_v45  ;;  %v1328_v24 = vunpack.c.l.bf16 %v624_v36 }
 0x157   :  { %v619_v46 = vpack.c.bf16 %v4470_v23, %v4470_v23  ;;  %v1458_v45 = vadd.f32 %v4594_v41, %v1330_v15  ;;  %v1524_v6 = vpack.c.bf16 %v1460_v12, %v1460_v12  ;;  %v1333_v23 = vunpack.c.l.bf16 %v629_v20 }
 0x158   :  { %v4669_v59 = vpack.c.bf16 %v1799_v40, %v1798_v21  ;;  %v1480_v42 = vpack.c.bf16 %v1416_v2, %v1416_v2  ;;  %v4679_v10 = vadd.f32 %v1388_v3, %v1324_v60  ;;  %v4681_v30 = vadd.f32 %v1389_v56, %v1325_v0  ;;  %v1147_v41 = vpop.permute.xlu0 %1146  ;;  %v1174_v3 = vpop.permute.xlu2 %1173 }
 0x159   :  { %v453_v13 = vpop.f32.mrf.mxu0  ;;  %v1326_v8 = vunpack.c.l.bf16 %v622_v16  ;;  %v4683_v25 = vadd.f32 %v1386_v48, %v1322_v29  ;;  %v1327_v21 = vunpack.c.l.bf16 %v623_v51  ;;  %v1323_v18 = vunpack.c.l.bf16 %v619_v46 }
 0x15a   :  { %v585_v37 = vpack.c.bf16 %v453_v13, %v453_v13  ;;  %2266 = vmatpush.bf16.msra.mxu1 %v4472_v33  ;;  %3870 = vmatpush.bf16.msra.mxu3 %v4472_v33  ;;  %v1544_v40 = vunpack.c.l.bf16 %v1480_v42  ;;  %v1461_v33 = vadd.f32 %v4580_v55, %v1333_v23  ;;  %v1522_v9 = vpack.c.bf16 %v1458_v45, %v1458_v45  ;;  %v1156_v0 = vpop.permute.xlu1 %1155 }
 0x15b   :  { %v1523_v60 = vpack.c.bf16 %v1459_v39, %v1459_v39  ;;  %v1456_v56 = vadd.f32 %v4612_v62, %v1328_v24  ;;  %v1457_v31 = vadd.f32 %v4618_v47, %v1329_v52  ;;  %v1588_v29 = vunpack.c.l.bf16 %v1524_v6 }
 0x15c   :  { %v1289_v2 = vunpack.c.l.bf16 %v585_v37  ;;  %v1525_v36 = vpack.c.bf16 %v1461_v33, %v1461_v33  ;;  %v1152_v27 = vperm.slane %v1147_v41, %v4277_v61  ;;  %v1179_v55 = vperm.slane %v1174_v3, %v4277_v61 }
 0x15d   :  { %v1454_v12 = vadd.f32 %v4632_v58, %v1326_v8  ;;  %v1161_v20 = vperm.slane %v1156_v0, %v4277_v61  ;;  %v1455_v62 = vadd.f32 %v4648_v49, %v1327_v21  ;;  %v1608_v48 = vmul.f32 0.20019531, %v1544_v40 }
 0x15e   :  { %v1417_v15 = vadd.f32 %v1353_v5, %v1289_v2  ;;  %2267 = vmatpush.bf16.msra.mxu1 %v4432_v32  ;;  %3871 = vmatpush.bf16.msra.mxu3 %v4432_v32  ;;  %v3780_v32 = vld [vmem:[%s5560_s1 + $0x90] sm:$0xff]  ;;  %v1589_v47 = vunpack.c.l.bf16 %v1525_v36  ;;  %v1586_v42 = vunpack.c.l.bf16 %v1522_v9  ;;  %v1587_v58 = vunpack.c.l.bf16 %v1523_v60 }
 0x15f   :  { %v1520_v5 = vpack.c.bf16 %v1456_v56, %v1456_v56  ;;  %v1521_v37 = vpack.c.bf16 %v1457_v31, %v1457_v31  ;;  %v1652_v45 = vmul.f32 0.20019531, %v1588_v29  ;;  %v1387_v24 = vunpack.c.l.bf16 %v1179_v55 }
 0x160   :  { %v1481_v16 = vpack.c.bf16 %v1417_v15, %v1417_v15  ;;  %v1653_v39 = vmul.f32 0.20019531, %v1589_v47  ;;  %v1518_v52 = vpack.c.bf16 %v1454_v12, %v1454_v12  ;;  %v1519_v23 = vpack.c.bf16 %v1455_v62, %v1455_v62  ;;  %v1138_v36 = vpop.permute.xlu0 %1137 }
 0x161   :  { %v456_v46 = vpop.f32.mrf.mxu0  ;;  %v1844_v8 = vmax.f32 %v1588_v29, %v1652_v45  ;;  %v1800_v21 = vmax.f32 %v1544_v40, %v1608_v48  ;;  %v1651_v41 = vmul.f32 0.20019531, %v1587_v58  ;;  %v1384_v9 = vunpack.c.l.bf16 %v1152_v27 }
 0x162   :  { %v1545_v51 = vunpack.c.l.bf16 %v1481_v16  ;;  %v586_v13 = vpack.c.bf16 %v456_v46, %v456_v46  ;;  %2268 = vmatpush.bf16.msra.mxu1 %v4390_v44  ;;  %3872 = vmatpush.bf16.msra.mxu3 %v4390_v44  ;;  %v1845_v2 = vmax.f32 %v1589_v47, %v1653_v39  ;;  %v1650_v44 = vmul.f32 0.20019531, %v1586_v42  ;;  %v1129_v16 = vpop.permute.xlu2 %1128 }
 0x163   :  { %v1584_v60 = vunpack.c.l.bf16 %v1520_v5  ;;  %v1585_v3 = vunpack.c.l.bf16 %v1521_v37  ;;  %v1385_v31 = vunpack.c.l.bf16 %v1161_v20  ;;  %v1843_v12 = vmax.f32 %v1587_v58, %v1651_v41 }
 0x164   :  { %v1290_v6 = vunpack.c.l.bf16 %v586_v13  ;;  %3491 = vmatmul.msk.bf16.gmra.mxu0 %vm276_vm0, %v3780_v32  ;;  %v1609_v49 = vmul.f32 0.20019531, %v1545_v51  ;;  %v1877_v56 = vpack.c.bf16 %v1845_v2, %v1844_v8  ;;  %v1842_v55 = vmax.f32 %v1586_v42, %v1650_v44 }
 0x165   :  { %v1517_v40 = vpack.c.bf16 %v4681_v30, %v4681_v30  ;;  %v1143_v0 = vperm.slane %v1138_v36, %v4277_v61  ;;  %v1582_v32 = vunpack.c.l.bf16 %v1518_v52  ;;  %v1134_v20 = vperm.slane %v1129_v16, %v4277_v61 }
 0x166   :  { %v1418_v33 = vadd.f32 %v4616_v38, %v1290_v6  ;;  %2269 = vmatpush.bf16.msra.mxu1 %v4348_v63  ;;  %3873 = vmatpush.bf16.msra.mxu3 %v4348_v63  ;;  %v1801_v15 = vmax.f32 %v1545_v51, %v1609_v49  ;;  %v1516_v38 = vpack.c.bf16 %v4679_v10, %v4679_v10  ;;  %v1583_v62 = vunpack.c.l.bf16 %v1519_v23 }
 0x167   :  { %v1451_v63 = vadd.f32 %v1387_v24, %v1323_v18  ;;  %v1876_v48 = vpack.c.bf16 %v1843_v12, %v1842_v55  ;;  %v1648_v51 = vmul.f32 0.20019531, %v1584_v60  ;;  %v1649_v42 = vmul.f32 0.20019531, %v1585_v3 }
 0x168   :  { %v4704_v29 = vpack.c.bf16 %v1801_v15, %v1800_v21  ;;  %v1482_v47 = vpack.c.bf16 %v1418_v33, %v1418_v33  ;;  %v1514_v10 = vpack.c.bf16 %v4683_v25, %v4683_v25  ;;  %v1448_v30 = vadd.f32 %v1384_v9, %v4622_v28  ;;  %v3781_v21 = vld [vmem:[%s5560_s1 + $0x98] sm:$0xff] }
 0x169   :  { %v458_v27 = vpop.f32.mrf.mxu0  ;;  %v1449_v18 = vadd.f32 %v1385_v31, %v4630_v22  ;;  %v1515_v58 = vpack.c.bf16 %v1451_v63, %v1451_v63  ;;  %v1383_v5 = vunpack.c.l.bf16 %v1143_v0  ;;  %v1840_v37 = vmax.f32 %v1584_v60, %v1648_v51 }
 0x16a   :  { %2529 = vmatpush.bf16.msrb.mxu1 %v1877_v56  ;;  %v587_v46 = vpack.c.bf16 %v458_v27, %v458_v27  ;;  %v1841_v45 = vmax.f32 %v1585_v3, %v1649_v42  ;;  %v1382_v39 = vunpack.c.l.bf16 %v1134_v20  ;;  %v1646_v52 = vmul.f32 0.20019531, %v1582_v32 }
 0x16b   :  { %v1647_v6 = vmul.f32 0.20019531, %v1583_v62  ;;  %v1580_v49 = vunpack.c.l.bf16 %v1516_v38  ;;  %v1581_v23 = vunpack.c.l.bf16 %v1517_v40  ;;  %v1546_v8 = vunpack.c.l.bf16 %v1482_v47 }
 0x16c   :  { %v1291_v13 = vunpack.c.l.bf16 %v587_v46  ;;  %v1875_v2 = vpack.c.bf16 %v1841_v45, %v1840_v37  ;;  %v5581_v28 = vperm.slane %v4454_v4, %v4277_v61  ;;  %v1838_v33 = vmax.f32 %v1582_v32, %v1646_v52 }
 0x16d   :  { %v1839_v44 = vmax.f32 %v1583_v62, %v1647_v6  ;;  %v1578_v41 = vunpack.c.l.bf16 %v1514_v10  ;;  %v1512_v15 = vpack.c.bf16 %v1448_v30, %v1448_v30  ;;  %v1447_v9 = vadd.f32 %v1383_v5, %v4610_v43 }
 0x16e   :  { %2530 = vmatpush.bf16.msrb.mxu1 %v1876_v48  ;;  %v1419_v24 = vadd.f32 %v4624_v54, %v1291_v13  ;;  %v1356_v25 = vunpack.c.l.bf16 %v5581_v28  ;;  %v1513_v54 = vpack.c.bf16 %v1449_v18, %v1449_v18  ;;  %v1579_v3 = vunpack.c.l.bf16 %v1515_v58 }
 0x16f   :  { %v1446_v56 = vadd.f32 %v1382_v39, %v4608_v53  ;;  %v1874_v36 = vpack.c.bf16 %v1839_v44, %v1838_v33  ;;  %v1644_v55 = vmul.f32 0.20019531, %v1580_v49  ;;  %v1645_v12 = vmul.f32 0.20019531, %v1581_v23  ;;  %v3782_v44 = vld [vmem:[%s5560_s1 + $0xa0] sm:$0xff] }
 0x170   :  { %v1483_v22 = vpack.c.bf16 %v1419_v24, %v1419_v24  ;;  %v1610_v38 = vmul.f32 0.20019531, %v1546_v8  ;;  %v909_v40 = vperm.slane %v4474_v35, %v4277_v61  ;;  %v1576_v16 = vunpack.c.l.bf16 %v1512_v15 }
 0x171   :  { %v461_v60 = vpop.f32.mrf.mxu0  ;;  %v1511_v43 = vpack.c.bf16 %v1447_v9, %v1447_v9  ;;  %v1836_v27 = vmax.f32 %v1580_v49, %v1644_v55  ;;  %v1837_v32 = vmax.f32 %v1581_v23, %v1645_v12  ;;  %v1510_v20 = vpack.c.bf16 %v1446_v56, %v1446_v56 }
 0x172   :  { %2531 = vmatpush.bf16.msrb.mxu1 %v1875_v2  ;;  %v1547_v31 = vunpack.c.l.bf16 %v1483_v22  ;;  %v588_v4 = vpack.c.bf16 %v461_v60, %v461_v60  ;;  %v1642_v62 = vmul.f32 0.20019531, %v1578_v41  ;;  %v1643_v46 = vmul.f32 0.20019531, %v1579_v3 }
 0x173   :  { %v1577_v47 = vunpack.c.l.bf16 %v1513_v54  ;;  %v1873_v48 = vpack.c.bf16 %v1837_v32, %v1836_v27  ;;  %v1802_v51 = vmax.f32 %v1546_v8, %v1610_v38  ;;  %v1357_v35 = vunpack.c.l.bf16 %v909_v40 }
 0x174   :  { %v1292_v63 = vunpack.c.l.bf16 %v588_v4  ;;  %3492 = vmatmul.msk.bf16.gmra.mxu0 %vm276_vm0, %v3781_v21  ;;  %v1611_v0 = vmul.f32 0.20019531, %v1547_v31  ;;  %v1834_v10 = vmax.f32 %v1578_v41, %v1642_v62  ;;  %v1835_v30 = vmax.f32 %v1579_v3, %v1643_v46 }
 0x175   :  { %v1575_v58 = vunpack.c.l.bf16 %v1511_v43  ;;  %v1574_v5 = vunpack.c.l.bf16 %v1510_v20  ;;  %v1640_v24 = vmul.f32 0.20019531, %v1576_v16  ;;  %v1641_v52 = vmul.f32 0.20019531, %v1577_v47 }
 0x176   :  { %2532 = vmatpush.bf16.msrb.mxu1 %v1874_v36  ;;  %v1420_v53 = vadd.f32 %v1356_v25, %v1292_v63  ;;  %v1803_v42 = vmax.f32 %v1547_v31, %v1611_v0  ;;  %v1872_v39 = vpack.c.bf16 %v1835_v30, %v1834_v10  ;;  %v918_v49 = vperm.slane %v4400_v57, %v4277_v61 }
 0x177   :  { %v1832_v23 = vmax.f32 %v1576_v16, %v1640_v24  ;;  %v1833_v8 = vmax.f32 %v1577_v47, %v1641_v52  ;;  %v1638_v25 = vmul.f32 0.20019531, %v1574_v5  ;;  %v1639_v22 = vmul.f32 0.20019531, %v1575_v58 }
 0x178   :  { %v4728_v13 = vpack.c.bf16 %v1803_v42, %v1802_v51  ;;  %v1484_v37 = vpack.c.bf16 %v1420_v53, %v1420_v53  ;;  %v1358_v54 = vunpack.c.l.bf16 %v918_v49  ;;  %v927_v36 = vperm.slane %v4421_v19, %v4277_v61  ;;  %v3783_v19 = vld [vmem:[%s5560_s1 + $0xa8] sm:$0xff] }
 0x179   :  { %v463_v18 = vpop.f32.mrf.mxu0  ;;  %v1871_v21 = vpack.c.bf16 %v1833_v8, %v1832_v23  ;;  %v1830_v41 = vmax.f32 %v1574_v5, %v1638_v25  ;;  %v1831_v15 = vmax.f32 %v1575_v58, %v1639_v22  ;;  %v936_v32 = vperm.slane %v4350_v1, %v4277_v61 }
 0x17a   :  { %2533 = vmatpush.bf16.msrb.mxu1 %v1873_v48  ;;  %v589_v45 = vpack.c.bf16 %v463_v18, %v463_v18  ;;  %v1548_v2 = vunpack.c.l.bf16 %v1484_v37  ;;  %v1359_v0 = vunpack.c.l.bf16 %v927_v36  ;;  %v954_v23 = vperm.slane %v4358_v7, %v4277_v61  ;;  %v3796_v7 = vld [vmem:[%s5562_s3 + $0xc] sm:$0xf0] }
 0x17b   :  { %v1870_v3 = vpack.c.bf16 %v1831_v15, %v1830_v41  ;;  %v1360_v47 = vunpack.c.l.bf16 %v936_v32  ;;  %v3507_v15 = vld [vmem:[%s5562_s3] sm:$0xf] }
 0x17c   :  { %v1293_v6 = vunpack.c.l.bf16 %v589_v45  ;;  %v1612_v56 = vmul.f32 0.20019531, %v1548_v2 }
 0x17e   :  { %2534 = vmatpush.bf16.msrb.mxu1 %v1872_v39  ;;  %v1421_v28 = vadd.f32 %v1357_v35, %v1293_v6  ;;  %v1804_v12 = vmax.f32 %v1548_v2, %v1612_v56  ;;  %v945_v35 = vperm.slane %v4370_v17, %v4277_v61  ;;  %v3784_v17 = vld [vmem:[%s5560_s1 + $0xb0] sm:$0xff] }
 0x180   :  { %v1485_v33 = vpack.c.bf16 %v1421_v28, %v1421_v28  ;;  %v1361_v45 = vunpack.c.l.bf16 %v945_v35 }
 0x181   :  { %v466_v9 = vpop.f32.mrf.mxu0 }
 0x182   :  { %2535 = vmatpush.bf16.msrb.mxu1 %v1871_v21  ;;  %v1549_v60 = vunpack.c.l.bf16 %v1485_v33  ;;  %v590_v57 = vpack.c.bf16 %v466_v9, %v466_v9  ;;  %v1362_v21 = vunpack.c.l.bf16 %v954_v23 }
 0x184   :  { %v1294_v31 = vunpack.c.l.bf16 %v590_v57  ;;  %3493 = vmatmul.msk.bf16.gmra.mxu0 %vm276_vm0, %v3782_v44  ;;  %v1613_v4 = vmul.f32 0.20019531, %v1549_v60  ;;  %v963_v57 = vperm.slane %v4327_v34, %v4277_v61 }
 0x186   :  { %2536 = vmatpush.bf16.msrb.mxu1 %v1870_v3  ;;  %v1422_v55 = vadd.f32 %v1358_v54, %v1294_v31  ;;  %v1805_v38 = vmax.f32 %v1549_v60, %v1613_v4  ;;  %v3508_v60 = vor.u32 %v3796_v7, %v3507_v15  ;;  %v1363_v36 = vunpack.c.l.bf16 %v963_v57 }
 0x188   :  { %v4738_v40 = vpack.c.bf16 %v1805_v38, %v1804_v12  ;;  %v1486_v16 = vpack.c.bf16 %v1422_v55, %v1422_v55  ;;  %2270 = vmatmul.bf16.vlgmr.msra.gmra.mxu1 %v3508_v60 }
 0x189   :  { %v468_v63 = vpop.f32.mrf.mxu0 }
 0x18a   :  { %v591_v43 = vpack.c.bf16 %v468_v63, %v468_v63  ;;  %v1550_v20 = vunpack.c.l.bf16 %v1486_v16  ;;  %v972_v63 = vperm.slane %v4302_v11, %v4277_v61  ;;  %v3785_v16 = vld [vmem:[%s5560_s1 + $0xb8] sm:$0xff]  ;;  %v3523_v11 = vld [vmem:[%s5562_s3 + $0x20] sm:$0xf] }
 0x18c   :  { %v1295_v27 = vunpack.c.l.bf16 %v591_v43  ;;  %v1614_v42 = vmul.f32 0.20019531, %v1550_v20 }
 0x18e   :  { %v1423_v53 = vadd.f32 %v1359_v0, %v1295_v27  ;;  %v1806_v18 = vmax.f32 %v1550_v20, %v1614_v42  ;;  %v1364_v20 = vunpack.c.l.bf16 %v972_v63  ;;  %v981_v42 = vperm.slane %v4338_v50, %v4277_v61 }
 0x190   :  { %v1487_v62 = vpack.c.bf16 %v1423_v53, %v1423_v53 }
 0x191   :  { %v471_v46 = vpop.f32.mrf.mxu0 }
 0x192   :  { %v1551_v48 = vunpack.c.l.bf16 %v1487_v62  ;;  %v592_v51 = vpack.c.bf16 %v471_v46, %v471_v46 }
 0x194   :  { %v1296_v10 = vunpack.c.l.bf16 %v592_v51  ;;  %3494 = vmatmul.msk.bf16.gmra.mxu0 %vm276_vm0, %v3783_v19  ;;  %v1615_v30 = vmul.f32 0.20019531, %v1551_v48 }
 0x196   :  { %v1424_v1 = vadd.f32 %v1360_v47, %v1296_v10  ;;  %v1807_v58 = vmax.f32 %v1551_v48, %v1615_v30  ;;  %v3800_v48 = vld [vmem:[%s5562_s3 + $0x2c] sm:$0xf0] }
 0x197   :  { %v3524_v51 = vor.u32 %v3800_v48, %v3523_v11 }
 0x198   :  { %v4748_v5 = vpack.c.bf16 %v1807_v58, %v1806_v18  ;;  %v1488_v39 = vpack.c.bf16 %v1424_v1, %v1424_v1  ;;  %v1365_v18 = vunpack.c.l.bf16 %v981_v42  ;;  %v3667_v42 = vld [vmem:[%s5562_s3 + $0x140] sm:$0xf] }
 0x199   :  { %v473_v37 = vpop.f32.mrf.mxu0  ;;  %2275 = vmatmul.bf16.gmra.mxu1 %v3524_v51 }
 0x19a   :  { %v593_v24 = vpack.c.bf16 %v473_v37, %v473_v37  ;;  %v1552_v6 = vunpack.c.l.bf16 %v1488_v39  ;;  %v990_v39 = vperm.slane %v4657_v14, %v4277_v61  ;;  %v999_v14 = vperm.slane %v4652_v26, %v4277_v61 }
 0x19c   :  { %v1297_v52 = vunpack.c.l.bf16 %v593_v24  ;;  %v1616_v22 = vmul.f32 0.20019531, %v1552_v6 }
 0x19e   :  { %v1425_v49 = vadd.f32 %v1361_v45, %v1297_v52  ;;  %v1808_v54 = vmax.f32 %v1552_v6, %v1616_v22  ;;  %v3539_v22 = vld [vmem:[%s5562_s3 + $0x40] sm:$0xf] }
 0x1a0   :  { %v1489_v8 = vpack.c.bf16 %v1425_v49, %v1425_v49 }
 0x1a1   :  { %v476_v2 = vpop.f32.mrf.mxu0 }
 0x1a2   :  { %v1553_v28 = vunpack.c.l.bf16 %v1489_v8  ;;  %v594_v25 = vpack.c.bf16 %v476_v2, %v476_v2  ;;  %v1366_v8 = vunpack.c.l.bf16 %v990_v39 }
 0x1a4   :  { %v1298_v33 = vunpack.c.l.bf16 %v594_v25  ;;  %3495 = vmatmul.msk.bf16.gmra.mxu0 %vm276_vm0, %v3784_v17  ;;  %v1617_v44 = vmul.f32 0.20019531, %v1553_v28 }
 0x1a6   :  { %v1426_v41 = vadd.f32 %v1362_v21, %v1298_v33  ;;  %v1809_v9 = vmax.f32 %v1553_v28, %v1617_v44  ;;  %v3804_v21 = vld [vmem:[%s5562_s3 + $0x4c] sm:$0xf0] }
 0x1a7   :  { %v3540_v44 = vor.u32 %v3804_v21, %v3539_v22 }
 0x1a8   :  { %v4764_v3 = vpack.c.bf16 %v1809_v9, %v1808_v54  ;;  %v1490_v31 = vpack.c.bf16 %v1426_v41, %v1426_v41  ;;  %v1367_v54 = vunpack.c.l.bf16 %v999_v14 }
 0x1a9   :  { %v478_v56 = vpop.f32.mrf.mxu0  ;;  %2280 = vmatmul.bf16.gmra.mxu1 %v3540_v44 }
 0x1aa   :  { %v595_v4 = vpack.c.bf16 %v478_v56, %v478_v56  ;;  %v1554_v12 = vunpack.c.l.bf16 %v1490_v31  ;;  %v5582_v56 = vld [vmem:[#allocation19_spill] sm:$0xff] }
 0x1ab   :  { %v1008_v31 = vperm.slane %v5582_v56, %v4277_v61 }
 0x1ac   :  { %v1299_v55 = vunpack.c.l.bf16 %v595_v4  ;;  %v1618_v32 = vmul.f32 0.20019531, %v1554_v12 }
 0x1ae   :  { %v1427_v38 = vadd.f32 %v1363_v36, %v1299_v55  ;;  %v1810_v46 = vmax.f32 %v1554_v12, %v1618_v32  ;;  %v3808_v32 = vld [vmem:[%s5562_s3 + $0x6c] sm:$0xf0] }
 0x1b0   :  { %v1491_v0 = vpack.c.bf16 %v1427_v38, %v1427_v38  ;;  %v1368_v38 = vunpack.c.l.bf16 %v1008_v31 }
 0x1b1   :  { %v481_v43 = vpop.f32.mrf.mxu0 }
 0x1b2   :  { %v1555_v34 = vunpack.c.l.bf16 %v1491_v0  ;;  %v596_v27 = vpack.c.bf16 %v481_v43, %v481_v43 }
 0x1b4   :  { %v1300_v53 = vunpack.c.l.bf16 %v596_v27  ;;  %3496 = vmatmul.msk.bf16.gmra.mxu0 %vm276_vm0, %v3785_v16  ;;  %v1619_v62 = vmul.f32 0.20019531, %v1555_v34  ;;  %v3555_v27 = vld [vmem:[%s5562_s3 + $0x60] sm:$0xf] }
 0x1b6   :  { %v1428_v19 = vadd.f32 %v1364_v20, %v1300_v53  ;;  %v1811_v47 = vmax.f32 %v1555_v34, %v1619_v62  ;;  %v5583_v20 = vld [vmem:[#allocation18_spill] sm:$0xff]  ;;  %v3556_v53 = vor.u32 %v3808_v32, %v3555_v27  ;;  %v3587_v32 = vld [vmem:[%s5562_s3 + $0xa0] sm:$0xf] }
 0x1b8   :  { %v1860_v10 = vpack.c.bf16 %v1811_v47, %v1810_v46  ;;  %v1492_v35 = vpack.c.bf16 %v1428_v19, %v1428_v19 }
 0x1b9   :  { %v483_v30 = vpop.f32.mrf.mxu0  ;;  %2285 = vmatmul.bf16.gmra.mxu1 %v3556_v53 }
 0x1ba   :  { %v597_v1 = vpack.c.bf16 %v483_v30, %v483_v30  ;;  %v1556_v37 = vunpack.c.l.bf16 %v1492_v35  ;;  %v5584_v30 = vld [vmem:[#allocation17_spill] sm:$0xff] }
 0x1bb   :  { %v1026_v35 = vperm.slane %v5584_v30, %v4277_v61  ;;  %v3699_v30 = vld [vmem:[%s5562_s3 + $0x180] sm:$0xf] }
 0x1bc   :  { %v1301_v58 = vunpack.c.l.bf16 %v597_v1  ;;  %v1620_v23 = vmul.f32 0.20019531, %v1556_v37 }
 0x1be   :  { %v1429_v45 = vadd.f32 %v1365_v18, %v1301_v58  ;;  %v1812_v28 = vmax.f32 %v1556_v37, %v1620_v23 }
 0x1c0   :  { %v1493_v24 = vpack.c.bf16 %v1429_v45, %v1429_v45  ;;  %v3509_v45 = vld [vmem:[%s5562_s3 + $0x10] sm:$0xf0] }
 0x1c1   :  { %v486_v52 = vpop.f32.mrf.mxu0 }
 0x1c2   :  { %v1557_v6 = vunpack.c.l.bf16 %v1493_v24  ;;  %v598_v49 = vpack.c.bf16 %v486_v52, %v486_v52  ;;  %v1370_v24 = vunpack.c.l.bf16 %v1026_v35  ;;  %v3844_v35 = vld [vmem:[%s5562_s3 + $0x18c] sm:$0xf0] }
 0x1c4   :  { %v1302_v17 = vunpack.c.l.bf16 %v598_v49  ;;  %v1621_v50 = vmul.f32 0.20019531, %v1557_v6 }
 0x1c6   :  { %v1430_v2 = vadd.f32 %v1366_v8, %v1302_v17  ;;  %v1813_v25 = vmax.f32 %v1557_v6, %v1621_v50  ;;  %v3812_v50 = vld [vmem:[%s5562_s3 + $0x8c] sm:$0xf0] }
 0x1c8   :  { %v1861_v33 = vpack.c.bf16 %v1813_v25, %v1812_v28  ;;  %v1494_v15 = vpack.c.bf16 %v1430_v2, %v1430_v2  ;;  %v5585_v2 = vld [vmem:[#allocation16_spill] sm:$0xff] }
 0x1c9   :  { %v488_v41 = vpop.f32.mrf.mxu0  ;;  %v1035_v28 = vperm.slane %v5585_v2, %v4277_v61  ;;  %v3603_v2 = vld [vmem:[%s5562_s3 + $0xc0] sm:$0xf] }
 0x1ca   :  { %v599_v7 = vpack.c.bf16 %v488_v41, %v488_v41  ;;  %2351 = vmatpush.bf16.msrb.mxu2 %v1861_v33  ;;  %v1558_v60 = vunpack.c.l.bf16 %v1494_v15 }
 0x1cb   :  { %v1371_v33 = vunpack.c.l.bf16 %v1035_v28  ;;  %v3820_v28 = vld [vmem:[%s5562_s3 + $0xcc] sm:$0xf0] }
 0x1cc   :  { %v1303_v9 = vunpack.c.l.bf16 %v599_v7  ;;  %v1622_v26 = vmul.f32 0.20019531, %v1558_v60  ;;  %v3683_v7 = vld [vmem:[%s5562_s3 + $0x160] sm:$0xf] }
 0x1ce   :  { %v1431_v57 = vadd.f32 %v1367_v54, %v1303_v9  ;;  %2352 = vmatpush.bf16.msrb.mxu2 %v1860_v10  ;;  %v1814_v43 = vmax.f32 %v1558_v60, %v1622_v26  ;;  %v3836_v10 = vld [vmem:[%s5562_s3 + $0x14c] sm:$0xf0] }
 0x1cf   :  { %v3840_v54 = vld [vmem:[%s5562_s3 + $0x16c] sm:$0xf0] }
 0x1d0   :  { %v1495_v4 = vpack.c.bf16 %v1431_v57, %v1431_v57  ;;  %v5586_v9 = vld [vmem:[#allocation15_spill] sm:$0xff]  ;;  %v3684_v56 = vor.u32 %v3840_v54, %v3683_v7 }
 0x1d1   :  { %v491_v36 = vpop.f32.mrf.mxu0  ;;  %v1044_v60 = vperm.slane %v5586_v9, %v4277_v61 }
 0x1d2   :  { %v1559_v55 = vunpack.c.l.bf16 %v1495_v4  ;;  %v600_v12 = vpack.c.bf16 %v491_v36, %v491_v36  ;;  %2353 = vmatpush.bf16.msrb.mxu2 %v4764_v3  ;;  %v1017_v3 = vperm.slane %v5583_v20, %v4277_v61  ;;  %v3816_v20 = vld [vmem:[%s5562_s3 + $0xac] sm:$0xf0] }
 0x1d4   :  { %v1304_v63 = vunpack.c.l.bf16 %v600_v12  ;;  %v1623_v0 = vmul.f32 0.20019531, %v1559_v55  ;;  %v3525_v12 = vld [vmem:[%s5562_s3 + $0x30] sm:$0xf0] }
 0x1d6   :  { %v1432_v16 = vadd.f32 %v1368_v38, %v1304_v63  ;;  %2354 = vmatpush.bf16.msrb.mxu2 %v4748_v5  ;;  %v1815_v34 = vmax.f32 %v1559_v55, %v1623_v0  ;;  %v1369_v5 = vunpack.c.l.bf16 %v1017_v3  ;;  %v3798_v55 = vld [vmem:[%s5562_s3 + $0x24] sm:$0xf]  ;;  %v1372_v38 = vunpack.c.l.bf16 %v1044_v60  ;;  %v5587_v3 = vld [vmem:[#allocation14_spill] sm:$0xff]  ;;  %v3715_v60 = vld [vmem:[%s5562_s3 + $0x1a0] sm:$0xf] }
 0x1d7   :  { %v1053_v53 = vperm.slane %v5587_v3, %v4277_v61 }
 0x1d8   :  { %v4802_v62 = vpack.c.bf16 %v1815_v34, %v1814_v43  ;;  %v1496_v46 = vpack.c.bf16 %v1432_v16, %v1432_v16  ;;  %v3528_v16 = vor.u32 %v3798_v55, %v3525_v12 }
 0x1d9   :  { %v493_v19 = vpop.f32.mrf.mxu0 }
 0x1da   :  { %v601_v47 = vpack.c.bf16 %v493_v19, %v493_v19  ;;  %2355 = vmatpush.bf16.msrb.mxu2 %v4738_v40  ;;  %v1560_v48 = vunpack.c.l.bf16 %v1496_v46  ;;  %v3668_v40 = vor.u32 %v3836_v10, %v3667_v42  ;;  %v3588_v19 = vor.u32 %v3816_v20, %v3587_v32 }
 0x1dc   :  { %v1305_v11 = vunpack.c.l.bf16 %v601_v47  ;;  %2320 = vmatmul.bf16.vlgmr.msra.gmra.mxu3 %v3668_v40  ;;  %v1624_v39 = vmul.f32 0.20019531, %v1560_v48 }
 0x1de   :  { %v1433_v51 = vadd.f32 %v1369_v5, %v1305_v11  ;;  %2356 = vmatpush.bf16.msrb.mxu2 %v4728_v13  ;;  %v3794_v13 = vld [vmem:[%s5562_s3 + $0x4] sm:$0xf]  ;;  %v1816_v8 = vmax.f32 %v1560_v48, %v1624_v39  ;;  %v1373_v48 = vunpack.c.l.bf16 %v1053_v53  ;;  %v3619_v53 = vld [vmem:[%s5562_s3 + $0xe0] sm:$0xf] }
 0x1df   :  { %v3512_v49 = vor.u32 %v3794_v13, %v3509_v45  ;;  %v3802_v39 = vld [vmem:[%s5562_s3 + $0x44] sm:$0xf] }
 0x1e0   :  { %v1497_v1 = vpack.c.bf16 %v1433_v51, %v1433_v51 }
 0x1e1   :  { %v496_v18 = vpop.f32.mrf.mxu0 }
 0x1e2   :  { %v1561_v58 = vunpack.c.l.bf16 %v1497_v1  ;;  %v602_v37 = vpack.c.bf16 %v496_v18, %v496_v18  ;;  %2357 = vmatpush.bf16.msrb.mxu2 %v4704_v29  ;;  %v3571_v29 = vld [vmem:[%s5562_s3 + $0x80] sm:$0xf] }
 0x1e3   :  { %v3572_v25 = vor.u32 %v3812_v50, %v3571_v29  ;;  %v5588_v1 = vld [vmem:[#allocation13_spill] sm:$0xff] }
 0x1e4   :  { %v1306_v52 = vunpack.c.l.bf16 %v602_v37  ;;  %v1625_v6 = vmul.f32 0.20019531, %v1561_v58  ;;  %v1062_v40 = vperm.slane %v5588_v1, %v4277_v61 }
 0x1e5   :  { %2290 = vmatmul.bf16.gmra.mxu1 %v3572_v25  ;;  %v5589_v25 = vld [vmem:[#allocation12_spill] sm:$0xff] }
 0x1e6   :  { %v1434_v23 = vadd.f32 %v1370_v24, %v1306_v52  ;;  %2358 = vmatpush.bf16.msrb.mxu2 %v4669_v59  ;;  %v1817_v17 = vmax.f32 %v1561_v58, %v1625_v6  ;;  %v3700_v58 = vor.u32 %v3844_v35, %v3699_v30  ;;  %v3541_v24 = vld [vmem:[%s5562_s3 + $0x50] sm:$0xf0]  ;;  %v1374_v6 = vunpack.c.l.bf16 %v1062_v40 }
 0x1e8   :  { %v4830_v22 = vpack.c.bf16 %v1817_v17, %v1816_v8  ;;  %v1498_v14 = vpack.c.bf16 %v1434_v23, %v1434_v23  ;;  %v3544_v8 = vor.u32 %v3802_v39, %v3541_v24 }
 0x1e9   :  { %v498_v21 = vpop.f32.mrf.mxu0  ;;  %2359 = vmatmul.bf16.vlgmr.msrb.gmra.mxu2 %v3512_v49 }
 0x1ea   :  { %v603_v59 = vpack.c.bf16 %v498_v21, %v498_v21  ;;  %v1562_v41 = vunpack.c.l.bf16 %v1498_v14  ;;  %v1071_v21 = vperm.slane %v5589_v25, %v4277_v61  ;;  %v3604_v14 = vor.u32 %v3820_v28, %v3603_v2  ;;  %v3828_v2 = vld [vmem:[%s5562_s3 + $0x10c] sm:$0xf0] }
 0x1ec   :  { %v1307_v44 = vunpack.c.l.bf16 %v603_v59  ;;  %2325 = vmatmul.bf16.gmra.mxu3 %v3684_v56  ;;  %v1626_v26 = vmul.f32 0.20019531, %v1562_v41 }
 0x1ee   :  { %v1435_v15 = vadd.f32 %v1371_v33, %v1307_v44  ;;  %v1818_v34 = vmax.f32 %v1562_v41, %v1626_v26 }
 0x1f0   :  { %v1499_v57 = vpack.c.bf16 %v1435_v15, %v1435_v15  ;;  %v1375_v15 = vunpack.c.l.bf16 %v1071_v21 }
 0x1f1   :  { %v501_v31 = vpop.f32.mrf.mxu0 }
 0x1f2   :  { %v1563_v4 = vunpack.c.l.bf16 %v1499_v57  ;;  %v604_v36 = vpack.c.bf16 %v501_v31, %v501_v31  ;;  %v3848_v57 = vld [vmem:[%s5562_s3 + $0x1ac] sm:$0xf0] }
 0x1f3   :  { %v3716_v31 = vor.u32 %v3848_v57, %v3715_v60 }
 0x1f4   :  { %v1308_v63 = vunpack.c.l.bf16 %v604_v36  ;;  %v1627_v0 = vmul.f32 0.20019531, %v1563_v4 }
 0x1f5   :  { %2295 = vmatmul.bf16.gmra.mxu1 %v3588_v19  ;;  %v3824_v19 = vld [vmem:[%s5562_s3 + $0xec] sm:$0xf0] }
 0x1f6   :  { %v1436_v43 = vadd.f32 %v1372_v38, %v1308_v63  ;;  %v1819_v27 = vmax.f32 %v1563_v4, %v1627_v0  ;;  %v5590_v4 = vld [vmem:[#allocation11_spill] sm:$0xff]  ;;  %v3806_v38 = vld [vmem:[%s5562_s3 + $0x64] sm:$0xf] }
 0x1f7   :  { %v1080_v36 = vperm.slane %v5590_v4, %v4277_v61  ;;  %v3557_v63 = vld [vmem:[%s5562_s3 + $0x70] sm:$0xf0] }
 0x1f8   :  { %v4854_v46 = vpack.c.bf16 %v1819_v27, %v1818_v34  ;;  %v1500_v5 = vpack.c.bf16 %v1436_v43, %v1436_v43  ;;  %v3560_v27 = vor.u32 %v3806_v38, %v3557_v63  ;;  %v5594_v63 = vld [vmem:[#allocation6_spill] sm:$0xff] }
 0x1f9   :  { %v503_v47 = vpop.f32.mrf.mxu0  ;;  %2364 = vmatmul.bf16.gmra.mxu2 %v3528_v16  ;;  %v1376_v34 = vunpack.c.l.bf16 %v1080_v36 }
 0x1fa   :  { %v605_v11 = vpack.c.bf16 %v503_v47, %v503_v47  ;;  %v1564_v42 = vunpack.c.l.bf16 %v1500_v5  ;;  %v5591_v47 = vld [vmem:[#allocation9_spill] sm:$0xff] }
 0x1fb   :  { %v1089_v5 = vperm.slane %v5591_v47, %v4277_v61 }
 0x1fc   :  { %v1309_v51 = vunpack.c.l.bf16 %v605_v11  ;;  %2330 = vmatmul.bf16.gmra.mxu3 %v3700_v58  ;;  %v1628_v52 = vmul.f32 0.20019531, %v1564_v42  ;;  %v3620_v11 = vor.u32 %v3824_v19, %v3619_v53  ;;  %v3852_v58 = vld [vmem:[%s5562_s3 + $0x1cc] sm:$0xf0] }
 0x1fd   :  { %v1377_v30 = vunpack.c.l.bf16 %v1089_v5 }
 0x1fe   :  { %v1437_v10 = vadd.f32 %v1373_v48, %v1309_v51  ;;  %v1820_v29 = vmax.f32 %v1564_v42, %v1628_v52 }
 0x200   :  { %v1501_v18 = vpack.c.bf16 %v1437_v10, %v1437_v10 }
 0x201   :  { %v506_v37 = vpop.f32.mrf.mxu0 }
 0x202   :  { %v1565_v13 = vunpack.c.l.bf16 %v1501_v18  ;;  %v606_v45 = vpack.c.bf16 %v506_v37, %v506_v37  ;;  %v3731_v18 = vld [vmem:[%s5562_s3 + $0x1c0] sm:$0xf] }
 0x203   :  { %v5592_v37 = vld [vmem:[#allocation8_spill] sm:$0xff]  ;;  %v3732_v39 = vor.u32 %v3852_v58, %v3731_v18 }
 0x204   :  { %v1310_v49 = vunpack.c.l.bf16 %v606_v45  ;;  %v1629_v23 = vmul.f32 0.20019531, %v1565_v13 }
 0x205   :  { %2300 = vmatmul.bf16.gmra.mxu1 %v3604_v14  ;;  %v4924_v14 = vpop.f32.mrf.mxu1 }
 0x206   :  { %v1438_v17 = vadd.f32 %v1374_v6, %v1310_v49  ;;  %v1821_v50 = vmax.f32 %v1565_v13, %v1629_v23  ;;  %v1098_v13 = vperm.slane %v5592_v37, %v4277_v61  ;;  %v3810_v49 = vld [vmem:[%s5562_s3 + $0x84] sm:$0xf]  ;;  %v3573_v23 = vld [vmem:[%s5562_s3 + $0x90] sm:$0xf0] }
 0x207   :  { %v3576_v28 = vor.u32 %v3810_v49, %v3573_v23 }
 0x208   :  { %v4878_v59 = vpack.c.bf16 %v1821_v50, %v1820_v29  ;;  %v1502_v44 = vpack.c.bf16 %v1438_v17, %v1438_v17  ;;  %v1378_v17 = vunpack.c.l.bf16 %v1098_v13  ;;  %v3635_v50 = vld [vmem:[%s5562_s3 + $0x100] sm:$0xf] }
 0x209   :  { %v508_v33 = vpop.f32.mrf.mxu0  ;;  %2369 = vmatmul.bf16.gmra.mxu2 %v3544_v8 }
 0x20a   :  { %v607_v41 = vpack.c.bf16 %v508_v33, %v508_v33  ;;  %v1566_v54 = vunpack.c.l.bf16 %v1502_v44  ;;  %v3636_v33 = vor.u32 %v3828_v2, %v3635_v50 }
 0x20c   :  { %v1311_v7 = vunpack.c.l.bf16 %v607_v41  ;;  %2335 = vmatmul.bf16.gmra.mxu3 %v3716_v31  ;;  %v1630_v0 = vmul.f32 0.20019531, %v1566_v54 }
 0x20e   :  { %v1439_v9 = vadd.f32 %v1375_v15, %v1311_v7  ;;  %v1822_v32 = vmax.f32 %v1566_v54, %v1630_v0  ;;  %v5593_v15 = vld [vmem:[#allocation10_spill] sm:$0xff]  ;;  %v1116_v0 = vperm.slane %v5594_v63, %v4277_v61 }
 0x20f   :  { %v1107_v7 = vperm.slane %v5593_v15, %v4277_v61  ;;  %v3517_v15 = vld [vmem:[%s5562_s3 + $0x18] sm:$0xf0] }
 0x210   :  { %v1503_v56 = vpack.c.bf16 %v1439_v9, %v1439_v9  ;;  %v1380_v53 = vunpack.c.l.bf16 %v1116_v0 }
 0x211   :  { %v511_v55 = vpop.f32.mrf.mxu0 }
 0x212   :  { %v1567_v12 = vunpack.c.l.bf16 %v1503_v56  ;;  %v608_v26 = vpack.c.bf16 %v511_v55, %v511_v55  ;;  %v1379_v56 = vunpack.c.l.bf16 %v1107_v7  ;;  %v4928_v55 = vpop.f32.mrf.mxu1 }
 0x214   :  { %v1312_v16 = vunpack.c.l.bf16 %v608_v26  ;;  %v1631_v43 = vmul.f32 0.20019531, %v1567_v12  ;;  %v3856_v26 = vld [vmem:[%s5562_s3 + $0x1ec] sm:$0xf0] }
 0x215   :  { %2305 = vmatmul.bf16.gmra.mxu1 %v3620_v11 }
 0x216   :  { %v1823_v20 = vmax.f32 %v1567_v12, %v1631_v43  ;;  %v1440_v3 = vadd.f32 %v1376_v34, %v1312_v16  ;;  %v3747_v12 = vld [vmem:[%s5562_s3 + $0x1e0] sm:$0xf] }
 0x217   :  { %v3748_v38 = vor.u32 %v3856_v26, %v3747_v12  ;;  %v3637_v26 = vld [vmem:[%s5562_s3 + $0x110] sm:$0xf0] }
 0x218   :  { %v4902_v48 = vpack.c.bf16 %v1823_v20, %v1822_v32  ;;  %v1504_v10 = vpack.c.bf16 %v1440_v3, %v1440_v3  ;;  %v3814_v32 = vld [vmem:[%s5562_s3 + $0xa4] sm:$0xf]  ;;  %v3589_v20 = vld [vmem:[%s5562_s3 + $0xb0] sm:$0xf0] }
 0x219   :  { %v513_v51 = vpop.f32.mrf.mxu0  ;;  %2374 = vmatmul.bf16.gmra.mxu2 %v3560_v27  ;;  %v3592_v5 = vor.u32 %v3814_v32, %v3589_v20  ;;  %v3653_v20 = vld [vmem:[%s5562_s3 + $0x130] sm:$0xf0] }
 0x21a   :  { %v609_v42 = vpack.c.bf16 %v513_v51, %v513_v51  ;;  %v1568_v40 = vunpack.c.l.bf16 %v1504_v10  ;;  %v4944_v10 = vpop.f32.mrf.mxu1 }
 0x21c   :  { %v1313_v35 = vunpack.c.l.bf16 %v609_v42  ;;  %2340 = vmatmul.bf16.gmra.mxu3 %v3732_v39  ;;  %v1632_v8 = vmul.f32 0.20019531, %v1568_v40 }
 0x21e   :  { %v1441_v1 = vadd.f32 %v1377_v30, %v1313_v35  ;;  %v1824_v44 = vmax.f32 %v1568_v40, %v1632_v8  ;;  %v3651_v30 = vld [vmem:[%s5562_s3 + $0x120] sm:$0xf]  ;;  %v3832_v35 = vld [vmem:[%s5562_s3 + $0x12c] sm:$0xf0] }
 0x21f   :  { %v5595_v40 = vld [vmem:[#allocation7_spill] sm:$0xff] }
 0x220   :  { %v1505_v45 = vpack.c.bf16 %v1441_v1, %v1441_v1  ;;  %v3652_v1 = vor.u32 %v3832_v35, %v3651_v30  ;;  %v1125_v18 = vperm.slane %v5595_v40, %v4277_v61  ;;  %v3565_v30 = vld [vmem:[%s5562_s3 + $0x78] sm:$0xf0] }
 0x221   :  { %v516_v24 = vpop.f32.mrf.mxu0 }
 0x222   :  { %v1569_v52 = vunpack.c.l.bf16 %v1505_v45  ;;  %v610_v6 = vpack.c.bf16 %v516_v24, %v516_v24  ;;  %v1381_v39 = vunpack.c.l.bf16 %v1125_v18  ;;  %v4954_v49 = vpop.f32.mrf.mxu1 }
 0x224   :  { %v1314_v29 = vunpack.c.l.bf16 %v610_v6  ;;  %v1633_v25 = vmul.f32 0.20019531, %v1569_v52 }
 0x225   :  { %2310 = vmatmul.bf16.gmra.mxu1 %v3636_v33 }
 0x226   :  { %v1442_v21 = vadd.f32 %v1378_v17, %v1314_v29  ;;  %v1825_v41 = vmax.f32 %v1569_v52, %v1633_v25  ;;  %v3818_v17 = vld [vmem:[%s5562_s3 + $0xc4] sm:$0xf]  ;;  %v3605_v29 = vld [vmem:[%s5562_s3 + $0xd0] sm:$0xf0] }
 0x228   :  { %v1867_v9 = vpack.c.bf16 %v1825_v41, %v1824_v44  ;;  %v1506_v60 = vpack.c.bf16 %v1442_v21, %v1442_v21  ;;  %v3795_v44 = vld [vmem:[%s5562_s3 + $0xc] sm:$0xf] }
 0x229   :  { %v518_v54 = vpop.f32.mrf.mxu0  ;;  %2379 = vmatmul.bf16.gmra.mxu2 %v3576_v28  ;;  %v3608_v28 = vor.u32 %v3818_v17, %v3605_v29  ;;  %v3520_v7 = vor.u32 %v3795_v44, %v3517_v15  ;;  %v3809_v44 = vld [vmem:[%s5562_s3 + $0x74] sm:$0xf0] }
 0x22a   :  { %v611_v57 = vpack.c.bf16 %v518_v54, %v518_v54  ;;  %v1570_v4 = vunpack.c.l.bf16 %v1506_v60  ;;  %v4962_v33 = vpop.f32.mrf.mxu1  ;;  %v3822_v60 = vld [vmem:[%s5562_s3 + $0xe4] sm:$0xf] }
 0x22c   :  { %v1315_v31 = vunpack.c.l.bf16 %v611_v57  ;;  %v1634_v3 = vmul.f32 0.20019531, %v1570_v4  ;;  %2345 = vmatmul.bf16.gmra.mxu3 %v3748_v38  ;;  %v3621_v57 = vld [vmem:[%s5562_s3 + $0xf0] sm:$0xf0]  ;;  %v3515_v38 = vld [vmem:[%s5562_s3 + $0x8] sm:$0xf] }
 0x22e   :  { %v1443_v36 = vadd.f32 %v1379_v56, %v1315_v31  ;;  %v1826_v51 = vmax.f32 %v1570_v4, %v1634_v3  ;;  %v3624_v56 = vor.u32 %v3822_v60, %v3621_v57  ;;  %v3799_v4 = vld [vmem:[%s5562_s3 + $0x2c] sm:$0xf]  ;;  %v3531_v3 = vld [vmem:[%s5562_s3 + $0x28] sm:$0xf] }
 0x230   :  { %v1507_v16 = vpack.c.bf16 %v1443_v36, %v1443_v36 }
 0x231   :  { %v521_v43 = vpop.f32.mrf.mxu0 }
 0x232   :  { %v1571_v34 = vunpack.c.l.bf16 %v1507_v16  ;;  %v612_v27 = vpack.c.bf16 %v521_v43, %v521_v43  ;;  %v4970_v54 = vpop.f32.mrf.mxu1  ;;  %v3549_v16 = vld [vmem:[%s5562_s3 + $0x58] sm:$0xf0] }
 0x234   :  { %v1316_v19 = vunpack.c.l.bf16 %v612_v27  ;;  %v1635_v47 = vmul.f32 0.20019531, %v1571_v34 }
 0x235   :  { %2315 = vmatmul.bf16.gmra.mxu1 %v3652_v1 }
 0x236   :  { %v1444_v11 = vadd.f32 %v1380_v53, %v1316_v19  ;;  %v1827_v42 = vmax.f32 %v1571_v34, %v1635_v47  ;;  %v3801_v53 = vld [vmem:[%s5562_s3 + $0x34] sm:$0xf0] }
 0x238   :  { %v1868_v58 = vpack.c.bf16 %v1827_v42, %v1826_v51  ;;  %v1508_v13 = vpack.c.bf16 %v1444_v11, %v1444_v11  ;;  %v3807_v42 = vld [vmem:[%s5562_s3 + $0x6c] sm:$0xf] }
 0x239   :  { %v523_v37 = vpop.f32.mrf.mxu0  ;;  %2384 = vmatmul.bf16.gmra.mxu2 %v3592_v5  ;;  %v3532_v5 = vor.u32 %v3801_v53, %v3531_v3  ;;  %v3568_v35 = vor.u32 %v3807_v42, %v3565_v30  ;;  %v3613_v3 = vld [vmem:[%s5562_s3 + $0xd8] sm:$0xf0]  ;;  %v5144_v42 = vpop.permute.xlu0 %2792  ;;  %v3846_v30 = vld [vmem:[%s5562_s3 + $0x1a4] sm:$0xf] }
 0x23a   :  { %v613_v45 = vpack.c.bf16 %v523_v37, %v523_v37  ;;  %v1572_v52 = vunpack.c.l.bf16 %v1508_v13  ;;  %v4979_v31 = vpop.f32.mrf.mxu1  ;;  %v3669_v37 = vld [vmem:[%s5562_s3 + $0x150] sm:$0xf0]  ;;  %v3547_v13 = vld [vmem:[%s5562_s3 + $0x48] sm:$0xf] }
 0x23c   :  { %v1317_v24 = vunpack.c.l.bf16 %v613_v45  ;;  %v1636_v50 = vmul.f32 0.20019531, %v1572_v52 }
 0x23e   :  { %v1445_v6 = vadd.f32 %v1381_v39, %v1317_v24  ;;  %v1828_v25 = vmax.f32 %v1572_v52, %v1636_v50 }
 0x240   :  { %v1509_v23 = vpack.c.bf16 %v1445_v6, %v1445_v6 }
 0x242   :  { %v1573_v8 = vunpack.c.l.bf16 %v1509_v23  ;;  %v4989_v12 = vpop.f32.mrf.mxu1  ;;  %v3811_v23 = vld [vmem:[%s5562_s3 + $0x8c] sm:$0xf] }
 0x244   :  { %v1637_v2 = vmul.f32 0.20019531, %v1573_v8 }
 0x245   :  { %2537 = vmatmul.bf16.vlgmr.msrb.gmra.mxu1 %v3520_v7 }
 0x246   :  { %v1829_v21 = vmax.f32 %v1573_v8, %v1637_v2  ;;  %v3581_v8 = vld [vmem:[%s5562_s3 + $0x98] sm:$0xf0] }
 0x247   :  { %v3584_v17 = vor.u32 %v3811_v23, %v3581_v8 }
 0x248   :  { %v1869_v41 = vpack.c.bf16 %v1829_v21, %v1828_v25  ;;  %v3685_v25 = vld [vmem:[%s5562_s3 + $0x170] sm:$0xf0]  ;;  %v3563_v21 = vld [vmem:[%s5562_s3 + $0x68] sm:$0xf] }
 0x249   :  { %2389 = vmatmul.bf16.gmra.mxu2 %v3608_v28  ;;  %v3838_v28 = vld [vmem:[%s5562_s3 + $0x164] sm:$0xf]  ;;  %v3564_v60 = vor.u32 %v3809_v44, %v3563_v21  ;;  %v3733_v44 = vld [vmem:[%s5562_s3 + $0x1d0] sm:$0xf0] }
 0x24a   :  { %2440 = vmatpush.bf16.msrb.mxu3 %v1869_v41  ;;  %v3688_v7 = vor.u32 %v3838_v28, %v3685_v25  ;;  %v3850_v21 = vld [vmem:[%s5562_s3 + $0x1c4] sm:$0xf] }
 0x24e   :  { %2441 = vmatpush.bf16.msrb.mxu3 %v1868_v58  ;;  %v3834_v58 = vld [vmem:[%s5562_s3 + $0x144] sm:$0xf] }
 0x24f   :  { %v3672_v24 = vor.u32 %v3834_v58, %v3669_v37  ;;  %v3817_v58 = vld [vmem:[%s5562_s3 + $0xb4] sm:$0xf0] }
 0x252   :  { %2442 = vmatpush.bf16.msrb.mxu3 %v1867_v9  ;;  %v3533_v9 = vld [vmem:[%s5562_s3 + $0x38] sm:$0xf0] }
 0x253   :  { %v3536_v36 = vor.u32 %v3799_v4, %v3533_v9  ;;  %v3597_v4 = vld [vmem:[%s5562_s3 + $0xb8] sm:$0xf0] }
 0x255   :  { %2542 = vmatmul.bf16.gmra.mxu1 %v3536_v36 }
 0x256   :  { %2443 = vmatpush.bf16.msrb.mxu3 %v4902_v48  ;;  %v3826_v48 = vld [vmem:[%s5562_s3 + $0x104] sm:$0xf] }
 0x259   :  { %2394 = vmatmul.bf16.gmra.mxu2 %v3624_v56  ;;  %v3815_v56 = vld [vmem:[%s5562_s3 + $0xac] sm:$0xf] }
 0x25a   :  { %2444 = vmatpush.bf16.msrb.mxu3 %v4878_v59  ;;  %v3640_v59 = vor.u32 %v3826_v48, %v3637_v26  ;;  %v3600_v9 = vor.u32 %v3815_v56, %v3597_v4 }
 0x25e   :  { %2445 = vmatpush.bf16.msrb.mxu3 %v4854_v46  ;;  %v3797_v46 = vld [vmem:[%s5562_s3 + $0x14] sm:$0xf0] }
 0x25f   :  { %v3516_v63 = vor.u32 %v3797_v46, %v3515_v38  ;;  %v5033_v11 = vpop.f32.mrf.mxu3  ;;  %v3842_v38 = vld [vmem:[%s5562_s3 + $0x184] sm:$0xf]  ;;  %v3701_v46 = vld [vmem:[%s5562_s3 + $0x190] sm:$0xf0] }
 0x262   :  { %2446 = vmatpush.bf16.msrb.mxu3 %v4830_v22  ;;  %v5005_v0 = vpop.f32.mrf.mxu1  ;;  %v3803_v22 = vld [vmem:[%s5562_s3 + $0x4c] sm:$0xf] }
 0x263   :  { %v3552_v43 = vor.u32 %v3803_v22, %v3549_v16  ;;  %v3704_v16 = vor.u32 %v3842_v38, %v3701_v46  ;;  %v3827_v46 = vld [vmem:[%s5562_s3 + $0x10c] sm:$0xf] }
 0x265   :  { %2547 = vmatmul.bf16.gmra.mxu1 %v3552_v43 }
 0x266   :  { %2447 = vmatpush.bf16.msrb.mxu3 %v4802_v62  ;;  %v3830_v62 = vld [vmem:[%s5562_s3 + $0x124] sm:$0xf] }
 0x267   :  { %v3656_v47 = vor.u32 %v3830_v62, %v3653_v20  ;;  %v5048_v18 = vpop.f32.mrf.mxu3  ;;  %v3819_v62 = vld [vmem:[%s5562_s3 + $0xcc] sm:$0xf] }
 0x268   :  { %5596 = vst [vmem:[#allocation19_spill] sm:$0xff] %v5048_v18  ;;  %v3616_v53 = vor.u32 %v3819_v62, %v3613_v3 }
 0x269   :  { %2399 = vmatmul.bf16.gmra.mxu2 %v3640_v59  ;;  %2448 = vmatmul.bf16.vlgmr.msrb.gmra.mxu3 %v3516_v63  ;;  %v3579_v59 = vld [vmem:[%s5562_s3 + $0x88] sm:$0xf] }
 0x26a   :  { %v5016_v32 = vpop.f32.mrf.mxu1 }
 0x26c   :  { %v2360_v34 = vpop.f32.mrf.mxu2 }
 0x26d   :  { %v5014_v27 = vadd.f32 %v2360_v34, %v4924_v14 }
 0x26f   :  { %v5073_v29 = vpop.f32.mrf.mxu3 }
 0x270   :  { %5597 = vst [vmem:[#allocation18_spill] sm:$0xff] %v5073_v29 }
 0x272   :  { %v5035_v51 = vpop.f32.mrf.mxu1 }
 0x274   :  { %v2362_v14 = vpop.f32.mrf.mxu2 }
 0x275   :  { %v5031_v19 = vadd.f32 %v2362_v14, %v4928_v55  ;;  %2552 = vmatmul.bf16.gmra.mxu1 %v3568_v35 }
 0x277   :  { %v5092_v41 = vpop.f32.mrf.mxu3 }
 0x278   :  { %5598 = vst [vmem:[#allocation17_spill] sm:$0xff] %v5092_v41  ;;  %v3839_v41 = vld [vmem:[%s5562_s3 + $0x16c] sm:$0xf] }
 0x279   :  { %2404 = vmatmul.bf16.gmra.mxu2 %v3656_v47  ;;  %2453 = vmatmul.bf16.gmra.mxu3 %v3532_v5  ;;  %v5140_v47 = vpop.permute.xlu1 %2810 }
 0x27a   :  { %v5046_v40 = vpop.f32.mrf.mxu1 }
 0x27c   :  { %v2365_v55 = vpop.f32.mrf.mxu2 }
 0x27d   :  { %v5044_v1 = vadd.f32 %v2365_v55, %v4944_v10  ;;  %v3805_v10 = vld [vmem:[%s5562_s3 + $0x54] sm:$0xf0]  ;;  %v3717_v55 = vld [vmem:[%s5562_s3 + $0x1b0] sm:$0xf0] }
 0x27e   :  { %v3548_v52 = vor.u32 %v3805_v10, %v3547_v13  ;;  %v3720_v13 = vor.u32 %v3846_v30, %v3717_v55  ;;  %v3854_v30 = vld [vmem:[%s5562_s3 + $0x1e4] sm:$0xf]  ;;  %v3749_v55 = vld [vmem:[%s5562_s3 + $0x1f0] sm:$0xf0] }
 0x27f   :  { %v5108_v48 = vpop.f32.mrf.mxu3 }
 0x280   :  { %5599 = vst [vmem:[#allocation16_spill] sm:$0xff] %v5108_v48 }
 0x281   :  { %v5170_v23 = vpop.permute.xlu1 %2801 }
 0x282   :  { %v5065_v6 = vpop.f32.mrf.mxu1 }
 0x284   :  { %v2367_v45 = vpop.f32.mrf.mxu2 }
 0x285   :  { %v5063_v39 = vadd.f32 %v2367_v45, %v4954_v49  ;;  %2557 = vmatmul.bf16.gmra.mxu1 %v3584_v17  ;;  %v5172_v17 = vpop.permute.xlu0 %2783 }
 0x287   :  { %v5132_v20 = vpop.f32.mrf.mxu3 }
 0x288   :  { %5600 = vst [vmem:[#allocation15_spill] sm:$0xff] %v5132_v20 }
 0x289   :  { %2409 = vmatmul.bf16.gmra.mxu2 %v3672_v24  ;;  %2458 = vmatmul.bf16.gmra.mxu3 %v3548_v52  ;;  %v3823_v24 = vld [vmem:[%s5562_s3 + $0xec] sm:$0xf]  ;;  %v3629_v52 = vld [vmem:[%s5562_s3 + $0xf8] sm:$0xf0] }
 0x28a   :  { %v5078_v2 = vpop.f32.mrf.mxu1  ;;  %v3632_v8 = vor.u32 %v3823_v24, %v3629_v52  ;;  %v3752_v24 = vor.u32 %v3854_v30, %v3749_v55  ;;  %v3643_v55 = vld [vmem:[%s5562_s3 + $0x108] sm:$0xf] }
 0x28c   :  { %v2370_v49 = vpop.f32.mrf.mxu2 }
 0x28d   :  { %v5076_v50 = vadd.f32 %v2370_v49, %v4962_v33  ;;  %v5196_v4 = vpop.permute.xlu0 %2738 }
 0x28f   :  { %v5149_v35 = vpop.f32.mrf.mxu3 }
 0x290   :  { %5601 = vst [vmem:[#allocation14_spill] sm:$0xff] %v5149_v35 }
 0x292   :  { %v5097_v57 = vpop.f32.mrf.mxu1 }
 0x294   :  { %v2372_v33 = vpop.f32.mrf.mxu2 }
 0x295   :  { %v5095_v15 = vadd.f32 %v2372_v33, %v4970_v54  ;;  %2562 = vmatmul.bf16.gmra.mxu1 %v3600_v9  ;;  %v3611_v33 = vld [vmem:[%s5562_s3 + $0xc8] sm:$0xf]  ;;  %v3736_v9 = vor.u32 %v3850_v21, %v3733_v44  ;;  %v5212_v3 = vpop.permute.xlu0 %2963  ;;  %v3831_v21 = vld [vmem:[%s5562_s3 + $0x12c] sm:$0xf] }
 0x296   :  { %5604 = vst [vmem:[#allocation11_spill] sm:$0xff] %v5212_v3  ;;  %v3677_v3 = vld [vmem:[%s5562_s3 + $0x158] sm:$0xf0] }
 0x297   :  { %v5174_v49 = vpop.f32.mrf.mxu3 }
 0x298   :  { %5602 = vst [vmem:[#allocation13_spill] sm:$0xff] %v5174_v49 }
 0x299   :  { %2414 = vmatmul.bf16.gmra.mxu2 %v3688_v7  ;;  %2463 = vmatmul.bf16.gmra.mxu3 %v3564_v60  ;;  %v3821_v7 = vld [vmem:[%s5562_s3 + $0xd4] sm:$0xf0]  ;;  %v5192_v60 = vpop.permute.xlu1 %2756 }
 0x29a   :  { %v5110_v26 = vpop.f32.mrf.mxu1 }
 0x29c   :  { %v2375_v36 = vpop.f32.mrf.mxu2 }
 0x29d   :  { %v5106_v54 = vadd.f32 %v2375_v36, %v4979_v31  ;;  %v3813_v31 = vld [vmem:[%s5562_s3 + $0x94] sm:$0xf0]  ;;  %v3612_v36 = vor.u32 %v3821_v7, %v3611_v33  ;;  %v3661_v33 = vld [vmem:[%s5562_s3 + $0x138] sm:$0xf0]  ;;  %v5242_v7 = vpop.permute.xlu0 %2936 }
 0x29e   :  { %v3580_v43 = vor.u32 %v3813_v31, %v3579_v59  ;;  %v3645_v59 = vld [vmem:[%s5562_s3 + $0x118] sm:$0xf0]  ;;  %5606 = vst [vmem:[#allocation8_spill] sm:$0xff] %v5242_v7 }
 0x29f   :  { %v5198_v38 = vpop.f32.mrf.mxu3 }
 0x2a0   :  { %5603 = vst [vmem:[#allocation12_spill] sm:$0xff] %v5198_v38 }
 0x2a1   :  { %v5210_v62 = vpop.permute.xlu1 %2747 }
 0x2a2   :  { %v5127_v34 = vpop.f32.mrf.mxu1 }
 0x2a4   :  { %v2377_v63 = vpop.f32.mrf.mxu2 }
 0x2a5   :  { %v5125_v22 = vadd.f32 %v2377_v63, %v4989_v12  ;;  %2567 = vmatmul.bf16.gmra.mxu1 %v3616_v53  ;;  %v3648_v63 = vor.u32 %v3827_v46, %v3645_v59 }
 0x2a7   :  { %v5214_v53 = vpop.f32.mrf.mxu3 }
 0x2a8   :  { %5605 = vst [vmem:[#allocation9_spill] sm:$0xff] %v5214_v53 }
 0x2a9   :  { %2419 = vmatmul.bf16.gmra.mxu2 %v3704_v16  ;;  %2468 = vmatmul.bf16.gmra.mxu3 %v3580_v43  ;;  %v5206_v16 = vpop.permute.xlu2 %2819 }
 0x2aa   :  { %v5142_v5 = vpop.f32.mrf.mxu1 }
 0x2ac   :  { %v2380_v12 = vpop.f32.mrf.mxu2 }
 0x2ad   :  { %v5138_v14 = vadd.f32 %v2380_v12, %v5005_v0  ;;  %v3595_v0 = vld [vmem:[%s5562_s3 + $0xa8] sm:$0xf] }
 0x2ae   :  { %v3596_v10 = vor.u32 %v3817_v58, %v3595_v0  ;;  %v3627_v0 = vld [vmem:[%s5562_s3 + $0xe8] sm:$0xf]  ;;  %v3825_v58 = vld [vmem:[%s5562_s3 + $0xf4] sm:$0xf0] }
 0x2af   :  { %v3628_v52 = vor.u32 %v3825_v58, %v3627_v0  ;;  %v3829_v0 = vld [vmem:[%s5562_s3 + $0x114] sm:$0xf0]  ;;  %v5260_v58 = vpop.permute.xlu0 %2711 }
 0x2b2   :  { %v5162_v45 = vpop.f32.mrf.mxu1 }
 0x2b4   :  { %v5160_v37 = vpop.f32.mrf.mxu2 }
 0x2b5   :  { %2572 = vmatmul.bf16.gmra.mxu1 %v3632_v8  ;;  %v5232_v8 = vpop.permute.xlu1 %2720 }
 0x2b9   :  { %2424 = vmatmul.bf16.gmra.mxu2 %v3720_v13  ;;  %2473 = vmatmul.bf16.gmra.mxu3 %v3596_v10  ;;  %v5230_v10 = vpop.permute.xlu2 %2774 }
 0x2ba   :  { %v5178_v25 = vpop.f32.mrf.mxu1 }
 0x2bc   :  { %v5176_v28 = vpop.f32.mrf.mxu2 }
 0x2bd   :  { %v5252_v30 = vpop.permute.xlu1 %2945 }
 0x2be   :  { %5608 = vst [vmem:[#allocation6_spill] sm:$0xff] %v5252_v30  ;;  %v2685_v30 = vpop.permute.xlu0 %2684 }
 0x2bf   :  { %v2690_v53 = vperm.slane %v2685_v30, %v4277_v61 }
 0x2c1   :  { %v5248_v59 = vpop.permute.xlu2 %2765 }
 0x2c2   :  { %v2538_v31 = vpop.f32.mrf.mxu1 }
 0x2c4   :  { %v5194_v56 = vpop.f32.mrf.mxu2 }
 0x2c5   :  { %2577 = vmatmul.bf16.gmra.mxu1 %v3648_v63  ;;  %v5276_v35 = vpop.permute.xlu1 %2918 }
 0x2c6   :  { %5611 = vst [vmem:[#allocation21_spill] sm:$0xff] %v5276_v35 }
 0x2c9   :  { %2429 = vmatmul.bf16.gmra.mxu2 %v3736_v9  ;;  %2478 = vmatmul.bf16.gmra.mxu3 %v3612_v36  ;;  %v3664_v9 = vor.u32 %v3831_v21, %v3661_v33  ;;  %v5244_v36 = vpop.f32.mrf.mxu3  ;;  %v3644_v21 = vor.u32 %v3829_v0, %v3643_v55  ;;  %v3835_v33 = vld [vmem:[%s5562_s3 + $0x14c] sm:$0xf]  ;;  %v5274_v20 = vpop.permute.xlu2 %2954 }
 0x2ca   :  { %v2540_v12 = vpop.f32.mrf.mxu1  ;;  %5607 = vst [vmem:[#allocation10_spill] sm:$0xff] %v5244_v36  ;;  %v3680_v36 = vor.u32 %v3835_v33, %v3677_v3  ;;  %v3659_v3 = vld [vmem:[%s5562_s3 + $0x128] sm:$0xf] }
 0x2cb   :  { %5610 = vst [vmem:[#allocation20_spill] sm:$0xff] %v5274_v20 }
 0x2cc   :  { %v5208_v43 = vpop.f32.mrf.mxu2 }
 0x2d2   :  { %v5237_v44 = vpop.f32.mrf.mxu1 }
 0x2d4   :  { %v5228_v13 = vpop.f32.mrf.mxu2 }
 0x2d5   :  { %2582 = vmatmul.bf16.gmra.mxu1 %v3664_v9 }
 0x2d9   :  { %2434 = vmatmul.bf16.gmra.mxu2 %v3752_v24  ;;  %2483 = vmatmul.bf16.gmra.mxu3 %v3628_v52  ;;  %v5262_v24 = vpop.f32.mrf.mxu3 }
 0x2da   :  { %v5250_v63 = vpop.f32.mrf.mxu1  ;;  %5609 = vst [vmem:[#allocation7_spill] sm:$0xff] %v5262_v24 }
 0x2dc   :  { %v5246_v46 = vpop.f32.mrf.mxu2 }
 0x2e2   :  { %v5269_v9 = vpop.f32.mrf.mxu1 }
 0x2e4   :  { %v5264_v52 = vpop.f32.mrf.mxu2 }
 0x2e5   :  { %2587 = vmatmul.bf16.gmra.mxu1 %v3680_v36  ;;  %v3833_v36 = vld [vmem:[%s5562_s3 + $0x134] sm:$0xf0] }
 0x2e6   :  { %v3660_v30 = vor.u32 %v3833_v36, %v3659_v3 }
 0x2e9   :  { %2488 = vmatmul.bf16.gmra.mxu3 %v3644_v21  ;;  %v5291_v21 = vpop.permute.xlu2 %2729 }
 0x2ea   :  { %v5283_v38 = vpop.f32.mrf.mxu1 }
 0x2ec   :  { %v2400_v24 = vpop.f32.mrf.mxu2  ;;  %v2449_v49 = vpop.f32.mrf.mxu3 }
 0x2ed   :  { %v5279_v55 = vadd.f32 %v2400_v24, %v5127_v34  ;;  %v2450_v0 = vadd.f32 %v2449_v49, %v5014_v27  ;;  %v3002_v34 = vunpack.c.l.bf16 %v2690_v53 }
 0x2ef   :  { %v2539_v7 = vadd.f32 %v2538_v31, %v2450_v0  ;;  %v2694_v0 = vpop.permute.xlu1 %2693 }
 0x2f0   :  { %v2699_v35 = vperm.slane %v2694_v0, %v4277_v61 }
 0x2f1   :  { %v2618_v48 = vpack.c.bf16 %v2539_v7, %v2539_v7 }
 0x2f2   :  { %v5301_v53 = vpop.f32.mrf.mxu1 }
 0x2f3   :  { %v2970_v24 = vunpack.c.l.bf16 %v2618_v48  ;;  %v3693_v48 = vld [vmem:[%s5562_s3 + $0x178] sm:$0xf0] }
 0x2f4   :  { %v2402_v27 = vpop.f32.mrf.mxu2  ;;  %v2451_v49 = vpop.f32.mrf.mxu3 }
 0x2f5   :  { %v3034_v33 = vadd.f32 %v3002_v34, %v2970_v24  ;;  %v5294_v31 = vadd.f32 %v2402_v27, %v5142_v5  ;;  %v2452_v7 = vadd.f32 %v2451_v49, %v5031_v19  ;;  %v3696_v34 = vor.u32 %v3839_v41, %v3693_v48 }
 0x2f6   :  { %v3003_v19 = vunpack.c.l.bf16 %v2699_v35 }
 0x2f7   :  { %v2541_v20 = vadd.f32 %v2540_v12, %v2452_v7  ;;  %v3066_v29 = vpack.c.bf16 %v3034_v33, %v3034_v33  ;;  %2592 = vmatmul.bf16.gmra.mxu1 %v3696_v34  ;;  %v2703_v7 = vpop.permute.xlu2 %2702 }
 0x2f8   :  { %v2708_v0 = vperm.slane %v2703_v7, %v4277_v61  ;;  %v2717_v7 = vperm.slane %v5260_v58, %v4277_v61 }
 0x2f9   :  { %v2619_v5 = vpack.c.bf16 %v2541_v20, %v2541_v20  ;;  %2493 = vmatmul.bf16.gmra.mxu3 %v3660_v30  ;;  %v3098_v36 = vunpack.c.l.bf16 %v3066_v29  ;;  %v3675_v29 = vld [vmem:[%s5562_s3 + $0x148] sm:$0xf] }
 0x2fa   :  { %v5312_v30 = vpop.f32.mrf.mxu1 }
 0x2fb   :  { %v2971_v3 = vunpack.c.l.bf16 %v2619_v5  ;;  %v3130_v41 = vmul.f32 0.20019531, %v3098_v36 }
 0x2fc   :  { %v2405_v24 = vpop.f32.mrf.mxu2  ;;  %v2454_v12 = vpop.f32.mrf.mxu3 }
 0x2fd   :  { %v3035_v27 = vadd.f32 %v3003_v19, %v2971_v3  ;;  %v5307_v49 = vadd.f32 %v2405_v24, %v5162_v45  ;;  %v2455_v33 = vadd.f32 %v2454_v12, %v5044_v1  ;;  %v3837_v45 = vld [vmem:[%s5562_s3 + $0x154] sm:$0xf0]  ;;  %v3004_v1 = vunpack.c.l.bf16 %v2708_v0  ;;  %v3843_v0 = vld [vmem:[%s5562_s3 + $0x18c] sm:$0xf] }
 0x2fe   :  { %v3676_v24 = vor.u32 %v3837_v45, %v3675_v29 }
 0x2ff   :  { %v3067_v18 = vpack.c.bf16 %v3035_v27, %v3035_v27  ;;  %v2544_v20 = vadd.f32 %v5237_v44, %v2455_v33  ;;  %v3226_v44 = vmax.f32 %v3098_v36, %v3130_v41 }
 0x301   :  { %v3099_v35 = vunpack.c.l.bf16 %v3067_v18  ;;  %v2620_v48 = vpack.c.bf16 %v2544_v20, %v2544_v20 }
 0x302   :  { %v5332_v29 = vpop.f32.mrf.mxu1 }
 0x303   :  { %v2972_v5 = vunpack.c.l.bf16 %v2620_v48  ;;  %v3131_v34 = vmul.f32 0.20019531, %v3099_v35 }
 0x304   :  { %v2407_v19 = vpop.f32.mrf.mxu2  ;;  %v2456_v3 = vpop.f32.mrf.mxu3 }
 0x305   :  { %v3036_v12 = vadd.f32 %v3004_v1, %v2972_v5  ;;  %v5321_v27 = vadd.f32 %v2407_v19, %v5178_v25  ;;  %v2457_v18 = vadd.f32 %v2456_v3, %v5063_v39  ;;  %v3227_v33 = vmax.f32 %v3099_v35, %v3131_v34  ;;  %v3709_v25 = vld [vmem:[%s5562_s3 + $0x198] sm:$0xf0] }
 0x306   :  { %v3712_v41 = vor.u32 %v3843_v0, %v3709_v25  ;;  %v3005_v35 = vunpack.c.l.bf16 %v2717_v7  ;;  %v2726_v34 = vperm.slane %v5232_v8, %v4277_v61 }
 0x307   :  { %v2546_v20 = vadd.f32 %v5250_v63, %v2457_v18  ;;  %v5330_v48 = vpack.c.bf16 %v3227_v33, %v3226_v44  ;;  %v3068_v36 = vpack.c.bf16 %v3036_v12, %v3036_v12  ;;  %v3841_v33 = vld [vmem:[%s5562_s3 + $0x174] sm:$0xf0] }
 0x308   :  { %2597 = vmatmul.bf16.gmra.mxu1 %v3712_v41 }
 0x309   :  { %v2621_v39 = vpack.c.bf16 %v2546_v20, %v2546_v20  ;;  %2498 = vmatmul.bf16.gmra.mxu3 %v3676_v24  ;;  %v3100_v45 = vunpack.c.l.bf16 %v3068_v36  ;;  %v3691_v24 = vld [vmem:[%s5562_s3 + $0x168] sm:$0xf] }
 0x30a   :  { %v5341_v44 = vpop.f32.mrf.mxu1  ;;  %v3692_v25 = vor.u32 %v3841_v33, %v3691_v24  ;;  %v2744_v33 = vperm.slane %v5196_v4, %v4277_v61 }
 0x30b   :  { %v2973_v58 = vunpack.c.l.bf16 %v2621_v39  ;;  %v3132_v7 = vmul.f32 0.20019531, %v3100_v45 }
 0x30c   :  { %v2459_v63 = vpop.f32.mrf.mxu3 }
 0x30d   :  { %v3037_v1 = vadd.f32 %v3005_v35, %v2973_v58  ;;  %v2460_v5 = vadd.f32 %v2459_v63, %v5076_v50  ;;  %v3006_v50 = vunpack.c.l.bf16 %v2726_v34  ;;  %v3228_v39 = vmax.f32 %v3100_v45, %v3132_v7  ;;  %v3847_v63 = vld [vmem:[%s5562_s3 + $0x1ac] sm:$0xf]  ;;  %v3725_v34 = vld [vmem:[%s5562_s3 + $0x1b8] sm:$0xf0] }
 0x30e   :  { %v2735_v35 = vperm.slane %v5291_v21, %v4277_v61 }
 0x30f   :  { %v3069_v19 = vpack.c.bf16 %v3037_v1, %v3037_v1  ;;  %v2549_v3 = vadd.f32 %v5269_v9, %v2460_v5 }
 0x311   :  { %v3101_v12 = vunpack.c.l.bf16 %v3069_v19  ;;  %v2622_v18 = vpack.c.bf16 %v2549_v3, %v2549_v3  ;;  %v3728_v19 = vor.u32 %v3847_v63, %v3725_v34  ;;  %v3007_v3 = vunpack.c.l.bf16 %v2735_v35 }
 0x312   :  { %v5358_v5 = vpop.f32.mrf.mxu1 }
 0x313   :  { %v2974_v20 = vunpack.c.l.bf16 %v2622_v18  ;;  %v3133_v0 = vmul.f32 0.20019531, %v3101_v12 }
 0x314   :  { %v2461_v8 = vpop.f32.mrf.mxu3 }
 0x315   :  { %v3038_v36 = vadd.f32 %v3006_v50, %v2974_v20  ;;  %v2462_v9 = vadd.f32 %v2461_v8, %v5095_v15  ;;  %v3229_v41 = vmax.f32 %v3101_v12, %v3133_v0 }
 0x317   :  { %v2551_v58 = vadd.f32 %v5283_v38, %v2462_v9  ;;  %v5356_v1 = vpack.c.bf16 %v3229_v41, %v3228_v39  ;;  %v3070_v15 = vpack.c.bf16 %v3038_v36, %v3038_v36  ;;  %v3845_v36 = vld [vmem:[%s5562_s3 + $0x194] sm:$0xf0] }
 0x318   :  { %2602 = vmatmul.bf16.gmra.mxu1 %v3728_v19  ;;  %v3851_v19 = vld [vmem:[%s5562_s3 + $0x1cc] sm:$0xf] }
 0x319   :  { %v2623_v45 = vpack.c.bf16 %v2551_v58, %v2551_v58  ;;  %2503 = vmatmul.bf16.gmra.mxu3 %v3692_v25  ;;  %v3102_v12 = vunpack.c.l.bf16 %v3070_v15  ;;  %v3707_v25 = vld [vmem:[%s5562_s3 + $0x188] sm:$0xf]  ;;  %v2753_v15 = vperm.slane %v5210_v62, %v4277_v61 }
 0x31a   :  { %v5367_v20 = vpop.f32.mrf.mxu1  ;;  %v3708_v35 = vor.u32 %v3845_v36, %v3707_v25 }
 0x31b   :  { %v2975_v21 = vunpack.c.l.bf16 %v2623_v45  ;;  %v3134_v9 = vmul.f32 0.20019531, %v3102_v12 }
 0x31c   :  { %v2464_v38 = vpop.f32.mrf.mxu3 }
 0x31d   :  { %v3039_v18 = vadd.f32 %v3007_v3, %v2975_v21  ;;  %v2465_v24 = vadd.f32 %v2464_v38, %v5106_v54  ;;  %v3008_v54 = vunpack.c.l.bf16 %v2744_v33  ;;  %v3230_v63 = vmax.f32 %v3102_v12, %v3134_v9  ;;  %v3741_v38 = vld [vmem:[%s5562_s3 + $0x1d8] sm:$0xf0] }
 0x31f   :  { %v3071_v7 = vpack.c.bf16 %v3039_v18, %v3039_v18  ;;  %v2554_v50 = vadd.f32 %v5301_v53, %v2465_v24  ;;  %v3744_v18 = vor.u32 %v3851_v19, %v3741_v38  ;;  %v3009_v24 = vunpack.c.l.bf16 %v2753_v15 }
 0x320   :  { %v2771_v19 = vperm.slane %v5248_v59, %v4277_v61  ;;  %v2386_v59 = vadd.f32 %v5176_v28, %v5035_v51  ;;  %v3739_v51 = vld [vmem:[%s5562_s3 + $0x1c8] sm:$0xf]  ;;  %v3853_v28 = vld [vmem:[%s5562_s3 + $0x1d4] sm:$0xf0] }
 0x321   :  { %v3103_v0 = vunpack.c.l.bf16 %v3071_v7  ;;  %v2624_v8 = vpack.c.bf16 %v2554_v50, %v2554_v50 }
 0x322   :  { %v5384_v21 = vpop.f32.mrf.mxu1 }
 0x323   :  { %v2976_v39 = vunpack.c.l.bf16 %v2624_v8  ;;  %v3135_v41 = vmul.f32 0.20019531, %v3103_v0 }
 0x324   :  { %v2466_v4 = vpop.f32.mrf.mxu3 }
 0x325   :  { %v3040_v58 = vadd.f32 %v3008_v54, %v2976_v39  ;;  %v2467_v53 = vadd.f32 %v2466_v4, %v5125_v22  ;;  %v3231_v34 = vmax.f32 %v3103_v0, %v3135_v41  ;;  %v2762_v0 = vperm.slane %v5192_v60, %v4277_v61  ;;  %v3723_v54 = vld [vmem:[%s5562_s3 + $0x1a8] sm:$0xf]  ;;  %v3849_v39 = vld [vmem:[%s5562_s3 + $0x1b4] sm:$0xf0] }
 0x326   :  { %v2383_v60 = vadd.f32 %v5160_v37, %v5016_v32  ;;  %v3757_v32 = vld [vmem:[%s5562_s3 + $0x1f8] sm:$0xf0] }
 0x327   :  { %v2556_v45 = vadd.f32 %v5312_v30, %v2467_v53  ;;  %v5382_v3 = vpack.c.bf16 %v3231_v34, %v3230_v63  ;;  %v3072_v22 = vpack.c.bf16 %v3040_v58, %v3040_v58  ;;  %v3724_v53 = vor.u32 %v3849_v39, %v3723_v54 }
 0x328   :  { %2607 = vmatmul.bf16.gmra.mxu1 %v3744_v18 }
 0x329   :  { %v2625_v12 = vpack.c.bf16 %v2556_v45, %v2556_v45  ;;  %2508 = vmatmul.bf16.gmra.mxu3 %v3708_v35  ;;  %v3104_v33 = vunpack.c.l.bf16 %v3072_v22  ;;  %v3855_v22 = vld [vmem:[%s5562_s3 + $0x1ec] sm:$0xf] }
 0x32a   :  { %v5399_v4 = vpop.f32.mrf.mxu1 }
 0x32b   :  { %v2977_v62 = vunpack.c.l.bf16 %v2625_v12  ;;  %v3136_v41 = vmul.f32 0.20019531, %v3104_v33 }
 0x32c   :  { %v2469_v30 = vpop.f32.mrf.mxu3 }
 0x32d   :  { %v3041_v7 = vadd.f32 %v3009_v24, %v2977_v62  ;;  %v2470_v50 = vadd.f32 %v2469_v30, %v5138_v14  ;;  %v3010_v14 = vunpack.c.l.bf16 %v2762_v0  ;;  %v3232_v15 = vmax.f32 %v3104_v33, %v3136_v41 }
 0x32e   :  { %v3760_v24 = vor.u32 %v3855_v22, %v3757_v32  ;;  %v3011_v62 = vunpack.c.l.bf16 %v2771_v19 }
 0x32f   :  { %v3073_v8 = vpack.c.bf16 %v3041_v7, %v3041_v7  ;;  %v2559_v25 = vadd.f32 %v5332_v29, %v2470_v50 }
 0x331   :  { %v3105_v36 = vunpack.c.l.bf16 %v3073_v8  ;;  %v2626_v9 = vpack.c.bf16 %v2559_v25, %v2559_v25  ;;  %v2780_v8 = vperm.slane %v5230_v10, %v4277_v61 }
 0x332   :  { %v5416_v33 = vpop.f32.mrf.mxu1 }
 0x333   :  { %v2978_v35 = vunpack.c.l.bf16 %v2626_v9  ;;  %v3137_v58 = vmul.f32 0.20019531, %v3105_v36  ;;  %v3012_v41 = vunpack.c.l.bf16 %v2780_v8 }
 0x334   :  { %v2471_v29 = vpop.f32.mrf.mxu3 }
 0x335   :  { %v3042_v63 = vadd.f32 %v3010_v14, %v2978_v35  ;;  %v2472_v34 = vadd.f32 %v2471_v29, %v2383_v60  ;;  %v3233_v45 = vmax.f32 %v3105_v36, %v3137_v58  ;;  %v2388_v14 = vadd.f32 %v5194_v56, %v5046_v40 }
 0x336   :  { %v3740_v58 = vor.u32 %v3853_v28, %v3739_v51  ;;  %v2391_v56 = vadd.f32 %v5208_v43, %v5065_v6  ;;  %v3755_v6 = vld [vmem:[%s5562_s3 + $0x1e8] sm:$0xf]  ;;  %v3857_v43 = vld [vmem:[%s5562_s3 + $0x1f4] sm:$0xf0] }
 0x337   :  { %v2561_v38 = vadd.f32 %v5341_v44, %v2472_v34  ;;  %v5409_v12 = vpack.c.bf16 %v3233_v45, %v3232_v15  ;;  %v3074_v37 = vpack.c.bf16 %v3042_v63, %v3042_v63  ;;  %v2789_v15 = vperm.slane %v5172_v17, %v4277_v61 }
 0x338   :  { %2612 = vmatmul.bf16.gmra.mxu1 %v3760_v24  ;;  %v2798_v17 = vperm.slane %v5144_v42, %v4277_v61  ;;  %v2393_v42 = vadd.f32 %v5228_v13, %v5078_v2 }
 0x339   :  { %v2627_v18 = vpack.c.bf16 %v2561_v38, %v2561_v38  ;;  %2513 = vmatmul.bf16.gmra.mxu3 %v3724_v53  ;;  %v3106_v7 = vunpack.c.l.bf16 %v3074_v37  ;;  %v3013_v40 = vunpack.c.l.bf16 %v2789_v15  ;;  %v5438_v37 = vpop.permute.xlu2 %2927 }
 0x33a   :  { %v5429_v34 = vpop.f32.mrf.mxu1  ;;  %v3014_v8 = vunpack.c.l.bf16 %v2798_v17 }
 0x33b   :  { %v2979_v30 = vunpack.c.l.bf16 %v2627_v18  ;;  %v3138_v39 = vmul.f32 0.20019531, %v3106_v7 }
 0x33c   :  { %v2474_v44 = vpop.f32.mrf.mxu3 }
 0x33d   :  { %v3043_v50 = vadd.f32 %v3011_v62, %v2979_v30  ;;  %v2475_v0 = vadd.f32 %v2474_v44, %v2386_v59  ;;  %v3234_v53 = vmax.f32 %v3106_v7, %v3138_v39 }
 0x33f   :  { %v3075_v25 = vpack.c.bf16 %v3043_v50, %v3043_v50  ;;  %v2564_v36 = vadd.f32 %v5358_v5, %v2475_v0 }
 0x341   :  { %v3107_v9 = vunpack.c.l.bf16 %v3075_v25  ;;  %v2628_v54 = vpack.c.bf16 %v2564_v36, %v2564_v36 }
 0x342   :  { %v5443_v44 = vpop.f32.mrf.mxu1 }
 0x343   :  { %v2980_v60 = vunpack.c.l.bf16 %v2628_v54  ;;  %v3139_v10 = vmul.f32 0.20019531, %v3107_v9 }
 0x344   :  { %v2476_v35 = vpop.f32.mrf.mxu3 }
 0x345   :  { %v3044_v5 = vadd.f32 %v3012_v41, %v2980_v60  ;;  %v2477_v29 = vadd.f32 %v2476_v35, %v2388_v14  ;;  %v3235_v63 = vmax.f32 %v3107_v9, %v3139_v10  ;;  %v3756_v9 = vor.u32 %v3857_v43, %v3755_v6  ;;  %v5453_v41 = vpop.permute.xlu2 %2900  ;;  %v5460_v35 = vpop.permute.xlu1 %2882 }
 0x346   :  { %v2807_v14 = vperm.slane %v5170_v23, %v4277_v61  ;;  %v2816_v23 = vperm.slane %v5140_v47, %v4277_v61 }
 0x347   :  { %v2566_v45 = vadd.f32 %v5367_v20, %v2477_v29  ;;  %v5434_v19 = vpack.c.bf16 %v3235_v63, %v3234_v53  ;;  %v3076_v38 = vpack.c.bf16 %v3044_v5, %v3044_v5  ;;  %v2396_v29 = vadd.f32 %v5246_v46, %v5097_v57 }
 0x348   :  { %v3015_v5 = vunpack.c.l.bf16 %v2807_v14  ;;  %v2398_v57 = vadd.f32 %v5264_v52, %v5110_v26  ;;  %v5479_v14 = vpop.permute.xlu0 %2909 }
 0x349   :  { %v2629_v22 = vpack.c.bf16 %v2566_v45, %v2566_v45  ;;  %2518 = vmatmul.bf16.gmra.mxu3 %v3740_v58  ;;  %v3108_v24 = vunpack.c.l.bf16 %v3076_v38 }
 0x34a   :  { %v2580_v58 = vpop.f32.mrf.mxu1 }
 0x34b   :  { %v2981_v32 = vunpack.c.l.bf16 %v2629_v22  ;;  %v3140_v0 = vmul.f32 0.20019531, %v3108_v24 }
 0x34c   :  { %v2479_v18 = vpop.f32.mrf.mxu3 }
 0x34d   :  { %v3045_v62 = vadd.f32 %v3013_v40, %v2981_v32  ;;  %v2480_v59 = vadd.f32 %v2479_v18, %v2391_v56  ;;  %v3236_v28 = vmax.f32 %v3108_v24, %v3140_v0  ;;  %v5467_v40 = vpop.permute.xlu2 %2891  ;;  %v5469_v24 = vpop.permute.xlu1 %2873 }
 0x34f   :  { %v3077_v20 = vpack.c.bf16 %v3045_v62, %v3045_v62  ;;  %v2569_v30 = vadd.f32 %v5384_v21, %v2480_v59  ;;  %v3016_v62 = vunpack.c.l.bf16 %v2816_v23 }
 0x351   :  { %v3109_v7 = vunpack.c.l.bf16 %v3077_v20  ;;  %v2630_v50 = vpack.c.bf16 %v2569_v30, %v2569_v30 }
 0x352   :  { %v2583_v20 = vpop.f32.mrf.mxu1 }
 0x353   :  { %v2982_v25 = vunpack.c.l.bf16 %v2630_v50  ;;  %v3141_v36 = vmul.f32 0.20019531, %v3109_v7 }
 0x354   :  { %v2481_v21 = vpop.f32.mrf.mxu3 }
 0x355   :  { %v3046_v54 = vadd.f32 %v3014_v8, %v2982_v25  ;;  %v2482_v51 = vadd.f32 %v2481_v21, %v2393_v42  ;;  %v3237_v39 = vmax.f32 %v3109_v7, %v3141_v36  ;;  %v2847_v42 = vpop.permute.xlu2 %2846  ;;  %v2829_v26 = vpop.permute.xlu1 %2828 }
 0x357   :  { %v2571_v60 = vadd.f32 %v5399_v4, %v2482_v51  ;;  %v5458_v10 = vpack.c.bf16 %v3237_v39, %v3236_v28  ;;  %v3078_v2 = vpack.c.bf16 %v3046_v54, %v3046_v54  ;;  %v2834_v28 = vperm.slane %v2829_v26, %v4277_v61 }
 0x359   :  { %v2631_v13 = vpack.c.bf16 %v2571_v60, %v2571_v60  ;;  %2523 = vmatmul.bf16.gmra.mxu3 %v3756_v9  ;;  %v3110_v15 = vunpack.c.l.bf16 %v3078_v2 }
 0x35a   :  { %v2585_v51 = vpop.f32.mrf.mxu1 }
 0x35b   :  { %v2983_v53 = vunpack.c.l.bf16 %v2631_v13  ;;  %v3142_v18 = vmul.f32 0.20019531, %v3110_v15 }
 0x35c   :  { %v2484_v63 = vpop.f32.mrf.mxu3 }
 0x35d   :  { %v3047_v45 = vadd.f32 %v3015_v5, %v2983_v53  ;;  %v2485_v38 = vadd.f32 %v2484_v63, %v2396_v29  ;;  %v3238_v7 = vmax.f32 %v3110_v15, %v3142_v18  ;;  %v3018_v5 = vunpack.c.l.bf16 %v2834_v28  ;;  %v2838_v63 = vpop.permute.xlu2 %2837 }
 0x35f   :  { %v3079_v4 = vpack.c.bf16 %v3047_v45, %v3047_v45  ;;  %v2574_v22 = vadd.f32 %v5416_v33, %v2485_v38  ;;  %v2825_v33 = vperm.slane %v5206_v16, %v4277_v61 }
 0x361   :  { %v3111_v56 = vunpack.c.l.bf16 %v3079_v4  ;;  %v2632_v32 = vpack.c.bf16 %v2574_v22, %v2574_v22  ;;  %v3017_v25 = vunpack.c.l.bf16 %v2825_v33  ;;  %v2843_v4 = vperm.slane %v2838_v63, %v4277_v61 }
 0x363   :  { %v2984_v46 = vunpack.c.l.bf16 %v2632_v32  ;;  %v3143_v59 = vmul.f32 0.20019531, %v3111_v56 }
 0x364   :  { %v2486_v17 = vpop.f32.mrf.mxu3 }
 0x365   :  { %v3048_v30 = vadd.f32 %v3016_v62, %v2984_v46  ;;  %v2487_v47 = vadd.f32 %v2486_v17, %v2398_v57  ;;  %v3239_v50 = vmax.f32 %v3111_v56, %v3143_v59  ;;  %v2588_v56 = vpop.f32.mrf.mxu1  ;;  %v2865_v62 = vpop.permute.xlu0 %2864  ;;  %v3019_v57 = vunpack.c.l.bf16 %v2843_v4 }
 0x366   :  { %v2870_v63 = vperm.slane %v2865_v62, %v4277_v61 }
 0x367   :  { %v2576_v6 = vadd.f32 %v5429_v34, %v2487_v47  ;;  %v3264_v43 = vpack.c.bf16 %v3239_v50, %v3238_v7  ;;  %v3080_v0 = vpack.c.bf16 %v3048_v30, %v3048_v30  ;;  %v2410_v34 = vpop.f32.mrf.mxu2 }
 0x369   :  { %v2633_v8 = vpack.c.bf16 %v2576_v6, %v2576_v6  ;;  %v3112_v21 = vunpack.c.l.bf16 %v3080_v0 }
 0x36b   :  { %v2985_v36 = vunpack.c.l.bf16 %v2633_v8  ;;  %v3144_v60 = vmul.f32 0.20019531, %v3112_v21 }
 0x36c   :  { %v2489_v52 = vpop.f32.mrf.mxu3 }
 0x36d   :  { %v3049_v9 = vadd.f32 %v3017_v25, %v2985_v36  ;;  %v2490_v54 = vadd.f32 %v2489_v52, %v5279_v55  ;;  %v3240_v45 = vmax.f32 %v3112_v21, %v3144_v60  ;;  %v2590_v8 = vpop.f32.mrf.mxu1  ;;  %v2856_v52 = vpop.permute.xlu0 %2855 }
 0x36f   :  { %v3081_v39 = vpack.c.bf16 %v3049_v9, %v3049_v9  ;;  %v2579_v16 = vadd.f32 %v5443_v44, %v2490_v54  ;;  %v2412_v46 = vpop.f32.mrf.mxu2 }
 0x371   :  { %v3113_v2 = vunpack.c.l.bf16 %v3081_v39  ;;  %v2634_v13 = vpack.c.bf16 %v2579_v16, %v2579_v16 }
 0x373   :  { %v3145_v29 = vmul.f32 0.20019531, %v3113_v2  ;;  %v2986_v53 = vunpack.c.l.bf16 %v2634_v13 }
 0x374   :  { %v2491_v15 = vpop.f32.mrf.mxu3 }
 0x375   :  { %v3241_v38 = vmax.f32 %v3113_v2, %v3145_v29  ;;  %v3050_v55 = vadd.f32 %v3018_v5, %v2986_v53  ;;  %v2492_v23 = vadd.f32 %v2491_v15, %v5294_v31  ;;  %v2852_v31 = vperm.slane %v2847_v42, %v4277_v61  ;;  %v2593_v29 = vpop.f32.mrf.mxu1 }
 0x376   :  { %v2411_v2 = vadd.f32 %v2410_v34, %v5033_v11  ;;  %v5612_v11 = vld [vmem:[#allocation19_spill] sm:$0xff] }
 0x377   :  { %v2581_v22 = vadd.f32 %v2580_v58, %v2492_v23  ;;  %v3265_v44 = vpack.c.bf16 %v3241_v38, %v3240_v45  ;;  %v3082_v32 = vpack.c.bf16 %v3050_v55, %v3050_v55  ;;  %v3020_v25 = vunpack.c.l.bf16 %v2852_v31  ;;  %v2415_v9 = vpop.f32.mrf.mxu2 }
 0x378   :  { %v2413_v34 = vadd.f32 %v2412_v46, %v5612_v11 }
 0x379   :  { %v2635_v18 = vpack.c.bf16 %v2581_v22, %v2581_v22  ;;  %3283 = vmatpush.bf16.msra.mxu3 %v3265_v44  ;;  %v3114_v30 = vunpack.c.l.bf16 %v3082_v32 }
 0x37b   :  { %v2987_v59 = vunpack.c.l.bf16 %v2635_v18  ;;  %v3146_v58 = vmul.f32 0.20019531, %v3114_v30 }
 0x37c   :  { %v2494_v17 = vpop.f32.mrf.mxu3 }
 0x37d   :  { %v3051_v47 = vadd.f32 %v3019_v57, %v2987_v59  ;;  %v2495_v7 = vadd.f32 %v2494_v17, %v5307_v49  ;;  %3284 = vmatpush.bf16.msra.mxu3 %v3264_v43  ;;  %v3242_v43 = vmax.f32 %v3114_v30, %v3146_v58  ;;  %v2595_v57 = vpop.f32.mrf.mxu1 }
 0x37f   :  { %v3083_v50 = vpack.c.bf16 %v3051_v47, %v3051_v47  ;;  %v2584_v33 = vadd.f32 %v2583_v20, %v2495_v7  ;;  %v2861_v20 = vperm.slane %v2856_v52, %v4277_v61  ;;  %v5613_v7 = vld [vmem:[#allocation18_spill] sm:$0xff] }
 0x380   :  { %v2416_v31 = vadd.f32 %v2415_v9, %v5613_v7 }
 0x381   :  { %v3115_v6 = vunpack.c.l.bf16 %v3083_v50  ;;  %v2636_v0 = vpack.c.bf16 %v2584_v33, %v2584_v33  ;;  %3285 = vmatpush.bf16.msra.mxu3 %v5458_v10  ;;  %v3021_v60 = vunpack.c.l.bf16 %v2861_v20 }
 0x383   :  { %v3147_v36 = vmul.f32 0.20019531, %v3115_v6  ;;  %v2988_v26 = vunpack.c.l.bf16 %v2636_v0  ;;  %v2888_v0 = vperm.slane %v5460_v35, %v4277_v61  ;;  %v2897_v35 = vperm.slane %v5467_v40, %v4277_v61 }
 0x384   :  { %v2496_v21 = vpop.f32.mrf.mxu3 }
 0x385   :  { %v3052_v54 = vadd.f32 %v3020_v25, %v2988_v26  ;;  %v2497_v49 = vadd.f32 %v2496_v21, %v5321_v27  ;;  %3286 = vmatpush.bf16.msra.mxu3 %v5434_v19  ;;  %v3243_v42 = vmax.f32 %v3115_v6, %v3147_v36  ;;  %v3024_v21 = vunpack.c.l.bf16 %v2888_v0 }
 0x387   :  { %v2586_v28 = vadd.f32 %v2585_v51, %v2497_v49  ;;  %v5489_v39 = vpack.c.bf16 %v3243_v42, %v3242_v43  ;;  %v3084_v10 = vpack.c.bf16 %v3052_v54, %v3052_v54  ;;  %v2417_v51 = vpop.f32.mrf.mxu2  ;;  %v5614_v54 = vld [vmem:[#allocation17_spill] sm:$0xff] }
 0x388   :  { %v2418_v49 = vadd.f32 %v2417_v51, %v5614_v54 }
 0x389   :  { %v2637_v16 = vpack.c.bf16 %v2586_v28, %v2586_v28  ;;  %3287 = vmatpush.bf16.msra.mxu3 %v5409_v12  ;;  %v3116_v27 = vunpack.c.l.bf16 %v3084_v10  ;;  %v3022_v12 = vunpack.c.l.bf16 %v2870_v63 }
 0x38b   :  { %v2989_v13 = vunpack.c.l.bf16 %v2637_v16  ;;  %v3148_v38 = vmul.f32 0.20019531, %v3116_v27 }
 0x38c   :  { %v2499_v5 = vpop.f32.mrf.mxu3 }
 0x38d   :  { %v3053_v53 = vadd.f32 %v3021_v60, %v2989_v13  ;;  %v2500_v19 = vadd.f32 %v2499_v5, %v2411_v2  ;;  %3288 = vmatpush.bf16.msra.mxu3 %v5382_v3  ;;  %v3244_v3 = vmax.f32 %v3116_v27, %v3148_v38 }
 0x38f   :  { %v3085_v15 = vpack.c.bf16 %v3053_v53, %v3053_v53  ;;  %v2589_v45 = vadd.f32 %v2588_v56, %v2500_v19  ;;  %v2879_v56 = vperm.slane %v5469_v24, %v4277_v61  ;;  %v2598_v24 = vpop.f32.mrf.mxu1  ;;  %v3025_v53 = vunpack.c.l.bf16 %v2897_v35  ;;  %v5615_v19 = vld [vmem:[#allocation16_spill] sm:$0xff]  ;;  %v5621_v35 = vld [vmem:[#allocation14_spill] sm:$0xff] }
 0x391   :  { %v3117_v55 = vunpack.c.l.bf16 %v3085_v15  ;;  %v2638_v23 = vpack.c.bf16 %v2589_v45, %v2589_v45  ;;  %3289 = vmatpush.bf16.msra.mxu3 %v5356_v1  ;;  %v2420_v1 = vpop.f32.mrf.mxu2  ;;  %v3023_v46 = vunpack.c.l.bf16 %v2879_v56 }
 0x392   :  { %v2421_v63 = vadd.f32 %v2420_v1, %v5615_v19 }
 0x393   :  { %v3149_v4 = vmul.f32 0.20019531, %v3117_v55  ;;  %v2990_v22 = vunpack.c.l.bf16 %v2638_v23 }
 0x394   :  { %v2501_v44 = vpop.f32.mrf.mxu3 }
 0x395   :  { %v3054_v32 = vadd.f32 %v3022_v12, %v2990_v22  ;;  %v2502_v18 = vadd.f32 %v2501_v44, %v2413_v34  ;;  %3290 = vmatpush.bf16.msra.mxu3 %v5330_v48  ;;  %v3245_v62 = vmax.f32 %v3117_v55, %v3149_v4 }
 0x397   :  { %v2591_v59 = vadd.f32 %v2590_v8, %v2502_v18  ;;  %v5500_v17 = vpack.c.bf16 %v3245_v62, %v3244_v3  ;;  %v3086_v30 = vpack.c.bf16 %v3054_v32, %v3054_v32  ;;  %v5512_v27 = vpop.f32.mrf.mxu1 }
 0x399   :  { %v2639_v47 = vpack.c.bf16 %v2591_v59, %v2591_v59  ;;  %v3118_v58 = vunpack.c.l.bf16 %v3086_v30  ;;  %v5506_v43 = vpop.f32.mrf.mxu2 }
 0x39b   :  { %v2991_v50 = vunpack.c.l.bf16 %v2639_v47  ;;  %v3150_v8 = vmul.f32 0.20019531, %v3118_v58  ;;  %v5616_v47 = vld [vmem:[#allocation12_spill] sm:$0xff] }
 0x39c   :  { %v2504_v33 = vpop.f32.mrf.mxu3 }
 0x39d   :  { %v3055_v6 = vadd.f32 %v3023_v46, %v2991_v50  ;;  %v2505_v48 = vadd.f32 %v2504_v33, %v2416_v31  ;;  %v3246_v16 = vmax.f32 %v3118_v58, %v3150_v8  ;;  %v5617_v33 = vld [vmem:[#allocation8_spill] sm:$0xff] }
 0x39e   :  { %v2942_v58 = vperm.slane %v5617_v33, %v4277_v61 }
 0x39f   :  { %v3087_v25 = vpack.c.bf16 %v3055_v6, %v3055_v6  ;;  %v2594_v36 = vadd.f32 %v2593_v29, %v2505_v48  ;;  %v2603_v44 = vpop.f32.mrf.mxu1 }
 0x3a1   :  { %v3119_v26 = vunpack.c.l.bf16 %v3087_v25  ;;  %v2640_v52 = vpack.c.bf16 %v2594_v36, %v2594_v36  ;;  %v2425_v45 = vpop.f32.mrf.mxu2  ;;  %v3030_v25 = vunpack.c.l.bf16 %v2942_v58  ;;  %v5618_v36 = vld [vmem:[#allocation9_spill] sm:$0xff] }
 0x3a3   :  { %v3151_v9 = vmul.f32 0.20019531, %v3119_v26  ;;  %v2992_v42 = vunpack.c.l.bf16 %v2640_v52 }
 0x3a4   :  { %v2506_v20 = vpop.f32.mrf.mxu3 }
 0x3a5   :  { %v3056_v28 = vadd.f32 %v3024_v21, %v2992_v42  ;;  %v2507_v10 = vadd.f32 %v2506_v20, %v2418_v49  ;;  %v3247_v60 = vmax.f32 %v3119_v26, %v3151_v9  ;;  %v5619_v49 = vld [vmem:[#allocation6_spill] sm:$0xff]  ;;  %v3274_v20 = vld [vmem:[%s5564_s5] sm:$0x3] }
 0x3a6   :  { %v2951_v9 = vperm.slane %v5619_v49, %v4277_v61  ;;  %3278 = vst [vmem:[#allocation1] ss:$9 sm:$0xff] %v3274_v20 }
 0x3a7   :  { %v2596_v2 = vadd.f32 %v2595_v57, %v2507_v10  ;;  %v5510_v13 = vpack.c.bf16 %v3247_v60, %v3246_v16  ;;  %v3088_v5 = vpack.c.bf16 %v3056_v28, %v3056_v28  ;;  %v2605_v56 = vpop.f32.mrf.mxu1  ;;  %v5620_v28 = vld [vmem:[#allocation13_spill] sm:$0xff] }
 0x3a9   :  { %v2641_v29 = vpack.c.bf16 %v2596_v2, %v2596_v2  ;;  %v3120_v38 = vunpack.c.l.bf16 %v3088_v5  ;;  %v2427_v3 = vpop.f32.mrf.mxu2  ;;  %v2426_v2 = vadd.f32 %v2425_v45, %v5621_v35  ;;  %v3031_v5 = vunpack.c.l.bf16 %v2951_v9 }
 0x3aa   :  { %v2428_v10 = vadd.f32 %v2427_v3, %v5620_v28 }
 0x3ab   :  { %v2993_v51 = vunpack.c.l.bf16 %v2641_v29  ;;  %v3152_v40 = vmul.f32 0.20019531, %v3120_v38  ;;  %v5622_v29 = vld [vmem:[#allocation10_spill] sm:$0xff] }
 0x3ac   :  { %v2509_v15 = vpop.f32.mrf.mxu3 }
 0x3ad   :  { %v3057_v55 = vadd.f32 %v3025_v53, %v2993_v51  ;;  %v2510_v23 = vadd.f32 %v2509_v15, %v2421_v63  ;;  %v3248_v32 = vmax.f32 %v3120_v38, %v3152_v40 }
 0x3af   :  { %v3089_v12 = vpack.c.bf16 %v3057_v55, %v3057_v55  ;;  %v5515_v11 = vadd.f32 %v2598_v24, %v2510_v23  ;;  %v2608_v30 = vpop.f32.mrf.mxu1  ;;  %v5623_v55 = vld [vmem:[#allocation15_spill] sm:$0xff] }
 0x3b0   :  { %v2423_v23 = vadd.f32 %v5506_v43, %v5623_v55 }
 0x3b1   :  { %v3121_v34 = vunpack.c.l.bf16 %v3089_v12  ;;  %v2430_v59 = vpop.f32.mrf.mxu2  ;;  %v2642_v28 = vpack.c.bf16 %v5515_v11, %v5515_v11 }
 0x3b2   :  { %v2431_v46 = vadd.f32 %v2430_v59, %v5616_v47 }
 0x3b3   :  { %v3153_v4 = vmul.f32 0.20019531, %v3121_v34 }
 0x3b4   :  { %v2511_v22 = vpop.f32.mrf.mxu3 }
 0x3b5   :  { %v3249_v18 = vmax.f32 %v3121_v34, %v3153_v4  ;;  %v5624_v4 = vld [vmem:[#allocation20_spill] sm:$0xff]  ;;  %v2512_v3 = vadd.f32 %v2511_v22, %v2423_v23  ;;  %v2933_v22 = vperm.slane %v5438_v37, %v4277_v61  ;;  %v2915_v37 = vperm.slane %v5479_v14, %v4277_v61 }
 0x3b7   :  { %v5517_v62 = vpack.c.bf16 %v3249_v18, %v3248_v32  ;;  %v2610_v0 = vpop.f32.mrf.mxu1  ;;  %v2960_v32 = vperm.slane %v5624_v4, %v4277_v61  ;;  %v2601_v33 = vadd.f32 %v5512_v27, %v2512_v3  ;;  %v3029_v20 = vunpack.c.l.bf16 %v2933_v22 }
 0x3b9   :  { %v2432_v7 = vpop.f32.mrf.mxu2  ;;  %v2643_v27 = vpack.c.bf16 %v2601_v33, %v2601_v33 }
 0x3ba   :  { %v2433_v24 = vadd.f32 %v2432_v7, %v5618_v36 }
 0x3bc   :  { %v2514_v57 = vpop.f32.mrf.mxu3 }
 0x3bd   :  { %v2515_v51 = vadd.f32 %v2514_v57, %v2426_v2 }
 0x3bf   :  { %v2613_v38 = vpop.f32.mrf.mxu1  ;;  %v2604_v47 = vadd.f32 %v2603_v44, %v2515_v51  ;;  %v2994_v51 = vunpack.c.l.bf16 %v2642_v28 }
 0x3c1   :  { %v2435_v52 = vpop.f32.mrf.mxu2 }
 0x3c2   :  { %v2436_v53 = vadd.f32 %v2435_v52, %v5622_v29  ;;  %v5627_v52 = vld [vmem:[#allocation21_spill] sm:$0xff]  ;;  %v2995_v29 = vunpack.c.l.bf16 %v2643_v27 }
 0x3c4   :  { %v2516_v1 = vpop.f32.mrf.mxu3 }
 0x3c5   :  { %v2517_v19 = vadd.f32 %v2516_v1, %v2428_v10  ;;  %v3279_v1 = vld [vmem:[#allocation1] sm:$0xff] }
 0x3c6   :  { %3291 = vmatmul.bf16.vlgmr.msra.gmra.mxu3 %v3279_v1 }
 0x3c7   :  { %v2606_v45 = vadd.f32 %v2605_v56, %v2517_v19  ;;  %v2644_v56 = vpack.c.bf16 %v2604_v47, %v2604_v47 }
 0x3c9   :  { %v2437_v18 = vpop.f32.mrf.mxu2  ;;  %v2645_v58 = vpack.c.bf16 %v2606_v45, %v2606_v45  ;;  %v2996_v10 = vunpack.c.l.bf16 %v2644_v56  ;;  %v3280_v56 = vld [vmem:[#allocation1 + $0x9] sm:$0xff] }
 0x3cb   :  { %v2997_v49 = vunpack.c.l.bf16 %v2645_v58 }
 0x3cc   :  { %v2519_v31 = vpop.f32.mrf.mxu3 }
 0x3cd   :  { %v2520_v50 = vadd.f32 %v2519_v31, %v2431_v46  ;;  %v3032_v31 = vunpack.c.l.bf16 %v2960_v32 }
 0x3cf   :  { %v2609_v6 = vadd.f32 %v2608_v30, %v2520_v50  ;;  %v5625_v50 = vld [vmem:[#allocation7_spill] sm:$0xff] }
 0x3d0   :  { %v2438_v43 = vadd.f32 %v2437_v18, %v5625_v50 }
 0x3d1   :  { %v2646_v48 = vpack.c.bf16 %v2609_v6, %v2609_v6 }
 0x3d3   :  { %v2998_v8 = vunpack.c.l.bf16 %v2646_v48 }
 0x3d4   :  { %v2521_v26 = vpop.f32.mrf.mxu3 }
 0x3d5   :  { %v3062_v21 = vadd.f32 %v3030_v25, %v2998_v8  ;;  %v2522_v54 = vadd.f32 %v2521_v26, %v2433_v24  ;;  %v5626_v8 = vld [vmem:[#allocation11_spill] sm:$0xff] }
 0x3d6   :  { %v2969_v26 = vperm.slane %v5626_v8, %v4277_v61 }
 0x3d7   :  { %v2611_v42 = vadd.f32 %v2610_v0, %v2522_v54  ;;  %v3094_v16 = vpack.c.bf16 %v3062_v21, %v3062_v21  ;;  %v2924_v21 = vperm.slane %v5627_v52, %v4277_v61  ;;  %v2615_v54 = vpop.f32.mrf.mxu1 }
 0x3d8   :  { %v3033_v35 = vunpack.c.l.bf16 %v2969_v26 }
 0x3d9   :  { %v2647_v60 = vpack.c.bf16 %v2611_v42, %v2611_v42  ;;  %v3126_v12 = vunpack.c.l.bf16 %v3094_v16  ;;  %v3028_v2 = vunpack.c.l.bf16 %v2924_v21 }
 0x3db   :  { %v2999_v63 = vunpack.c.l.bf16 %v2647_v60  ;;  %v3158_v46 = vmul.f32 0.20019531, %v3126_v12 }
 0x3dc   :  { %v2524_v15 = vpop.f32.mrf.mxu3 }
 0x3dd   :  { %v3063_v40 = vadd.f32 %v3031_v5, %v2999_v63  ;;  %v2525_v34 = vadd.f32 %v2524_v15, %v2436_v53  ;;  %v3254_v36 = vmax.f32 %v3126_v12, %v3158_v46  ;;  %v2906_v5 = vperm.slane %v5453_v41, %v4277_v61 }
 0x3de   :  { %v3061_v53 = vadd.f32 %v3029_v20, %v2997_v49  ;;  %v3027_v63 = vunpack.c.l.bf16 %v2915_v37  ;;  %v3060_v15 = vadd.f32 %v3028_v2, %v2996_v10 }
 0x3df   :  { %v3095_v59 = vpack.c.bf16 %v3063_v40, %v3063_v40  ;;  %v2614_v30 = vadd.f32 %v2613_v38, %v2525_v34  ;;  %v3026_v14 = vunpack.c.l.bf16 %v2906_v5 }
 0x3e0   :  { %v3059_v23 = vadd.f32 %v3027_v63, %v2995_v29  ;;  %v3093_v12 = vpack.c.bf16 %v3061_v53, %v3061_v53  ;;  %v3092_v34 = vpack.c.bf16 %v3060_v15, %v3060_v15 }
 0x3e1   :  { %v3127_v57 = vunpack.c.l.bf16 %v3095_v59  ;;  %v2648_v7 = vpack.c.bf16 %v2614_v30, %v2614_v30  ;;  %v3058_v40 = vadd.f32 %v3026_v14, %v2994_v51 }
 0x3e2   :  { %v3091_v18 = vpack.c.bf16 %v3059_v23, %v3059_v23  ;;  %v3125_v3 = vunpack.c.l.bf16 %v3093_v12  ;;  %v3124_v41 = vunpack.c.l.bf16 %v3092_v34 }
 0x3e3   :  { %v3159_v6 = vmul.f32 0.20019531, %v3127_v57  ;;  %v3000_v48 = vunpack.c.l.bf16 %v2648_v7  ;;  %v3090_v61 = vpack.c.bf16 %v3058_v40, %v3058_v40 }
 0x3e4   :  { %v2526_v0 = vpop.f32.mrf.mxu3  ;;  %v3123_v47 = vunpack.c.l.bf16 %v3091_v18  ;;  %v3157_v1 = vmul.f32 0.20019531, %v3125_v3  ;;  %v3156_v7 = vmul.f32 0.20019531, %v3124_v41 }
 0x3e5   :  { %v3064_v25 = vadd.f32 %v3032_v31, %v3000_v48  ;;  %v2527_v44 = vadd.f32 %v2526_v0, %v2438_v43  ;;  %v3255_v24 = vmax.f32 %v3127_v57, %v3159_v6  ;;  %v3122_v57 = vunpack.c.l.bf16 %v3090_v61 }
 0x3e6   :  { %v3155_v31 = vmul.f32 0.20019531, %v3123_v47  ;;  %v3253_v50 = vmax.f32 %v3125_v3, %v3157_v1  ;;  %v3252_v33 = vmax.f32 %v3124_v41, %v3156_v7 }
 0x3e7   :  { %v2616_v9 = vadd.f32 %v2615_v54, %v2527_v44  ;;  %v3272_v42 = vpack.c.bf16 %v3255_v24, %v3254_v36  ;;  %v3096_v16 = vpack.c.bf16 %v3064_v25, %v3064_v25  ;;  %v3154_v43 = vmul.f32 0.20019531, %v3122_v57 }
 0x3e8   :  { %v3271_v58 = vpack.c.bf16 %v3253_v50, %v3252_v33  ;;  %v3251_v6 = vmax.f32 %v3123_v47, %v3155_v31  ;;  %v3276_v44 = vstv %s5565_s6 }
 0x3e9   :  { %v2649_v60 = vpack.c.bf16 %v2616_v9, %v2616_v9  ;;  %v3128_v38 = vunpack.c.l.bf16 %v3096_v16  ;;  %v3250_v48 = vmax.f32 %v3122_v57, %v3154_v43 }
 0x3eb   :  { %v3001_v19 = vunpack.c.l.bf16 %v2649_v60  ;;  %v3160_v4 = vmul.f32 0.20019531, %v3128_v38  ;;  %v3270_v22 = vpack.c.bf16 %v3251_v6, %v3250_v48 }
 0x3ed   :  { %v3065_v55 = vadd.f32 %v3033_v35, %v3001_v19  ;;  %v3256_v59 = vmax.f32 %v3128_v38, %v3160_v4 }
 0x3ef   :  { %v3097_v11 = vpack.c.bf16 %v3065_v55, %v3065_v55 }
 0x3f1   :  { %v3129_v32 = vunpack.c.l.bf16 %v3097_v11 }
 0x3f3   :  { %v3161_v45 = vmul.f32 0.20019531, %v3129_v32 }
 0x3f5   :  { %v3257_v30 = vmax.f32 %v3129_v32, %v3161_v45 }
 0x3f7   :  { %v3273_v46 = vpack.c.bf16 %v3257_v30, %v3256_v59 }
 0x3f9   :  { %3296 = vmatpush.bf16.msrb.mxu3 %v3273_v46 }
 0x3fd   :  { %3297 = vmatpush.bf16.msrb.mxu3 %v3272_v42 }
 0x401   :  { %3298 = vmatpush.bf16.msrb.mxu3 %v3271_v58 }
 0x405   :  { %3299 = vmatpush.bf16.msrb.mxu3 %v3270_v22 }
 0x409   :  { %3300 = vmatpush.bf16.msrb.mxu3 %v5517_v62 }
 0x40d   :  { %3301 = vmatpush.bf16.msrb.mxu3 %v5510_v13 }
 0x411   :  { %3302 = vmatpush.bf16.msrb.mxu3 %v5500_v17 }
 0x415   :  { %3303 = vmatpush.bf16.msrb.mxu3 %v5489_v39 }
 0x418   :  { %3304 = vmatmul.bf16.vlgmr.msrb.gmra.mxu3 %v3280_v56 }
 0x449   :  { %v3292_v0 = vpop.f32.mrf.mxu3 }
 0x44a   :  { %v3293_v36 = vadd.f32 %v3292_v0, %v3276_v44 }
 0x451   :  { %v3294_v25 = vpop.f32.mrf.mxu3 }
 0x49b   :  { %v3305_v24 = vpop.f32.mrf.mxu3 }
 0x49c   :  { %v3306_v8 = vadd.f32 %v3305_v24, %v3293_v36 }
 0x49e   :  { %v3761_v26 = vmul.f32 -1.442695, %v3306_v8 }
 0x4a0   :  { %3880 = vpow2.f32 %v3761_v26 }
 0x4a3   :  { %v3307_v62 = vpop.f32.mrf.mxu3 }
 0x4a6   :  { %v3881_v52 = vpop.eup %3880 }
 0x4a7   :  { %v3312_v13 = vadd.f32 1.0, %v3881_v52 }
 0x4a9   :  { %3882 = vrcp.f32 %v3312_v13  ;;  %v3324_v54 = vand.u32 2147483648, %v3312_v13  ;;  %v3322_v49 = vand.u32 2147483647, %v3312_v13  ;;  %vm3318_vm2 = vweird.f32 %v3312_v13 }
 0x4ab   :  { %v3325_v42 = vor.u32 1.1754944e-38, %v3324_v54  ;;  %vm3323_vm4 = vcmp.eq.f32.partialorder %v3322_v49, 8.507059e+37 }
 0x4af   :  { %v3883_v17 = vpop.eup %3882 }
 0x4b0   :  { %v3314_v21 = vmul.f32 %v3883_v17, %v3312_v13  ;;  %vm3319_vm1 = vweird.f32 %v3883_v17 }
 0x4b1   :  { %vm3320_vm3 = vmor %vm3318_vm2, %vm3319_vm1 }
 0x4b2   :  { %v3315_v39 = vsub.f32 1.0, %v3314_v21 }
 0x4b4   :  { %v3316_v27 = vmul.f32 %v3883_v17, %v3315_v39 }
 0x4b6   :  { %v3317_v9 = vadd.f32 %v3883_v17, %v3316_v27 }
 0x4b8   :  { %v3321_v20 = vsel %vm3320_vm3, %v3883_v17, %v3317_v9 }
 0x4b9   :  { %v3326_v37 = vsel %vm3323_vm4, %v3325_v42, %v3321_v20 }
 0x4ba   :  { %3328 = vst [vmem:[#allocation3] sm:$0x1] %v3326_v37 }
 0x4bb   :  { %3339 = dma.vmem_to_hbm [thread:$0]  %s3335_s12, 16, %s3337_s14, [#allocation4]  }
 0x4bc   :  { %3908 = dma.done.wait [#allocation4], 16  }
 0x4bd   :  { %3909 = vsyncadd [#allocation4], 4294967280 }
 0x4be   :  { %3344 = vsyncpa [#allocation4], 1 }

</bundles_post_ra>
